<compile_context>
chip_gen: v7x
topology: tpu7x:2x2x1
jax: 0.10.0
libtpu: 0.0.40
codegen_flags: <defaults>
</compile_context>

<pallas_src>
import jax
import jax.numpy as jnp
from jax.experimental import pallas as pl
from jax.experimental.pallas import tpu as pltpu

EPS = 1e-5


def _round_up(x, m):
    return (x + m - 1) // m * m


# --------------------------------------------------------------------------- #
# Kernel 1: conv1 as a single deep-K matmul + per-step partial BN statistics
# --------------------------------------------------------------------------- #
def _conv1_stats_call(a1, w1m, tm):
    """a1: (M, K1p) bf16 im2col of the concatenated input; w1m: (K1p, C1) bf16.

    One MXU matmul per TM-row block.  Emits per-grid-step partial per-channel
    sum / sum-of-squares (reduced in the wrapper -> exact global BN stats),
    so the grid axis can be 'parallel' (megacore-safe).
    """
    m, k1p = a1.shape
    c1 = w1m.shape[1]
    n = m // tm

    def kernel(a_ref, w_ref, y_ref, s_ref, q_ref):
        acc = jnp.dot(a_ref[...], w_ref[...], preferred_element_type=jnp.float32)
        yb = acc.astype(jnp.bfloat16)              # bf16 HBM round trip for y1
        y_ref[...] = yb
        # Stats over exactly the values bn1 will normalize (the bf16-stored y1).
        ybf = yb.astype(jnp.float32)
        s_ref[...] = jnp.sum(ybf, axis=0, keepdims=True).reshape(1, 1, c1)
        q_ref[...] = jnp.sum(ybf * ybf, axis=0, keepdims=True).reshape(1, 1, c1)

    return pl.pallas_call(
        kernel,
        out_shape=(jax.ShapeDtypeStruct((m, c1), jnp.bfloat16),
                   jax.ShapeDtypeStruct((n, 1, c1), jnp.float32),
                   jax.ShapeDtypeStruct((n, 1, c1), jnp.float32)),
        grid=(n,),
        in_specs=[pl.BlockSpec((tm, k1p), lambda i: (i, 0)),
                  pl.BlockSpec((k1p, c1), lambda i: (0, 0))],
        out_specs=(pl.BlockSpec((tm, c1), lambda i: (i, 0)),
                   pl.BlockSpec((1, 1, c1), lambda i: (i, 0, 0)),
                   pl.BlockSpec((1, 1, c1), lambda i: (i, 0, 0))),
        compiler_params=pltpu.CompilerParams(
            dimension_semantics=("parallel",)),
        cost_estimate=pl.CostEstimate(
            flops=2 * m * k1p * c1, transcendentals=0,
            bytes_accessed=a1.size * 2 + w1m.size * 2 + m * c1 * 2 + 2 * n * c1 * 4),
    )(a1, w1m)


# --------------------------------------------------------------------------- #
# Kernel 2: bn1 (global affine) + relu fused with conv2 (one K=9*C1 matmul)
#           + per-step partial BN statistics for bn2
# --------------------------------------------------------------------------- #
def _bn1_relu_conv2_stats_call(y1r, scale1, shift1, w2m, H, W):
    """y1r: (B, H*W, C1) bf16 raw conv1 output; scale1/shift1: (1, C1) f32
    global bn1 affine; w2m: (9*C1, C2p) bf16 im2col weight."""
    b, hw, c1 = y1r.shape
    k2, c2p = w2m.shape

    def kernel(y1_ref, sc_ref, sh_ref, w_ref, y2_ref, s_ref, q_ref, xpad, slab):
        # bn1 (global stats) + relu, f32 math, single bf16 cast per tile.
        x = y1_ref[...].reshape(hw, c1).astype(jnp.float32)
        xn = jnp.maximum(x * sc_ref[...] + sh_ref[...], 0.0).astype(jnp.bfloat16)

        # Zero only the 1-pixel halo; the interior is fully overwritten below.
        zrow = jnp.zeros((1, W + 2, c1), jnp.bfloat16)
        zcol = jnp.zeros((H + 2, 1, c1), jnp.bfloat16)
        xpad[0:1, :, :] = zrow
        xpad[H + 1:H + 2, :, :] = zrow
        xpad[:, 0:1, :] = zcol
        xpad[:, W + 1:W + 2, :] = zcol
        xpad[1:H + 1, 1:W + 1, :] = xn.reshape(H, W, c1)

        # Fold the 9 taps into one deep-K im2col slab (lane-dense stores),
        # then a single K = 9*C1 MXU matmul.
        for tap in range(9):
            dy, dx = tap // 3, tap % 3
            slab[:, tap * c1:(tap + 1) * c1] = (
                xpad[dy:dy + H, dx:dx + W, :].reshape(hw, c1))

        acc = jnp.dot(slab[...], w_ref[...],
                      preferred_element_type=jnp.float32)        # (hw, c2p) f32

        y2_ref[...] = acc.reshape(1, hw, c2p)
        s_ref[...] = jnp.sum(acc, axis=0, keepdims=True).reshape(1, 1, c2p)
        q_ref[...] = jnp.sum(acc * acc, axis=0, keepdims=True).reshape(1, 1, c2p)

    return pl.pallas_call(
        kernel,
        out_shape=(jax.ShapeDtypeStruct((b, hw, c2p), jnp.float32),
                   jax.ShapeDtypeStruct((b, 1, c2p), jnp.float32),
                   jax.ShapeDtypeStruct((b, 1, c2p), jnp.float32)),
        grid=(b,),
        in_specs=[pl.BlockSpec((1, hw, c1), lambda i: (i, 0, 0)),
                  pl.BlockSpec((1, c1), lambda i: (0, 0)),
                  pl.BlockSpec((1, c1), lambda i: (0, 0)),
                  pl.BlockSpec((k2, c2p), lambda i: (0, 0))],
        out_specs=(pl.BlockSpec((1, hw, c2p), lambda i: (i, 0, 0)),
                   pl.BlockSpec((1, 1, c2p), lambda i: (i, 0, 0)),
                   pl.BlockSpec((1, 1, c2p), lambda i: (i, 0, 0))),
        scratch_shapes=[pltpu.VMEM((H + 2, W + 2, c1), jnp.bfloat16),
                        pltpu.VMEM((hw, k2), jnp.bfloat16)],
        compiler_params=pltpu.CompilerParams(
            dimension_semantics=("parallel",)),
        cost_estimate=pl.CostEstimate(
            flops=2 * b * hw * k2 * c2p, transcendentals=0,
            bytes_accessed=y1r.size * 2 + w2m.size * 2 + b * hw * c2p * 4),
    )(y1r, scale1, shift1, w2m)


# --------------------------------------------------------------------------- #
# Kernel 3: bn2 (global affine) + relu on the compact conv2 output
# --------------------------------------------------------------------------- #
def _bn2_relu_call(y2, scale2, shift2):
    b, hw, c2p = y2.shape

    def kernel(y_ref, sc_ref, sh_ref, o_ref):
        sc = sc_ref[...].reshape(1, 1, c2p)
        sh = sh_ref[...].reshape(1, 1, c2p)
        o_ref[...] = jnp.maximum(y_ref[...] * sc + sh, 0.0)

    return pl.pallas_call(
        kernel,
        out_shape=jax.ShapeDtypeStruct((b, hw, c2p), jnp.float32),
        grid=(b,),
        in_specs=[pl.BlockSpec((1, hw, c2p), lambda i: (i, 0, 0)),
                  pl.BlockSpec((1, c2p), lambda i: (0, 0)),
                  pl.BlockSpec((1, c2p), lambda i: (0, 0))],
        out_specs=pl.BlockSpec((1, hw, c2p), lambda i: (i, 0, 0)),
        compiler_params=pltpu.CompilerParams(
            dimension_semantics=("parallel",)),
        cost_estimate=pl.CostEstimate(
            flops=2 * b * hw * c2p, transcendentals=0,
            bytes_accessed=2 * b * hw * c2p * 4),
    )(y2, scale2, shift2)


# --------------------------------------------------------------------------- #
# BN finalize (tiny per-channel math, done in the wrapper from global sums)
# --------------------------------------------------------------------------- #
def _bn_affine(sums, sumsq, gamma, beta, count):
    mean = sums / count
    var = jnp.maximum(sumsq / count - mean * mean, 0.0)
    scale = gamma * jax.lax.rsqrt(var + EPS)
    shift = beta - mean * scale
    return scale, shift


# --------------------------------------------------------------------------- #
# Forward wrapper (NCHW in / NCHW out, matching the PyTorch module)
# --------------------------------------------------------------------------- #
def triple_inter_action_forward(x1, x2, x3, params):
    x = jnp.concatenate([x1, x2, x3], axis=1).astype(jnp.float32)   # (B,Cin,H,W)
    B, Cin, H, W = x.shape
    C1 = params["conv1_w"].shape[0]
    C2 = params["conv2_w"].shape[0]
    M = B * H * W
    K1 = 9 * Cin
    K1p = _round_up(K1, 128)            # lane-dense conv1 contraction dim
    C2p = _round_up(C2, 8)              # compact (not 128x) conv2 channel pad

    # conv1 im2col slab built in the wrapper (tiny since Cin is small), bf16 once.
    x_nhwc = jnp.transpose(x, (0, 2, 3, 1))
    xp = jnp.pad(x_nhwc, ((0, 0), (1, 1), (1, 1), (0, 0)))
    taps = [xp[:, dy:dy + H, dx:dx + W, :] for dy in range(3) for dx in range(3)]
    a1 = jnp.concatenate(taps, axis=-1).reshape(M, K1)
    a1 = jnp.pad(a1, ((0, 0), (0, K1p - K1))).astype(jnp.bfloat16)

    # Weights as im2col matrices, tap-major (dy*3+dx), bf16 for the MXU.
    w1m = jnp.transpose(params["conv1_w"], (2, 3, 1, 0)).reshape(K1, C1)
    w1m = jnp.pad(w1m, ((0, K1p - K1), (0, 0))).astype(jnp.bfloat16)
    w2m = jnp.transpose(params["conv2_w"], (2, 3, 1, 0)).reshape(9 * C1, C2)
    w2m = jnp.pad(w2m, ((0, 0), (0, C2p - C2))).astype(jnp.bfloat16)

    g1 = params["bn1_gamma"].reshape(1, C1).astype(jnp.float32)
    b1 = params["bn1_beta"].reshape(1, C1).astype(jnp.float32)
    g2 = jnp.pad(params["bn2_gamma"].reshape(1, C2).astype(jnp.float32),
                 ((0, 0), (0, C2p - C2)), constant_values=1.0)
    b2 = jnp.pad(params["bn2_beta"].reshape(1, C2).astype(jnp.float32),
                 ((0, 0), (0, C2p - C2)))

    # Row-block size for the conv1 matmul grid (more steps -> better pipelining).
    TM = next((t for t in (128, 256, 64, 32, 16) if M % t == 0), M)

    # Kernel 1: conv1 + per-step partial stats; reduce + finalize bn1 in wrapper.
    y1, s1p, q1p = _conv1_stats_call(a1, w1m, TM)
    scale1, shift1 = _bn_affine(jnp.sum(s1p, axis=0), jnp.sum(q1p, axis=0),
                                g1, b1, float(M))

    # Kernel 2: bn1(global) + relu fused with conv2 + per-step partial stats.
    y2, s2p, q2p = _bn1_relu_conv2_stats_call(
        y1.reshape(B, H * W, C1), scale1, shift1, w2m, H, W)
    scale2, shift2 = _bn_affine(jnp.sum(s2p, axis=0), jnp.sum(q2p, axis=0),
                                g2, b2, float(M))

    # Kernel 3: bn2(global) + relu.
    out = _bn2_relu_call(y2, scale2, shift2)            # (B, H*W, C2p)
    out = out.reshape(B, H, W, C2p)[..., :C2]
    return jnp.transpose(out, (0, 3, 1, 2))             # (B, outplanes, H, W)


# --------------------------------------------------------------------------- #
# Pure-JAX reference mirroring the kernel numerics (bf16 conv operands with f32
# accumulation, bf16 storage of the conv1 intermediate) for the sanity check.
# --------------------------------------------------------------------------- #
def _ref_forward(x1, x2, x3, params):
    x = jnp.concatenate([x1, x2, x3], axis=1)

    def conv(x, w):
        return jax.lax.conv_general_dilated(
            x.astype(jnp.bfloat16), w.astype(jnp.bfloat16), (1, 1), ((1, 1), (1, 1)),
            dimension_numbers=("NCHW", "OIHW", "NCHW"),
            preferred_element_type=jnp.float32)

    def bn(y, g, b):
        mean = jnp.mean(y, axis=(0, 2, 3), keepdims=True)
        var = jnp.mean((y - mean) ** 2, axis=(0, 2, 3), keepdims=True)
        return (y - mean) * jax.lax.rsqrt(var + EPS) \
            * g[None, :, None, None] + b[None, :, None, None]

    y1 = conv(x, params["conv1_w"]).astype(jnp.bfloat16).astype(jnp.float32)
    y = jnp.maximum(bn(y1, params["bn1_gamma"], params["bn1_beta"]), 0.0)
    y2 = conv(y, params["conv2_w"])
    return jnp.maximum(bn(y2, params["bn2_gamma"], params["bn2_beta"]), 0.0)


# --------------------------------------------------------------------------- #
if __name__ == "__main__":
    key = jax.random.PRNGKey(0)
    ks = jax.random.split(key, 8)

    B, H, W = 2, 16, 16
    inplanes, channels, outplanes = 7, 64, 1

    # inplanes = 7 = 3 + 3 + 1 channels across the three inputs
    x1 = jax.random.normal(ks[0], (B, 3, H, W), jnp.float32)
    x2 = jax.random.normal(ks[1], (B, 3, H, W), jnp.float32)
    x3 = jax.random.normal(ks[2], (B, 1, H, W), jnp.float32)

    params = {
        "conv1_w": 0.1 * jax.random.normal(ks[3], (channels, inplanes, 3, 3), jnp.float32),
        "bn1_gamma": 1.0 + 0.1 * jax.random.normal(ks[4], (channels,), jnp.float32),
        "bn1_beta": 0.1 * jax.random.normal(ks[5], (channels,), jnp.float32),
        "conv2_w": 0.1 * jax.random.normal(ks[6], (outplanes, channels, 3, 3), jnp.float32),
        "bn2_gamma": 1.0 + 0.1 * jax.random.normal(ks[7], (outplanes,), jnp.float32),
        "bn2_beta": jnp.zeros((outplanes,), jnp.float32),
    }

    fwd = jax.jit(triple_inter_action_forward)
    out = jax.block_until_ready(fwd(x1, x2, x3, params))
    assert out.shape == (B, outplanes, H, W), out.shape

    ref = jax.block_until_ready(_ref_forward(x1, x2, x3, params))
    if not jnp.allclose(out, ref, atol=1e-2, rtol=1e-2):
        err = float(jnp.max(jnp.abs(out - ref)))
        raise AssertionError(f"Pallas kernel output mismatch vs reference (max |err|={err})")

    print("KERNEL_OK")
</pallas_src>

<mosaic_0001>
module attributes {stable_mosaic.version = 11 : i64} {
  func.func @kernel(%arg0: i32, %arg1: memref<128x128xbf16, #tpu.memory_space<vmem>>, %arg2: memref<128x64xbf16, #tpu.memory_space<vmem>>, %arg3: memref<128x64xbf16, #tpu.memory_space<vmem>>, %arg4: memref<1x1x64xf32, #tpu.memory_space<vmem>>, %arg5: memref<1x1x64xf32, #tpu.memory_space<vmem>>) attributes {dimension_semantics = [#tpu.dimension_semantics<parallel>], iteration_bounds = array<i64: 4>, scalar_prefetch = 0 : i64, scratch_operands = 0 : i64, tpu.core_type = #tpu.core_type<tc>, window_params = [{transform_indices = @transform_0, window_bounds = array<i64: 128, 128>}, {pipeline_mode = #tpu.pipeline_mode<synchronous>, transform_indices = @transform_1, window_bounds = array<i64: 128, 64>}, {transform_indices = @transform_2, window_bounds = array<i64: 128, 64>}, {transform_indices = @transform_3, window_bounds = array<i64: 1, 1, 64>}, {transform_indices = @transform_4, window_bounds = array<i64: 1, 1, 64>}]} {
    %c0 = arith.constant 0 : index
    %c0_0 = arith.constant 0 : index
    %0 = vector.load %arg1[%c0, %c0_0] : memref<128x128xbf16, #tpu.memory_space<vmem>>, vector<128x128xbf16>
    %c0_1 = arith.constant 0 : index
    %c0_2 = arith.constant 0 : index
    %1 = vector.load %arg2[%c0_1, %c0_2] : memref<128x64xbf16, #tpu.memory_space<vmem>>, vector<128x64xbf16>
    %cst = arith.constant dense<0.000000e+00> : vector<128x64xf32>
    %2 = tpu.matmul %0, %1, %cst {dimension_numbers = #tpu.dot_dimension_numbers<[1], [0], [0], [1], [0, 0, 1, 1], [], []>} : vector<128x128xbf16>, vector<128x64xbf16>, vector<128x64xf32> -> vector<128x64xf32>
    %3 = arith.truncf %2 : vector<128x64xf32> to vector<128x64xbf16>
    %c0_3 = arith.constant 0 : index
    %c0_4 = arith.constant 0 : index
    %4 = vector.load %arg3[%c0_3, %c0_4] : memref<128x64xbf16, #tpu.memory_space<vmem>>, vector<128x64xbf16>
    tpu.vector_store %arg3[%c0_3, %c0_4], %3 {strides = array<i32>} : memref<128x64xbf16, #tpu.memory_space<vmem>>, vector<128x64xbf16>,
    %5 = arith.extf %3 : vector<128x64xbf16> to vector<128x64xf32>
    %cst_5 = arith.constant dense<0.000000e+00> : vector<64xf32>
    %6 = vector.multi_reduction <add>, %5, %cst_5 [0] : vector<128x64xf32> to vector<64xf32>
    %7 = vector.shape_cast %6 : vector<64xf32> to vector<1x64xf32>
    %8 = vector.shape_cast %7 : vector<1x64xf32> to vector<1x1x64xf32>
    %c0_6 = arith.constant 0 : index
    %c0_7 = arith.constant 0 : index
    %c0_8 = arith.constant 0 : index
    %9 = vector.load %arg4[%c0_6, %c0_7, %c0_8] : memref<1x1x64xf32, #tpu.memory_space<vmem>>, vector<1x1x64xf32>
    tpu.vector_store %arg4[%c0_6, %c0_7, %c0_8], %8 {strides = array<i32>} : memref<1x1x64xf32, #tpu.memory_space<vmem>>, vector<1x1x64xf32>,
    %10 = arith.mulf %5, %5 : vector<128x64xf32>
    %cst_9 = arith.constant dense<0.000000e+00> : vector<64xf32>
    %11 = vector.multi_reduction <add>, %10, %cst_9 [0] : vector<128x64xf32> to vector<64xf32>
    %12 = vector.shape_cast %11 : vector<64xf32> to vector<1x64xf32>
    %13 = vector.shape_cast %12 : vector<1x64xf32> to vector<1x1x64xf32>
    %c0_10 = arith.constant 0 : index
    %c0_11 = arith.constant 0 : index
    %c0_12 = arith.constant 0 : index
    %14 = vector.load %arg5[%c0_10, %c0_11, %c0_12] : memref<1x1x64xf32, #tpu.memory_space<vmem>>, vector<1x1x64xf32>
    tpu.vector_store %arg5[%c0_10, %c0_11, %c0_12], %13 {strides = array<i32>} : memref<1x1x64xf32, #tpu.memory_space<vmem>>, vector<1x1x64xf32>,
    return
  }
  func.func @transform_0(%arg0: i32) -> (i32, i32) {
    %c0_i32 = arith.constant 0 : i32
    %c0_i32_0 = arith.constant 0 : i32
    return %arg0, %c0_i32 : i32, i32
  }
  func.func @transform_1(%arg0: i32) -> (i32, i32) {
    %c0_i32 = arith.constant 0 : i32
    %c0_i32_0 = arith.constant 0 : i32
    %c0_i32_1 = arith.constant 0 : i32
    return %c0_i32, %c0_i32_0 : i32, i32
  }
  func.func @transform_2(%arg0: i32) -> (i32, i32) {
    %c0_i32 = arith.constant 0 : i32
    %c0_i32_0 = arith.constant 0 : i32
    return %arg0, %c0_i32 : i32, i32
  }
  func.func @transform_3(%arg0: i32) -> (i32, i32, i32) {
    %c0_i32 = arith.constant 0 : i32
    %c0_i32_0 = arith.constant 0 : i32
    %c0_i32_1 = arith.constant 0 : i32
    return %arg0, %c0_i32, %c0_i32_0 : i32, i32, i32
  }
  func.func @transform_4(%arg0: i32) -> (i32, i32, i32) {
    %c0_i32 = arith.constant 0 : i32
    %c0_i32_0 = arith.constant 0 : i32
    %c0_i32_1 = arith.constant 0 : i32
    return %arg0, %c0_i32, %c0_i32_0 : i32, i32, i32
  }
}

module attributes {stable_mosaic.version = 11 : i64} {
  func.func @kernel(%arg0: i32, %arg1: memref<1x256x64xbf16, #tpu.memory_space<vmem>>, %arg2: memref<1x64xf32, #tpu.memory_space<vmem>>, %arg3: memref<1x64xf32, #tpu.memory_space<vmem>>, %arg4: memref<576x8xbf16, #tpu.memory_space<vmem>>, %arg5: memref<1x256x8xf32, #tpu.memory_space<vmem>>, %arg6: memref<1x1x8xf32, #tpu.memory_space<vmem>>, %arg7: memref<1x1x8xf32, #tpu.memory_space<vmem>>, %arg8: memref<18x18x64xbf16, #tpu.memory_space<vmem>>, %arg9: memref<256x576xbf16, #tpu.memory_space<vmem>>) attributes {dimension_semantics = [#tpu.dimension_semantics<parallel>], iteration_bounds = array<i64: 2>, scalar_prefetch = 0 : i64, scratch_operands = 2 : i64, tpu.core_type = #tpu.core_type<tc>, window_params = [{transform_indices = @transform_0, window_bounds = array<i64: 1, 256, 64>}, {pipeline_mode = #tpu.pipeline_mode<synchronous>, transform_indices = @transform_1, window_bounds = array<i64: 1, 64>}, {pipeline_mode = #tpu.pipeline_mode<synchronous>, transform_indices = @transform_2, window_bounds = array<i64: 1, 64>}, {pipeline_mode = #tpu.pipeline_mode<synchronous>, transform_indices = @transform_3, window_bounds = array<i64: 576, 8>}, {transform_indices = @transform_4, window_bounds = array<i64: 1, 256, 8>}, {transform_indices = @transform_5, window_bounds = array<i64: 1, 1, 8>}, {transform_indices = @transform_6, window_bounds = array<i64: 1, 1, 8>}]} {
    %c0 = arith.constant 0 : index
    %c0_0 = arith.constant 0 : index
    %c0_1 = arith.constant 0 : index
    %0 = vector.load %arg1[%c0, %c0_0, %c0_1] : memref<1x256x64xbf16, #tpu.memory_space<vmem>>, vector<1x256x64xbf16>
    %1 = vector.shape_cast %0 : vector<1x256x64xbf16> to vector<256x64xbf16>
    %2 = arith.extf %1 : vector<256x64xbf16> to vector<256x64xf32>
    %c0_2 = arith.constant 0 : index
    %c0_3 = arith.constant 0 : index
    %3 = vector.load %arg2[%c0_2, %c0_3] : memref<1x64xf32, #tpu.memory_space<vmem>>, vector<1x64xf32>
    %4 = vector.broadcast %3 : vector<1x64xf32> to vector<256x64xf32>
    %5 = arith.mulf %2, %4 : vector<256x64xf32>
    %c0_4 = arith.constant 0 : index
    %c0_5 = arith.constant 0 : index
    %6 = vector.load %arg3[%c0_4, %c0_5] : memref<1x64xf32, #tpu.memory_space<vmem>>, vector<1x64xf32>
    %7 = vector.broadcast %6 : vector<1x64xf32> to vector<256x64xf32>
    %8 = arith.addf %5, %7 : vector<256x64xf32>
    %cst = arith.constant 0.000000e+00 : f32
    %9 = vector.broadcast %cst : f32 to vector<256x64xf32>
    %10 = arith.maximumf %8, %9 : vector<256x64xf32>
    %11 = arith.truncf %10 : vector<256x64xf32> to vector<256x64xbf16>
    %cst_6 = arith.constant 0.000000e+00 : bf16
    %12 = vector.broadcast %cst_6 : bf16 to vector<1x18x64xbf16>
    %cst_7 = arith.constant 0.000000e+00 : bf16
    %13 = vector.broadcast %cst_7 : bf16 to vector<18x1x64xbf16>
    %c0_8 = arith.constant 0 : index
    %c0_9 = arith.constant 0 : index
    %c0_10 = arith.constant 0 : index
    %14 = vector.load %arg8[%c0_8, %c0_9, %c0_10] : memref<18x18x64xbf16, #tpu.memory_space<vmem>>, vector<1x18x64xbf16>
    tpu.vector_store %arg8[%c0_8, %c0_9, %c0_10], %12 {strides = array<i32>} : memref<18x18x64xbf16, #tpu.memory_space<vmem>>, vector<1x18x64xbf16>,
    %c17 = arith.constant 17 : index
    %c0_11 = arith.constant 0 : index
    %c0_12 = arith.constant 0 : index
    %15 = vector.load %arg8[%c17, %c0_11, %c0_12] : memref<18x18x64xbf16, #tpu.memory_space<vmem>>, vector<1x18x64xbf16>
    tpu.vector_store %arg8[%c17, %c0_11, %c0_12], %12 {strides = array<i32>} : memref<18x18x64xbf16, #tpu.memory_space<vmem>>, vector<1x18x64xbf16>,
    %c0_13 = arith.constant 0 : index
    %c0_14 = arith.constant 0 : index
    %c0_15 = arith.constant 0 : index
    %16 = vector.load %arg8[%c0_13, %c0_14, %c0_15] : memref<18x18x64xbf16, #tpu.memory_space<vmem>>, vector<18x1x64xbf16>
    tpu.vector_store %arg8[%c0_13, %c0_14, %c0_15], %13 {strides = array<i32>} : memref<18x18x64xbf16, #tpu.memory_space<vmem>>, vector<18x1x64xbf16>,
    %c0_16 = arith.constant 0 : index
    %c17_17 = arith.constant 17 : index
    %c0_18 = arith.constant 0 : index
    %17 = vector.load %arg8[%c0_16, %c17_17, %c0_18] : memref<18x18x64xbf16, #tpu.memory_space<vmem>>, vector<18x1x64xbf16>
    tpu.vector_store %arg8[%c0_16, %c17_17, %c0_18], %13 {strides = array<i32>} : memref<18x18x64xbf16, #tpu.memory_space<vmem>>, vector<18x1x64xbf16>,
    %18 = vector.shape_cast %11 : vector<256x64xbf16> to vector<16x16x64xbf16>
    %c1 = arith.constant 1 : index
    %c1_19 = arith.constant 1 : index
    %c0_20 = arith.constant 0 : index
    %19 = vector.load %arg8[%c1, %c1_19, %c0_20] : memref<18x18x64xbf16, #tpu.memory_space<vmem>>, vector<16x16x64xbf16>
    tpu.vector_store %arg8[%c1, %c1_19, %c0_20], %18 {strides = array<i32>} : memref<18x18x64xbf16, #tpu.memory_space<vmem>>, vector<16x16x64xbf16>,
    %c0_21 = arith.constant 0 : index
    %c0_22 = arith.constant 0 : index
    %c0_23 = arith.constant 0 : index
    %20 = vector.load %arg8[%c0_21, %c0_22, %c0_23] : memref<18x18x64xbf16, #tpu.memory_space<vmem>>, vector<16x16x64xbf16>
    %21 = vector.shape_cast %20 : vector<16x16x64xbf16> to vector<256x64xbf16>
    %c0_24 = arith.constant 0 : index
    %c0_25 = arith.constant 0 : index
    %22 = vector.load %arg9[%c0_24, %c0_25] : memref<256x576xbf16, #tpu.memory_space<vmem>>, vector<256x64xbf16>
    tpu.vector_store %arg9[%c0_24, %c0_25], %21 {strides = array<i32>} : memref<256x576xbf16, #tpu.memory_space<vmem>>, vector<256x64xbf16>,
    %c0_26 = arith.constant 0 : index
    %c1_27 = arith.constant 1 : index
    %c0_28 = arith.constant 0 : index
    %23 = vector.load %arg8[%c0_26, %c1_27, %c0_28] : memref<18x18x64xbf16, #tpu.memory_space<vmem>>, vector<16x16x64xbf16>
    %24 = vector.shape_cast %23 : vector<16x16x64xbf16> to vector<256x64xbf16>
    %c0_29 = arith.constant 0 : index
    %c64 = arith.constant 64 : index
    %25 = vector.load %arg9[%c0_29, %c64] : memref<256x576xbf16, #tpu.memory_space<vmem>>, vector<256x64xbf16>
    tpu.vector_store %arg9[%c0_29, %c64], %24 {strides = array<i32>} : memref<256x576xbf16, #tpu.memory_space<vmem>>, vector<256x64xbf16>,
    %c0_30 = arith.constant 0 : index
    %c2 = arith.constant 2 : index
    %c0_31 = arith.constant 0 : index
    %26 = vector.load %arg8[%c0_30, %c2, %c0_31] : memref<18x18x64xbf16, #tpu.memory_space<vmem>>, vector<16x16x64xbf16>
    %27 = vector.shape_cast %26 : vector<16x16x64xbf16> to vector<256x64xbf16>
    %c0_32 = arith.constant 0 : index
    %c128 = arith.constant 128 : index
    %28 = vector.load %arg9[%c0_32, %c128] : memref<256x576xbf16, #tpu.memory_space<vmem>>, vector<256x64xbf16>
    tpu.vector_store %arg9[%c0_32, %c128], %27 {strides = array<i32>} : memref<256x576xbf16, #tpu.memory_space<vmem>>, vector<256x64xbf16>,
    %c1_33 = arith.constant 1 : index
    %c0_34 = arith.constant 0 : index
    %c0_35 = arith.constant 0 : index
    %29 = vector.load %arg8[%c1_33, %c0_34, %c0_35] : memref<18x18x64xbf16, #tpu.memory_space<vmem>>, vector<16x16x64xbf16>
    %30 = vector.shape_cast %29 : vector<16x16x64xbf16> to vector<256x64xbf16>
    %c0_36 = arith.constant 0 : index
    %c192 = arith.constant 192 : index
    %31 = vector.load %arg9[%c0_36, %c192] : memref<256x576xbf16, #tpu.memory_space<vmem>>, vector<256x64xbf16>
    tpu.vector_store %arg9[%c0_36, %c192], %30 {strides = array<i32>} : memref<256x576xbf16, #tpu.memory_space<vmem>>, vector<256x64xbf16>,
    %c1_37 = arith.constant 1 : index
    %c1_38 = arith.constant 1 : index
    %c0_39 = arith.constant 0 : index
    %32 = vector.load %arg8[%c1_37, %c1_38, %c0_39] : memref<18x18x64xbf16, #tpu.memory_space<vmem>>, vector<16x16x64xbf16>
    %33 = vector.shape_cast %32 : vector<16x16x64xbf16> to vector<256x64xbf16>
    %c0_40 = arith.constant 0 : index
    %c256 = arith.constant 256 : index
    %34 = vector.load %arg9[%c0_40, %c256] : memref<256x576xbf16, #tpu.memory_space<vmem>>, vector<256x64xbf16>
    tpu.vector_store %arg9[%c0_40, %c256], %33 {strides = array<i32>} : memref<256x576xbf16, #tpu.memory_space<vmem>>, vector<256x64xbf16>,
    %c1_41 = arith.constant 1 : index
    %c2_42 = arith.constant 2 : index
    %c0_43 = arith.constant 0 : index
    %35 = vector.load %arg8[%c1_41, %c2_42, %c0_43] : memref<18x18x64xbf16, #tpu.memory_space<vmem>>, vector<16x16x64xbf16>
    %36 = vector.shape_cast %35 : vector<16x16x64xbf16> to vector<256x64xbf16>
    %c0_44 = arith.constant 0 : index
    %c320 = arith.constant 320 : index
    %37 = vector.load %arg9[%c0_44, %c320] : memref<256x576xbf16, #tpu.memory_space<vmem>>, vector<256x64xbf16>
    tpu.vector_store %arg9[%c0_44, %c320], %36 {strides = array<i32>} : memref<256x576xbf16, #tpu.memory_space<vmem>>, vector<256x64xbf16>,
    %c2_45 = arith.constant 2 : index
    %c0_46 = arith.constant 0 : index
    %c0_47 = arith.constant 0 : index
    %38 = vector.load %arg8[%c2_45, %c0_46, %c0_47] : memref<18x18x64xbf16, #tpu.memory_space<vmem>>, vector<16x16x64xbf16>
    %39 = vector.shape_cast %38 : vector<16x16x64xbf16> to vector<256x64xbf16>
    %c0_48 = arith.constant 0 : index
    %c384 = arith.constant 384 : index
    %40 = vector.load %arg9[%c0_48, %c384] : memref<256x576xbf16, #tpu.memory_space<vmem>>, vector<256x64xbf16>
    tpu.vector_store %arg9[%c0_48, %c384], %39 {strides = array<i32>} : memref<256x576xbf16, #tpu.memory_space<vmem>>, vector<256x64xbf16>,
    %c2_49 = arith.constant 2 : index
    %c1_50 = arith.constant 1 : index
    %c0_51 = arith.constant 0 : index
    %41 = vector.load %arg8[%c2_49, %c1_50, %c0_51] : memref<18x18x64xbf16, #tpu.memory_space<vmem>>, vector<16x16x64xbf16>
    %42 = vector.shape_cast %41 : vector<16x16x64xbf16> to vector<256x64xbf16>
    %c0_52 = arith.constant 0 : index
    %c448 = arith.constant 448 : index
    %43 = vector.load %arg9[%c0_52, %c448] : memref<256x576xbf16, #tpu.memory_space<vmem>>, vector<256x64xbf16>
    tpu.vector_store %arg9[%c0_52, %c448], %42 {strides = array<i32>} : memref<256x576xbf16, #tpu.memory_space<vmem>>, vector<256x64xbf16>,
    %c2_53 = arith.constant 2 : index
    %c2_54 = arith.constant 2 : index
    %c0_55 = arith.constant 0 : index
    %44 = vector.load %arg8[%c2_53, %c2_54, %c0_55] : memref<18x18x64xbf16, #tpu.memory_space<vmem>>, vector<16x16x64xbf16>
    %45 = vector.shape_cast %44 : vector<16x16x64xbf16> to vector<256x64xbf16>
    %c0_56 = arith.constant 0 : index
    %c512 = arith.constant 512 : index
    %46 = vector.load %arg9[%c0_56, %c512] : memref<256x576xbf16, #tpu.memory_space<vmem>>, vector<256x64xbf16>
    tpu.vector_store %arg9[%c0_56, %c512], %45 {strides = array<i32>} : memref<256x576xbf16, #tpu.memory_space<vmem>>, vector<256x64xbf16>,
    %c0_57 = arith.constant 0 : index
    %c0_58 = arith.constant 0 : index
    %47 = vector.load %arg9[%c0_57, %c0_58] : memref<256x576xbf16, #tpu.memory_space<vmem>>, vector<256x576xbf16>
    %c0_59 = arith.constant 0 : index
    %c0_60 = arith.constant 0 : index
    %48 = vector.load %arg4[%c0_59, %c0_60] : memref<576x8xbf16, #tpu.memory_space<vmem>>, vector<576x8xbf16>
    %cst_61 = arith.constant dense<0.000000e+00> : vector<256x8xf32>
    %49 = tpu.matmul %47, %48, %cst_61 {dimension_numbers = #tpu.dot_dimension_numbers<[1], [0], [0], [1], [0, 0, 1, 1], [], []>} : vector<256x576xbf16>, vector<576x8xbf16>, vector<256x8xf32> -> vector<256x8xf32>
    %50 = vector.shape_cast %49 : vector<256x8xf32> to vector<1x256x8xf32>
    %c0_62 = arith.constant 0 : index
    %c0_63 = arith.constant 0 : index
    %c0_64 = arith.constant 0 : index
    %51 = vector.load %arg5[%c0_62, %c0_63, %c0_64] : memref<1x256x8xf32, #tpu.memory_space<vmem>>, vector<1x256x8xf32>
    tpu.vector_store %arg5[%c0_62, %c0_63, %c0_64], %50 {strides = array<i32>} : memref<1x256x8xf32, #tpu.memory_space<vmem>>, vector<1x256x8xf32>,
    %cst_65 = arith.constant dense<0.000000e+00> : vector<8xf32>
    %52 = vector.multi_reduction <add>, %49, %cst_65 [0] : vector<256x8xf32> to vector<8xf32>
    %53 = vector.shape_cast %52 : vector<8xf32> to vector<1x8xf32>
    %54 = vector.shape_cast %53 : vector<1x8xf32> to vector<1x1x8xf32>
    %c0_66 = arith.constant 0 : index
    %c0_67 = arith.constant 0 : index
    %c0_68 = arith.constant 0 : index
    %55 = vector.load %arg6[%c0_66, %c0_67, %c0_68] : memref<1x1x8xf32, #tpu.memory_space<vmem>>, vector<1x1x8xf32>
    tpu.vector_store %arg6[%c0_66, %c0_67, %c0_68], %54 {strides = array<i32>} : memref<1x1x8xf32, #tpu.memory_space<vmem>>, vector<1x1x8xf32>,
    %56 = arith.mulf %49, %49 : vector<256x8xf32>
    %cst_69 = arith.constant dense<0.000000e+00> : vector<8xf32>
    %57 = vector.multi_reduction <add>, %56, %cst_69 [0] : vector<256x8xf32> to vector<8xf32>
    %58 = vector.shape_cast %57 : vector<8xf32> to vector<1x8xf32>
    %59 = vector.shape_cast %58 : vector<1x8xf32> to vector<1x1x8xf32>
    %c0_70 = arith.constant 0 : index
    %c0_71 = arith.constant 0 : index
    %c0_72 = arith.constant 0 : index
    %60 = vector.load %arg7[%c0_70, %c0_71, %c0_72] : memref<1x1x8xf32, #tpu.memory_space<vmem>>, vector<1x1x8xf32>
    tpu.vector_store %arg7[%c0_70, %c0_71, %c0_72], %59 {strides = array<i32>} : memref<1x1x8xf32, #tpu.memory_space<vmem>>, vector<1x1x8xf32>,
    return
  }
  func.func @transform_0(%arg0: i32) -> (i32, i32, i32) {
    %c0_i32 = arith.constant 0 : i32
    %c0_i32_0 = arith.constant 0 : i32
    %c0_i32_1 = arith.constant 0 : i32
    return %arg0, %c0_i32, %c0_i32_0 : i32, i32, i32
  }
  func.func @transform_1(%arg0: i32) -> (i32, i32) {
    %c0_i32 = arith.constant 0 : i32
    %c0_i32_0 = arith.constant 0 : i32
    %c0_i32_1 = arith.constant 0 : i32
    return %c0_i32, %c0_i32_0 : i32, i32
  }
  func.func @transform_2(%arg0: i32) -> (i32, i32) {
    %c0_i32 = arith.constant 0 : i32
    %c0_i32_0 = arith.constant 0 : i32
    %c0_i32_1 = arith.constant 0 : i32
    return %c0_i32, %c0_i32_0 : i32, i32
  }
  func.func @transform_3(%arg0: i32) -> (i32, i32) {
    %c0_i32 = arith.constant 0 : i32
    %c0_i32_0 = arith.constant 0 : i32
    %c0_i32_1 = arith.constant 0 : i32
    return %c0_i32, %c0_i32_0 : i32, i32
  }
  func.func @transform_4(%arg0: i32) -> (i32, i32, i32) {
    %c0_i32 = arith.constant 0 : i32
    %c0_i32_0 = arith.constant 0 : i32
    %c0_i32_1 = arith.constant 0 : i32
    return %arg0, %c0_i32, %c0_i32_0 : i32, i32, i32
  }
  func.func @transform_5(%arg0: i32) -> (i32, i32, i32) {
    %c0_i32 = arith.constant 0 : i32
    %c0_i32_0 = arith.constant 0 : i32
    %c0_i32_1 = arith.constant 0 : i32
    return %arg0, %c0_i32, %c0_i32_0 : i32, i32, i32
  }
  func.func @transform_6(%arg0: i32) -> (i32, i32, i32) {
    %c0_i32 = arith.constant 0 : i32
    %c0_i32_0 = arith.constant 0 : i32
    %c0_i32_1 = arith.constant 0 : i32
    return %arg0, %c0_i32, %c0_i32_0 : i32, i32, i32
  }
}

module attributes {stable_mosaic.version = 11 : i64} {
  func.func @kernel(%arg0: i32, %arg1: memref<1x256x8xf32, #tpu.memory_space<vmem>>, %arg2: memref<1x8xf32, #tpu.memory_space<vmem>>, %arg3: memref<1x8xf32, #tpu.memory_space<vmem>>, %arg4: memref<1x256x8xf32, #tpu.memory_space<vmem>>) attributes {dimension_semantics = [#tpu.dimension_semantics<parallel>], iteration_bounds = array<i64: 2>, scalar_prefetch = 0 : i64, scratch_operands = 0 : i64, tpu.core_type = #tpu.core_type<tc>, window_params = [{transform_indices = @transform_0, window_bounds = array<i64: 1, 256, 8>}, {pipeline_mode = #tpu.pipeline_mode<synchronous>, transform_indices = @transform_1, window_bounds = array<i64: 1, 8>}, {pipeline_mode = #tpu.pipeline_mode<synchronous>, transform_indices = @transform_2, window_bounds = array<i64: 1, 8>}, {transform_indices = @transform_3, window_bounds = array<i64: 1, 256, 8>}]} {
    %c0 = arith.constant 0 : index
    %c0_0 = arith.constant 0 : index
    %0 = vector.load %arg2[%c0, %c0_0] : memref<1x8xf32, #tpu.memory_space<vmem>>, vector<1x8xf32>
    %1 = vector.shape_cast %0 : vector<1x8xf32> to vector<1x1x8xf32>
    %c0_1 = arith.constant 0 : index
    %c0_2 = arith.constant 0 : index
    %2 = vector.load %arg3[%c0_1, %c0_2] : memref<1x8xf32, #tpu.memory_space<vmem>>, vector<1x8xf32>
    %3 = vector.shape_cast %2 : vector<1x8xf32> to vector<1x1x8xf32>
    %c0_3 = arith.constant 0 : index
    %c0_4 = arith.constant 0 : index
    %c0_5 = arith.constant 0 : index
    %4 = vector.load %arg1[%c0_3, %c0_4, %c0_5] : memref<1x256x8xf32, #tpu.memory_space<vmem>>, vector<1x256x8xf32>
    %5 = vector.broadcast %1 : vector<1x1x8xf32> to vector<1x256x8xf32>
    %6 = arith.mulf %4, %5 : vector<1x256x8xf32>
    %7 = vector.broadcast %3 : vector<1x1x8xf32> to vector<1x256x8xf32>
    %8 = arith.addf %6, %7 : vector<1x256x8xf32>
    %cst = arith.constant 0.000000e+00 : f32
    %9 = vector.broadcast %cst : f32 to vector<1x256x8xf32>
    %10 = arith.maximumf %8, %9 : vector<1x256x8xf32>
    %c0_6 = arith.constant 0 : index
    %c0_7 = arith.constant 0 : index
    %c0_8 = arith.constant 0 : index
    %11 = vector.load %arg4[%c0_6, %c0_7, %c0_8] : memref<1x256x8xf32, #tpu.memory_space<vmem>>, vector<1x256x8xf32>
    tpu.vector_store %arg4[%c0_6, %c0_7, %c0_8], %10 {strides = array<i32>} : memref<1x256x8xf32, #tpu.memory_space<vmem>>, vector<1x256x8xf32>,
    return
  }
  func.func @transform_0(%arg0: i32) -> (i32, i32, i32) {
    %c0_i32 = arith.constant 0 : i32
    %c0_i32_0 = arith.constant 0 : i32
    %c0_i32_1 = arith.constant 0 : i32
    return %arg0, %c0_i32, %c0_i32_0 : i32, i32, i32
  }
  func.func @transform_1(%arg0: i32) -> (i32, i32) {
    %c0_i32 = arith.constant 0 : i32
    %c0_i32_0 = arith.constant 0 : i32
    %c0_i32_1 = arith.constant 0 : i32
    return %c0_i32, %c0_i32_0 : i32, i32
  }
  func.func @transform_2(%arg0: i32) -> (i32, i32) {
    %c0_i32 = arith.constant 0 : i32
    %c0_i32_0 = arith.constant 0 : i32
    %c0_i32_1 = arith.constant 0 : i32
    return %c0_i32, %c0_i32_0 : i32, i32
  }
  func.func @transform_3(%arg0: i32) -> (i32, i32, i32) {
    %c0_i32 = arith.constant 0 : i32
    %c0_i32_0 = arith.constant 0 : i32
    %c0_i32_1 = arith.constant 0 : i32
    return %arg0, %c0_i32, %c0_i32_0 : i32, i32, i32
  }
}

</mosaic_0001>

<bundles_post_ra>
// kernel: triple_inter_action_forward.3
= control target key start
LH: loop header
LB: loop body
LE: loop exit
PB: predicated region body
PF: predicated region fallthrough
CT: control target
= control target key end

     0   :  { %s921_s15 = smov 0   ;;  %s1060_s0 = inlined_call_operand.vmem [shape: bf16[512,128], index: 0, kind: input, shape index: {}]   ;;  %s1061_s1 = inlined_call_operand.vmem [shape: bf16[128,64], index: 1, kind: input, shape index: {}]   ;;  %s1062_s2 = inlined_call_operand.vmem [shape: bf16[512,64], index: 2, kind: output, shape index: {0}]   ;;  %s1063_s3 = inlined_call_operand.vmem [shape: f32[4,1,64], index: 3, kind: output, shape index: {1}]   ;;  %s1064_s4 = inlined_call_operand.vmem [shape: f32[4,1,64], index: 4, kind: output, shape index: {2}]  }
   0x1 LB: > { %s927_s16 = sadd.s32 4294967295, %s894_s15   ;;  %p745_p0 = scmp.ge.s32.totalorder %s894_s15, 1  ;;  %s894_s15 = sphi %s921_s15, %s15_s15  }
   0x2   : > { %p168_p1 = scmp.lt.s32.totalorder %s894_s15, 5 }
   0x4   : > { %p169_p2 = pnand %p745_p0, %p168_p1 }
   0x5   : > { %v872_v0 = vld [vmem:[%s1061_s1] sm:$0xff] (!%p169_p2)   ;;  %s746_s19 = sshll.u32 (!%p169_p2), %s927_s16, 4  ;;  %v873_v1 = vld [vmem:[%s1061_s1 + $0x8] sm:$0xff] (!%p169_p2)   ;;  %v874_v2 = vld [vmem:[%s1061_s1 + $0x10] sm:$0xff] (!%p169_p2)   ;;  %vm508_vm0 = vcmask (!%p169_p2), 519168   ;;  %vm541_vm1 = vcmask (!%p169_p2), 523264  }
   0x6   : > { %172 = sbr.rel (%p169_p2) target bundleno = 305 (0x131), region = 28  ;;  %p201_p3 = scmp.lt.s32.totalorder (!%p169_p2), %s746_s19, 63  ;;  %816 = vmatprep.subr.bf16.mxu0 (!%p169_p2), %v872_v0  ;;  %848 = vmatprep.subr.bf16.mxu1 (!%p169_p2), %v872_v0  ;;  %v875_v3 = vld [vmem:[%s1061_s1 + $0x18] sm:$0xff] (!%p169_p2)   ;;  %v876_v5 = vld [vmem:[%s1061_s1 + $0x20] sm:$0xff] (!%p169_p2)   ;;  %v877_v7 = vld [vmem:[%s1061_s1 + $0x28] sm:$0xff] (!%p169_p2)   ;;  %vm579_vm2 = vcmask (!%p169_p2), 516096  }
   0x7   : > { %817 = vmatpush3.bf16.msra.mxu0 (!%p169_p2), %v872_v0  ;;  %856 = vmatpush3.bf16.msra.mxu1 (!%p169_p2), %v872_v0  ;;  %v878_v8 = vld [vmem:[%s1061_s1 + $0x30] sm:$0xff] (!%p169_p2)   ;;  %v879_v9 = vld [vmem:[%s1061_s1 + $0x38] sm:$0xff] (!%p169_p2)   ;;  %p212_p4 = scmp.lt.s32.totalorder (!%p169_p2), %s927_s16, 3 }
   0x8   : > { %818 = vmatprep.subr.bf16.mxu0 (!%p169_p2), %v873_v1  ;;  %849 = vmatprep.subr.bf16.mxu1 (!%p169_p2), %v873_v1 }
   0xb   : > { %819 = vmatpush3.bf16.msra.mxu0 (!%p169_p2), %v873_v1  ;;  %857 = vmatpush3.bf16.msra.mxu1 (!%p169_p2), %v873_v1 }
   0xc   : > { %820 = vmatprep.subr.bf16.mxu0 (!%p169_p2), %v874_v2  ;;  %850 = vmatprep.subr.bf16.mxu1 (!%p169_p2), %v874_v2 }
   0xd   : > { %s1066_s19 = smov (!%p201_p3, %s746_s19), 63  ;;  %s1068_s16 = smov (!%p212_p4, %s927_s16), 3 }
   0xe   : > { %s747_s24 = sshll.u32 %s1066_s19, 2  ;;  %s214_s19 = scalar_lea.vmem %s1063_s3, %s1068_s16 }
   0xf   : > { %s949_s27 = scalar_lea.vmem %s1060_s0, %s747_s24  ;;  %821 = vmatpush3.bf16.msra.mxu0 %v874_v2  ;;  %858 = vmatpush3.bf16.msra.mxu1 %v874_v2  ;;  %s979_s14 = scalar_lea.vmem %s1062_s2, %s747_s24 }
  0x10   : > { %v880_v4 = vld [vmem:[%s949_s27] sm:$0xff]   ;;  %822 = vmatprep.subr.bf16.mxu0 %v875_v3  ;;  %851 = vmatprep.subr.bf16.mxu1 %v875_v3  ;;  %v881_v10 = vld [vmem:[%s949_s27 + $0x8] sm:$0xff]   ;;  %v882_v12 = vld [vmem:[%s949_s27 + $0x10] sm:$0xff]   ;;  %s217_s22 = scalar_lea.vmem %s1064_s4, %s1068_s16 }
  0x11   : > { %832 = vmatprep.mubr.bf16.mxu0 %v880_v4  ;;  %v884_v6 = vld [vmem:[%s949_s27 + $0x20] sm:$0xff]   ;;  %v885_v11 = vld [vmem:[%s949_s27 + $0x28] sm:$0xff]   ;;  %v886_v13 = vld [vmem:[%s949_s27 + $0x30] sm:$0xff]  }
  0x12   : > { %840 = vmatprep.mubr.bf16.mxu1 %v884_v6  ;;  %v883_v14 = vld [vmem:[%s949_s27 + $0x18] sm:$0xff]  }
  0x13   : > { %823 = vmatpush3.bf16.msra.mxu0 %v875_v3  ;;  %859 = vmatpush3.bf16.msra.mxu1 %v875_v3  ;;  %v887_v15 = vld [vmem:[%s949_s27 + $0x38] sm:$0xff]  }
  0x14   : > { %824 = vmatprep.subr.bf16.mxu0 %v876_v5  ;;  %852 = vmatprep.subr.bf16.mxu1 %v876_v5 }
  0x17   : > { %825 = vmatpush3.bf16.msra.mxu0 %v876_v5  ;;  %860 = vmatpush3.bf16.msra.mxu1 %v876_v5 }
  0x18   : > { %826 = vmatprep.subr.bf16.mxu0 %v877_v7  ;;  %853 = vmatprep.subr.bf16.mxu1 %v877_v7 }
  0x1b   : > { %827 = vmatpush3.bf16.msra.mxu0 %v877_v7  ;;  %861 = vmatpush3.bf16.msra.mxu1 %v877_v7 }
  0x1c   : > { %828 = vmatprep.subr.bf16.mxu0 %v878_v8  ;;  %854 = vmatprep.subr.bf16.mxu1 %v878_v8 }
  0x1f   : > { %829 = vmatpush3.bf16.msra.mxu0 %v878_v8  ;;  %862 = vmatpush3.bf16.msra.mxu1 %v878_v8 }
  0x20   : > { %830 = vmatprep.subr.bf16.mxu0 %v879_v9  ;;  %855 = vmatprep.subr.bf16.mxu1 %v879_v9 }
  0x23   : > { %831 = vmatpush3.bf16.msra.mxu0 %v879_v9  ;;  %863 = vmatpush3.bf16.msra.mxu1 %v879_v9 }
  0x26   : > { %833 = vmatmul.mubr.bf16.vlgmr.msra.gmra.mrb[0].mxu0 %v881_v10  ;;  %841 = vmatmul.mubr.bf16.vlgmr.msra.gmra.mrb[0].mxu1 %v885_v11 }
  0x27   : > { %836 = vmatprep.mubr.bf16.mxu0 %v882_v12  ;;  %844 = vmatprep.mubr.bf16.mxu1 %v886_v13 }
  0x2e   : > { %837 = vmatmul.mubr.bf16.gmra.mrb[4].mxu0 %v883_v14  ;;  %845 = vmatmul.mubr.bf16.gmra.mrb[4].mxu1 %v887_v15 }
  0xf9   : > { %v834_v16 = vpop.f32.mrb[0].mxu0  ;;  %v842_v17 = vpop.f32.mrb[0].mxu1 }
  0xfa   : > { %v786_v18 = vpack.c.bf16 %v834_v16, %v834_v16  ;;  %v381_v19 = vpop.f32.mrb[1].mxu0  ;;  %v794_v20 = vpack.c.bf16 %v842_v17, %v842_v17  ;;  %v413_v21 = vpop.f32.mrb[1].mxu1 }
  0xfb   : > { %v784_v22 = vpack.c.bf16 %v381_v19, %v381_v19  ;;  %v835_v23 = vpop.f32.mrb[2].mxu0  ;;  %v792_v24 = vpack.c.bf16 %v413_v21, %v413_v21  ;;  %v843_v25 = vpop.f32.mrb[2].mxu1 }
  0xfc   : > { %511 = vst.msk [vmem:[%s979_s14 + $0x8] sm:$0xf] %vm508_vm0, %v786_v18  ;;  %v445_v26 = vpack.c.bf16 %v835_v23, %v834_v16  ;;  %v787_v27 = vpack.c.bf16 %v835_v23, %v835_v23  ;;  %v384_v28 = vpop.f32.mrb[3].mxu0  ;;  %519 = vst.msk [vmem:[%s979_s14 + $0x28] sm:$0xf] %vm508_vm0, %v794_v20  ;;  %v985_v29 = vpack.c.bf16 %v843_v25, %v842_v17  ;;  %v416_v31 = vpop.f32.mrb[3].mxu1 }
  0xfd   : > { %v795_v30 = vpack.c.bf16 %v843_v25, %v843_v25  ;;  %509 = vst.msk [vmem:[%s979_s14] sm:$0xf] %vm508_vm0, %v784_v22  ;;  %v444_v32 = vpack.c.bf16 %v384_v28, %v381_v19  ;;  %v785_v33 = vpack.c.bf16 %v384_v28, %v384_v28  ;;  %517 = vst.msk [vmem:[%s979_s14 + $0x20] sm:$0xf] %vm508_vm0, %v792_v24 }
  0xfe   : > { %v448_v34 = vpack.c.bf16 %v416_v31, %v413_v21  ;;  %v793_v35 = vpack.c.bf16 %v416_v31, %v416_v31  ;;  %512 = vst.msk [vmem:[%s979_s14 + $0xc] sm:$0xf] %vm508_vm0, %v787_v27  ;;  %v527_v36 = vunpack.c.l.bf16 %v445_v26  ;;  %v528_v37 = vunpack.c.h.bf16 %v445_v26 }
  0xff   : > { %520 = vst.msk [vmem:[%s979_s14 + $0x2c] sm:$0xf] %vm508_vm0, %v795_v30  ;;  %510 = vst.msk [vmem:[%s979_s14 + $0x4] sm:$0xf] %vm508_vm0, %v785_v33  ;;  %v525_v38 = vunpack.c.l.bf16 %v444_v32  ;;  %v526_v39 = vunpack.c.h.bf16 %v444_v32  ;;  %v535_v32 = vunpack.c.l.bf16 %v985_v29 }
 0x100   : > { %518 = vst.msk [vmem:[%s979_s14 + $0x24] sm:$0xf] %vm508_vm0, %v793_v35  ;;  %v583_v40 = vmul.f32 %v527_v36, %v527_v36  ;;  %v545_v47 = vsel %vm541_vm1, %v527_v36, 0.0  ;;  %v547_v52 = vsel %vm541_vm1, %v528_v37, 0.0  ;;  %v584_v0 = vmul.f32 %v528_v37, %v528_v37 }
 0x101   : > { %v542_v41 = vsel %vm541_vm1, %v525_v38, 0.0  ;;  %v543_v42 = vsel %vm541_vm1, %v526_v39, 0.0  ;;  %v581_v43 = vmul.f32 %v525_v38, %v525_v38  ;;  %v582_v44 = vmul.f32 %v526_v39, %v526_v39  ;;  %v838_v45 = vpop.f32.mrb[4].mxu0  ;;  %v846_v46 = vpop.f32.mrb[4].mxu1 }
 0x102   : > { %v544_v48 = vadd.f32 %v543_v42, %v542_v41  ;;  %v790_v49 = vpack.c.bf16 %v838_v45, %v838_v45  ;;  %v397_v50 = vpop.f32.mrb[5].mxu0  ;;  %v429_v51 = vpop.f32.mrb[5].mxu1  ;;  %v600_v1 = vsel %vm541_vm1, %v583_v40, 0.0  ;;  %v602_v10 = vsel %vm541_vm1, %v584_v0, 0.0 }
 0x103   : > { %v597_v53 = vsel %vm541_vm1, %v581_v43, 0.0  ;;  %v598_v54 = vsel %vm541_vm1, %v582_v44, 0.0  ;;  %v788_v55 = vpack.c.bf16 %v397_v50, %v397_v50  ;;  %v839_v56 = vpop.f32.mrb[6].mxu0  ;;  %v847_v57 = vpop.f32.mrb[6].mxu1  ;;  %v533_v16 = vunpack.c.l.bf16 %v448_v34 }
 0x104   : > { %v546_v58 = vadd.f32 %v545_v47, %v544_v48  ;;  %v599_v59 = vadd.f32 %v598_v54, %v597_v53  ;;  %515 = vst.msk [vmem:[%s979_s14 + $0x18] sm:$0xf] %vm508_vm0, %v790_v49  ;;  %v447_v60 = vpack.c.bf16 %v839_v56, %v838_v45  ;;  %v791_v61 = vpack.c.bf16 %v839_v56, %v839_v56  ;;  %v400_v62 = vpop.f32.mrb[7].mxu0  ;;  %v432_v63 = vpop.f32.mrb[7].mxu1 }
 0x105   : > { %513 = vst.msk [vmem:[%s979_s14 + $0x10] sm:$0xf] %vm508_vm0, %v788_v55  ;;  %v446_v2 = vpack.c.bf16 %v400_v62, %v397_v50  ;;  %v789_v3 = vpack.c.bf16 %v400_v62, %v400_v62  ;;  %v534_v20 = vunpack.c.h.bf16 %v448_v34  ;;  %v798_v26 = vpack.c.bf16 %v846_v46, %v846_v46 }
 0x106   : > { %v601_v4 = vadd.f32 %v600_v1, %v599_v59  ;;  %516 = vst.msk [vmem:[%s979_s14 + $0x1c] sm:$0xf] %vm508_vm0, %v791_v61  ;;  %v548_v5 = vadd.f32 %v547_v52, %v546_v58  ;;  %v531_v6 = vunpack.c.l.bf16 %v447_v60  ;;  %v532_v9 = vunpack.c.h.bf16 %v447_v60 }
 0x107   : > { %514 = vst.msk [vmem:[%s979_s14 + $0x14] sm:$0xf] %vm508_vm0, %v789_v3  ;;  %v529_v7 = vunpack.c.l.bf16 %v446_v2  ;;  %v530_v8 = vunpack.c.h.bf16 %v446_v2  ;;  %v796_v27 = vpack.c.bf16 %v429_v51, %v429_v51  ;;  %v451_v28 = vpack.c.bf16 %v847_v57, %v846_v46  ;;  %523 = vst.msk [vmem:[%s979_s14 + $0x38] sm:$0xf] %vm508_vm0, %v798_v26 }
 0x108   : > { %v603_v15 = vadd.f32 %v602_v10, %v601_v4  ;;  %v587_v17 = vmul.f32 %v531_v6, %v531_v6  ;;  %v553_v21 = vsel %vm541_vm1, %v531_v6, 0.0  ;;  %v588_v22 = vmul.f32 %v532_v9, %v532_v9 }
 0x109   : > { %v549_v11 = vsel %vm541_vm1, %v529_v7, 0.0  ;;  %v585_v12 = vmul.f32 %v529_v7, %v529_v7  ;;  %v586_v13 = vmul.f32 %v530_v8, %v530_v8  ;;  %v551_v18 = vsel %vm541_vm1, %v530_v8, 0.0  ;;  %521 = vst.msk [vmem:[%s979_s14 + $0x30] sm:$0xf] %vm508_vm0, %v796_v27 }
 0x10a   : > { %v550_v14 = vadd.f32 %v549_v11, %v548_v5  ;;  %v799_v33 = vpack.c.bf16 %v847_v57, %v847_v57  ;;  %v555_v34 = vsel %vm541_vm1, %v532_v9, 0.0  ;;  %v608_v35 = vsel %vm541_vm1, %v587_v17, 0.0 }
 0x10b   : > { %v604_v19 = vsel %vm541_vm1, %v585_v12, 0.0  ;;  %v606_v25 = vsel %vm541_vm1, %v586_v13, 0.0  ;;  %v589_v36 = vmul.f32 %v533_v16, %v533_v16  ;;  %v450_v37 = vpack.c.bf16 %v432_v63, %v429_v51 }
 0x10c   : > { %v552_v23 = vadd.f32 %v551_v18, %v550_v14  ;;  %v605_v24 = vadd.f32 %v604_v19, %v603_v15  ;;  %524 = vst.msk [vmem:[%s979_s14 + $0x3c] sm:$0xf] %vm508_vm0, %v799_v33  ;;  %v797_v40 = vpack.c.bf16 %v432_v63, %v432_v63  ;;  %v610_v41 = vsel %vm541_vm1, %v588_v22, 0.0 }
 0x10d   : > { %v536_v42 = vunpack.c.h.bf16 %v985_v29  ;;  %v557_v43 = vsel %vm541_vm1, %v533_v16, 0.0  ;;  %v590_v44 = vmul.f32 %v534_v20, %v534_v20  ;;  %v591_v47 = vmul.f32 %v535_v32, %v535_v32 }
 0x10e   : > { %v554_v30 = vadd.f32 %v553_v21, %v552_v23  ;;  %v607_v31 = vadd.f32 %v606_v25, %v605_v24  ;;  %522 = vst.msk [vmem:[%s979_s14 + $0x34] sm:$0xf] %vm508_vm0, %v797_v40  ;;  %v559_v48 = vsel %vm541_vm1, %v534_v20, 0.0  ;;  %v612_v49 = vsel %vm541_vm1, %v589_v36, 0.0 }
 0x10f   : > { %v537_v50 = vunpack.c.l.bf16 %v450_v37  ;;  %v561_v53 = vsel %vm541_vm1, %v535_v32, 0.0  ;;  %v592_v54 = vmul.f32 %v536_v42, %v536_v42  ;;  %v614_v29 = vsel %vm541_vm1, %v590_v44, 0.0 }
 0x110   : > { %v609_v38 = vadd.f32 %v608_v35, %v607_v31  ;;  %v556_v39 = vadd.f32 %v555_v34, %v554_v30  ;;  %v538_v55 = vunpack.c.h.bf16 %v450_v37  ;;  %v563_v58 = vsel %vm541_vm1, %v536_v42, 0.0 }
 0x111   : > { %v616_v59 = vsel %vm541_vm1, %v591_v47, 0.0  ;;  %v539_v60 = vunpack.c.l.bf16 %v451_v28  ;;  %v593_v61 = vmul.f32 %v537_v50, %v537_v50  ;;  %v618_v0 = vsel %vm541_vm1, %v592_v54, 0.0 }
 0x112   : > { %v558_v45 = vadd.f32 %v557_v43, %v556_v39  ;;  %v611_v46 = vadd.f32 %v610_v41, %v609_v38  ;;  %v540_v1 = vunpack.c.h.bf16 %v451_v28  ;;  %v565_v2 = vsel %vm541_vm1, %v537_v50, 0.0 }
 0x113   : > { %v594_v3 = vmul.f32 %v538_v55, %v538_v55  ;;  %v595_v6 = vmul.f32 %v539_v60, %v539_v60  ;;  %v567_v7 = vsel %vm541_vm1, %v538_v55, 0.0  ;;  %v620_v8 = vsel %vm541_vm1, %v593_v61, 0.0 }
 0x114   : > { %v560_v51 = vadd.f32 %v559_v48, %v558_v45  ;;  %v613_v52 = vadd.f32 %v612_v49, %v611_v46  ;;  %v569_v11 = vsel %vm541_vm1, %v539_v60, 0.0  ;;  %v596_v12 = vmul.f32 %v540_v1, %v540_v1 }
 0x115   : > { %v622_v13 = vsel %vm541_vm1, %v594_v3, 0.0  ;;  %v571_v16 = vsel %vm541_vm1, %v540_v1, 0.0  ;;  %v624_v17 = vsel %vm541_vm1, %v595_v6, 0.0 }
 0x116   : > { %v562_v56 = vadd.f32 %v561_v53, %v560_v51  ;;  %v615_v57 = vadd.f32 %v614_v29, %v613_v52  ;;  %v626_v20 = vsel %vm541_vm1, %v596_v12, 0.0 }
 0x118   : > { %v617_v62 = vadd.f32 %v616_v59, %v615_v57  ;;  %v564_v63 = vadd.f32 %v563_v58, %v562_v56 }
 0x11a   : > { %v566_v4 = vadd.f32 %v565_v2, %v564_v63  ;;  %v619_v5 = vadd.f32 %v618_v0, %v617_v62 }
 0x11c   : > { %v568_v9 = vadd.f32 %v567_v7, %v566_v4  ;;  %v621_v10 = vadd.f32 %v620_v8, %v619_v5 }
 0x11e   : > { %v570_v14 = vadd.f32 %v569_v11, %v568_v9  ;;  %v623_v15 = vadd.f32 %v622_v13, %v621_v10 }
 0x120   : > { %v572_v18 = vadd.f32 %v571_v16, %v570_v14  ;;  %v625_v19 = vadd.f32 %v624_v17, %v623_v15 }
 0x122   : > { %v573_v21 = vrot.slane %v572_v18, 4  ;;  %v627_v22 = vadd.f32 %v626_v20, %v625_v19 }
 0x124   : > { %v574_v23 = vadd.f32 %v573_v21, %v572_v18  ;;  %v628_v24 = vrot.slane %v627_v22, 4 }
 0x126   : > { %v575_v25 = vrot.slane %v574_v23, 2  ;;  %v629_v26 = vadd.f32 %v628_v24, %v627_v22 }
 0x128   : > { %v576_v27 = vadd.f32 %v575_v25, %v574_v23  ;;  %v630_v28 = vrot.slane %v629_v26, 2 }
 0x12a   : > { %v577_v30 = vrot.slane %v576_v27, 1  ;;  %v631_v31 = vadd.f32 %v630_v28, %v629_v26 }
 0x12c   : > { %v578_v32 = vadd.f32 %v577_v30, %v576_v27  ;;  %v632_v33 = vrot.slane %v631_v31, 1 }
 0x12e   : > { %580 = vst.msk [vmem:[%s214_s19] sm:$0x1] %vm579_vm2, %v578_v32  ;;  %v633_v34 = vadd.f32 %v632_v33, %v631_v31 }
 0x130   : > { %634 = vst.msk [vmem:[%s217_s22] sm:$0x1] %vm579_vm2, %v633_v34 }
 0x131 PF: > { %s15_s15 = sadd.s32 1, %s894_s15  }
 0x132   : > { %p12_p5 = scmp.ge.s32.totalorder %s15_s15, 6  }
 0x134   :  { %14 = sbr.rel (!%p12_p5) target bundleno = 1 (0x1), region = 82 }

// kernel: triple_inter_action_forward.5
= control target key start
LH: loop header
LB: loop body
LE: loop exit
PB: predicated region body
PF: predicated region fallthrough
CT: control target
= control target key end

     0   :  { %s452_s12 = smov 0   ;;  %s643_s0 = inlined_call_operand.vmem [shape: f32[2,256,8], index: 0, kind: input, shape index: {}]   ;;  %s644_s1 = inlined_call_operand.vmem [shape: f32[1,8], index: 1, kind: input, shape index: {}]   ;;  %s645_s2 = inlined_call_operand.vmem [shape: f32[1,8], index: 2, kind: input, shape index: {}]   ;;  %s646_s3 = inlined_call_operand.vmem [shape: f32[2,256,8], index: 3, kind: output, shape index: {}]  }
   0x1 LB: > { %s401_s13 = sadd.s32 4294967295, %s430_s12   ;;  %p405_p0 = scmp.ge.s32.totalorder %s430_s12, 1  ;;  %s430_s12 = sphi %s452_s12, %s13_s12  }
   0x2   : > { %p137_p1 = scmp.lt.s32.totalorder %s430_s12, 3 }
   0x4   : > { %p138_p2 = pnand %p405_p0, %p137_p1 }
   0x5   : > { %p161_p3 = scmp.lt.s32.totalorder (!%p138_p2), %s401_s13, 1  ;;  %v463_v0 = vld [vmem:[%s644_s1] ss:$0 sm:$0xff] (!%p138_p2)  ;;  %vm313_vm0 = vcmask (!%p138_p2), 64512  }
   0x6   : > { %141 = sbr.rel (%p138_p2) target bundleno = 46 (0x2e), region = 32  ;;  %v473_v1 = vld [vmem:[%s645_s2] ss:$0 sm:$0xff] (!%p138_p2) }
   0xd   : > { %s648_s13 = smov (!%p161_p3, %s401_s13), 1 }
   0xe   : > { %s414_s14 = sshll.u32 %s648_s13, 8 }
   0xf   : > { %s468_s19 = scalar_lea.vmem %s643_s0, %s414_s14  ;;  %s496_s24 = scalar_lea.vmem %s646_s3, %s414_s14 }
  0x10   : > { %v173_v2 = vld [vmem:[%s468_s19] sm:$0xff]  ;;  %v174_v3 = vld [vmem:[%s468_s19 + $0x8] sm:$0xff]  ;;  %v175_v4 = vld [vmem:[%s468_s19 + $0x10] sm:$0xff] }
  0x11   : > { %v211_v5 = vmul.f32 %v463_v0, %v173_v2  ;;  %v212_v6 = vmul.f32 %v463_v0, %v174_v3  ;;  %v213_v7 = vmul.f32 %v463_v0, %v175_v4  ;;  %v176_v8 = vld [vmem:[%s468_s19 + $0x18] sm:$0xff]  ;;  %v177_v9 = vld [vmem:[%s468_s19 + $0x20] sm:$0xff]  ;;  %v178_v10 = vld [vmem:[%s468_s19 + $0x28] sm:$0xff] }
  0x12   : > { %v214_v11 = vmul.f32 %v463_v0, %v176_v8  ;;  %v215_v12 = vmul.f32 %v463_v0, %v177_v9  ;;  %v216_v13 = vmul.f32 %v463_v0, %v178_v10  ;;  %v179_v14 = vld [vmem:[%s468_s19 + $0x30] sm:$0xff]  ;;  %v180_v15 = vld [vmem:[%s468_s19 + $0x38] sm:$0xff]  ;;  %v181_v24 = vld [vmem:[%s468_s19 + $0x40] sm:$0xff] }
  0x13   : > { %v249_v16 = vadd.f32 %v473_v1, %v211_v5  ;;  %v250_v17 = vadd.f32 %v473_v1, %v212_v6  ;;  %v251_v18 = vadd.f32 %v473_v1, %v213_v7  ;;  %v217_v19 = vmul.f32 %v463_v0, %v179_v14  ;;  %v182_v25 = vld [vmem:[%s468_s19 + $0x48] sm:$0xff]  ;;  %v183_v26 = vld [vmem:[%s468_s19 + $0x50] sm:$0xff]  ;;  %v184_v31 = vld [vmem:[%s468_s19 + $0x58] sm:$0xff] }
  0x14   : > { %v252_v20 = vadd.f32 %v473_v1, %v214_v11  ;;  %v253_v21 = vadd.f32 %v473_v1, %v215_v12  ;;  %v254_v22 = vadd.f32 %v473_v1, %v216_v13  ;;  %v218_v23 = vmul.f32 %v463_v0, %v180_v15  ;;  %v185_v32 = vld [vmem:[%s468_s19 + $0x60] sm:$0xff]  ;;  %v186_v33 = vld [vmem:[%s468_s19 + $0x68] sm:$0xff]  ;;  %v187_v38 = vld [vmem:[%s468_s19 + $0x70] sm:$0xff] }
  0x15   : > { %v281_v27 = vmax.f32 %v249_v16, 0.0  ;;  %v282_v28 = vmax.f32 %v250_v17, 0.0  ;;  %v283_v29 = vmax.f32 %v251_v18, 0.0  ;;  %v255_v30 = vadd.f32 %v473_v1, %v217_v19  ;;  %v188_v43 = vld [vmem:[%s468_s19 + $0x78] sm:$0xff]  ;;  %v189_v56 = vld [vmem:[%s468_s19 + $0x80] sm:$0xff]  ;;  %v190_v57 = vld [vmem:[%s468_s19 + $0x88] sm:$0xff] }
  0x16   : > { %v284_v34 = vmax.f32 %v252_v20, 0.0  ;;  %v285_v35 = vmax.f32 %v253_v21, 0.0  ;;  %v286_v36 = vmax.f32 %v254_v22, 0.0  ;;  %v256_v37 = vadd.f32 %v473_v1, %v218_v23  ;;  %v191_v58 = vld [vmem:[%s468_s19 + $0x90] sm:$0xff]  ;;  %v192_v63 = vld [vmem:[%s468_s19 + $0x98] sm:$0xff]  ;;  %v193_v2 = vld [vmem:[%s468_s19 + $0xa0] sm:$0xff] }
  0x17   : > { %314 = vst.msk [vmem:[%s496_s24] sm:$0xff] %vm313_vm0, %v281_v27  ;;  %315 = vst.msk [vmem:[%s496_s24 + $0x8] sm:$0xff] %vm313_vm0, %v282_v28  ;;  %v287_v39 = vmax.f32 %v255_v30, 0.0  ;;  %v219_v40 = vmul.f32 %v463_v0, %v181_v24  ;;  %v220_v41 = vmul.f32 %v463_v0, %v182_v25  ;;  %v221_v42 = vmul.f32 %v463_v0, %v183_v26  ;;  %v194_v3 = vld [vmem:[%s468_s19 + $0xa8] sm:$0xff]  ;;  %v195_v8 = vld [vmem:[%s468_s19 + $0xb0] sm:$0xff] }
  0x18   : > { %316 = vst.msk [vmem:[%s496_s24 + $0x10] sm:$0xff] %vm313_vm0, %v283_v29  ;;  %317 = vst.msk [vmem:[%s496_s24 + $0x18] sm:$0xff] %vm313_vm0, %v284_v34  ;;  %v288_v44 = vmax.f32 %v256_v37, 0.0  ;;  %v222_v45 = vmul.f32 %v463_v0, %v184_v31  ;;  %v223_v46 = vmul.f32 %v463_v0, %v185_v32  ;;  %v224_v47 = vmul.f32 %v463_v0, %v186_v33  ;;  %v196_v13 = vld [vmem:[%s468_s19 + $0xb8] sm:$0xff]  ;;  %v197_v26 = vld [vmem:[%s468_s19 + $0xc0] sm:$0xff] }
  0x19   : > { %318 = vst.msk [vmem:[%s496_s24 + $0x20] sm:$0xff] %vm313_vm0, %v285_v35  ;;  %319 = vst.msk [vmem:[%s496_s24 + $0x28] sm:$0xff] %vm313_vm0, %v286_v36  ;;  %v257_v48 = vadd.f32 %v473_v1, %v219_v40  ;;  %v258_v49 = vadd.f32 %v473_v1, %v220_v41  ;;  %v259_v50 = vadd.f32 %v473_v1, %v221_v42  ;;  %v198_v27 = vld [vmem:[%s468_s19 + $0xc8] sm:$0xff]  ;;  %v199_v28 = vld [vmem:[%s468_s19 + $0xd0] sm:$0xff] }
  0x1a   : > { %320 = vst.msk [vmem:[%s496_s24 + $0x30] sm:$0xff] %vm313_vm0, %v287_v39  ;;  %v225_v51 = vmul.f32 %v463_v0, %v187_v38  ;;  %321 = vst.msk [vmem:[%s496_s24 + $0x38] sm:$0xff] %vm313_vm0, %v288_v44  ;;  %v260_v52 = vadd.f32 %v473_v1, %v222_v45  ;;  %v261_v53 = vadd.f32 %v473_v1, %v223_v46  ;;  %v200_v33 = vld [vmem:[%s468_s19 + $0xd8] sm:$0xff]  ;;  %v201_v34 = vld [vmem:[%s468_s19 + $0xe0] sm:$0xff] }
  0x1b   : > { %v262_v54 = vadd.f32 %v473_v1, %v224_v47  ;;  %v226_v55 = vmul.f32 %v463_v0, %v188_v43  ;;  %v289_v59 = vmax.f32 %v257_v48, 0.0  ;;  %v290_v60 = vmax.f32 %v258_v49, 0.0  ;;  %v202_v35 = vld [vmem:[%s468_s19 + $0xe8] sm:$0xff]  ;;  %v203_v40 = vld [vmem:[%s468_s19 + $0xf0] sm:$0xff]  ;;  %v204_v45 = vld [vmem:[%s468_s19 + $0xf8] sm:$0xff] }
  0x1c   : > { %v291_v61 = vmax.f32 %v259_v50, 0.0  ;;  %v263_v62 = vadd.f32 %v473_v1, %v225_v51  ;;  %v292_v4 = vmax.f32 %v260_v52, 0.0  ;;  %v293_v5 = vmax.f32 %v261_v53, 0.0 }
  0x1d   : > { %v294_v6 = vmax.f32 %v262_v54, 0.0  ;;  %v264_v7 = vadd.f32 %v473_v1, %v226_v55  ;;  %322 = vst.msk [vmem:[%s496_s24 + $0x40] sm:$0xff] %vm313_vm0, %v289_v59  ;;  %323 = vst.msk [vmem:[%s496_s24 + $0x48] sm:$0xff] %vm313_vm0, %v290_v60  ;;  %v227_v10 = vmul.f32 %v463_v0, %v189_v56  ;;  %v228_v11 = vmul.f32 %v463_v0, %v190_v57 }
  0x1e   : > { %324 = vst.msk [vmem:[%s496_s24 + $0x50] sm:$0xff] %vm313_vm0, %v291_v61  ;;  %v295_v9 = vmax.f32 %v263_v62, 0.0  ;;  %v229_v12 = vmul.f32 %v463_v0, %v191_v58  ;;  %325 = vst.msk [vmem:[%s496_s24 + $0x58] sm:$0xff] %vm313_vm0, %v292_v4  ;;  %v230_v15 = vmul.f32 %v463_v0, %v192_v63  ;;  %v231_v16 = vmul.f32 %v463_v0, %v193_v2 }
  0x1f   : > { %326 = vst.msk [vmem:[%s496_s24 + $0x60] sm:$0xff] %vm313_vm0, %v293_v5  ;;  %327 = vst.msk [vmem:[%s496_s24 + $0x68] sm:$0xff] %vm313_vm0, %v294_v6  ;;  %v296_v14 = vmax.f32 %v264_v7, 0.0  ;;  %v232_v17 = vmul.f32 %v463_v0, %v194_v3  ;;  %v265_v18 = vadd.f32 %v473_v1, %v227_v10  ;;  %v266_v19 = vadd.f32 %v473_v1, %v228_v11 }
  0x20   : > { %328 = vst.msk [vmem:[%s496_s24 + $0x70] sm:$0xff] %vm313_vm0, %v295_v9  ;;  %v267_v20 = vadd.f32 %v473_v1, %v229_v12  ;;  %v233_v21 = vmul.f32 %v463_v0, %v195_v8  ;;  %v268_v22 = vadd.f32 %v473_v1, %v230_v15  ;;  %v269_v23 = vadd.f32 %v473_v1, %v231_v16 }
  0x21   : > { %329 = vst.msk [vmem:[%s496_s24 + $0x78] sm:$0xff] %vm313_vm0, %v296_v14  ;;  %v270_v24 = vadd.f32 %v473_v1, %v232_v17  ;;  %v234_v25 = vmul.f32 %v463_v0, %v196_v13  ;;  %v297_v29 = vmax.f32 %v265_v18, 0.0  ;;  %v298_v30 = vmax.f32 %v266_v19, 0.0 }
  0x22   : > { %v299_v31 = vmax.f32 %v267_v20, 0.0  ;;  %v271_v32 = vadd.f32 %v473_v1, %v233_v21  ;;  %v300_v36 = vmax.f32 %v268_v22, 0.0  ;;  %v301_v37 = vmax.f32 %v269_v23, 0.0 }
  0x23   : > { %v302_v38 = vmax.f32 %v270_v24, 0.0  ;;  %v272_v39 = vadd.f32 %v473_v1, %v234_v25  ;;  %330 = vst.msk [vmem:[%s496_s24 + $0x80] sm:$0xff] %vm313_vm0, %v297_v29  ;;  %331 = vst.msk [vmem:[%s496_s24 + $0x88] sm:$0xff] %vm313_vm0, %v298_v30  ;;  %v235_v42 = vmul.f32 %v463_v0, %v197_v26  ;;  %v236_v43 = vmul.f32 %v463_v0, %v198_v27 }
  0x24   : > { %332 = vst.msk [vmem:[%s496_s24 + $0x90] sm:$0xff] %vm313_vm0, %v299_v31  ;;  %v303_v41 = vmax.f32 %v271_v32, 0.0  ;;  %v237_v44 = vmul.f32 %v463_v0, %v199_v28  ;;  %333 = vst.msk [vmem:[%s496_s24 + $0x98] sm:$0xff] %vm313_vm0, %v300_v36  ;;  %v238_v47 = vmul.f32 %v463_v0, %v200_v33  ;;  %v239_v48 = vmul.f32 %v463_v0, %v201_v34 }
  0x25   : > { %334 = vst.msk [vmem:[%s496_s24 + $0xa0] sm:$0xff] %vm313_vm0, %v301_v37  ;;  %335 = vst.msk [vmem:[%s496_s24 + $0xa8] sm:$0xff] %vm313_vm0, %v302_v38  ;;  %v304_v46 = vmax.f32 %v272_v39, 0.0  ;;  %v240_v49 = vmul.f32 %v463_v0, %v202_v35  ;;  %v273_v50 = vadd.f32 %v473_v1, %v235_v42  ;;  %v274_v51 = vadd.f32 %v473_v1, %v236_v43 }
  0x26   : > { %336 = vst.msk [vmem:[%s496_s24 + $0xb0] sm:$0xff] %vm313_vm0, %v303_v41  ;;  %v275_v52 = vadd.f32 %v473_v1, %v237_v44  ;;  %v241_v53 = vmul.f32 %v463_v0, %v203_v40  ;;  %v276_v54 = vadd.f32 %v473_v1, %v238_v47  ;;  %v277_v55 = vadd.f32 %v473_v1, %v239_v48 }
  0x27   : > { %337 = vst.msk [vmem:[%s496_s24 + $0xb8] sm:$0xff] %vm313_vm0, %v304_v46  ;;  %v278_v56 = vadd.f32 %v473_v1, %v240_v49  ;;  %v242_v57 = vmul.f32 %v463_v0, %v204_v45  ;;  %v305_v58 = vmax.f32 %v273_v50, 0.0  ;;  %v306_v59 = vmax.f32 %v274_v51, 0.0 }
  0x28   : > { %v307_v60 = vmax.f32 %v275_v52, 0.0  ;;  %v279_v61 = vadd.f32 %v473_v1, %v241_v53  ;;  %v308_v62 = vmax.f32 %v276_v54, 0.0  ;;  %v309_v63 = vmax.f32 %v277_v55, 0.0 }
  0x29   : > { %v310_v2 = vmax.f32 %v278_v56, 0.0  ;;  %v280_v3 = vadd.f32 %v473_v1, %v242_v57  ;;  %338 = vst.msk [vmem:[%s496_s24 + $0xc0] sm:$0xff] %vm313_vm0, %v305_v58  ;;  %339 = vst.msk [vmem:[%s496_s24 + $0xc8] sm:$0xff] %vm313_vm0, %v306_v59 }
  0x2a   : > { %340 = vst.msk [vmem:[%s496_s24 + $0xd0] sm:$0xff] %vm313_vm0, %v307_v60  ;;  %v311_v4 = vmax.f32 %v279_v61, 0.0  ;;  %341 = vst.msk [vmem:[%s496_s24 + $0xd8] sm:$0xff] %vm313_vm0, %v308_v62 }
  0x2b   : > { %342 = vst.msk [vmem:[%s496_s24 + $0xe0] sm:$0xff] %vm313_vm0, %v309_v63  ;;  %343 = vst.msk [vmem:[%s496_s24 + $0xe8] sm:$0xff] %vm313_vm0, %v310_v2  ;;  %v312_v0 = vmax.f32 %v280_v3, 0.0 }
  0x2c   : > { %344 = vst.msk [vmem:[%s496_s24 + $0xf0] sm:$0xff] %vm313_vm0, %v311_v4 }
  0x2d   : > { %345 = vst.msk [vmem:[%s496_s24 + $0xf8] sm:$0xff] %vm313_vm0, %v312_v0 }
  0x2e PF: > { %s13_s12 = sadd.s32 1, %s430_s12  }
  0x2f   : > { %p10_p4 = scmp.ge.s32.totalorder %s13_s12, 4  }
  0x31   :  { %12 = sbr.rel (!%p10_p4) target bundleno = 1 (0x1), region = 62 }

// kernel: triple_inter_action_forward.4
= control target key start
LH: loop header
LB: loop body
LE: loop exit
PB: predicated region body
PF: predicated region fallthrough
CT: control target
= control target key end

     0   :  { %s6124_s21 = smov 0   ;;  %s7984_s0 = inlined_call_operand.vmem [shape: bf16[2,256,64], index: 0, kind: input, shape index: {}]   ;;  %s7985_s1 = inlined_call_operand.vmem [shape: f32[1,64], index: 1, kind: input, shape index: {}]   ;;  %s7986_s2 = inlined_call_operand.vmem [shape: f32[1,64], index: 2, kind: input, shape index: {}]   ;;  %s7987_s3 = inlined_call_operand.vmem [shape: bf16[576,8], index: 3, kind: input, shape index: {}]   ;;  %s7988_s4 = inlined_call_operand.vmem [shape: f32[2,256,8], index: 4, kind: output, shape index: {0}]   ;;  %s7989_s5 = inlined_call_operand.vmem [shape: f32[2,1,8], index: 5, kind: output, shape index: {1}]   ;;  %s7990_s6 = inlined_call_operand.vmem [shape: f32[2,1,8], index: 6, kind: output, shape index: {2}]  }
   0x1 LB: > { %s5278_s22 = sadd.s32 4294967295, %s6085_s21   ;;  %p5282_p0 = scmp.ge.s32.totalorder %s6085_s21, 1  ;;  %s6085_s21 = sphi %s6124_s21, %s17_s21  }
   0x2   : > { %p217_p1 = scmp.lt.s32.totalorder %s6085_s21, 3 }
   0x4   : > { %p218_p2 = pnand %p5282_p0, %p217_p1 }
   0x6   : > { %221 = sbr.rel (%p218_p2) target bundleno = 698 (0x2ba), region = 36 }
   0xd   : > { %p253_p3 = scmp.lt.s32.totalorder %s5278_s22, 1  ;;  %vm460_vm0 = vcmask 519168   ;;  %vm463_vm1 = vcmask 516096   ;;  %vm470_vm2 = vsmask.f32 256  ;;  %v7996_v1 = vmov 0 }
   0xe   : > { %v475_v0 = vld [vmem:[#allocation2 + $0xc] sm:$0x1]  ;;  %vm6135_vm3 = vmand %vm463_vm1, %vm470_vm2  ;;  %vm526_vm4 = vsmask.f32 7938  ;;  %v7999_v3 = vmov 0  ;;  %v6087_v4 = vmov 0  }
   0xf   : > { %s8027_s22 = smov (!%p253_p3, %s5278_s22), 1  ;;  %v7997_v1 = vsel %vm6135_vm3, 4294967295, %v7996_v1  ;;  %v476_v2 = vsel %vm6135_vm3, 0, %v475_v0  ;;  %vm6142_vm5 = vmand %vm463_vm1, %vm526_vm4  ;;  %461 = vst.msk [vmem:[#allocation2] sm:$0xf] %vm460_vm0, %v6087_v4  ;;  %s6088_s7 = smov 64  }
  0x10   : > { %7998 = vst [vmem:[#allocation4_spill] sm:$0xff] %v7997_v1  ;;  %v8000_v3 = vsel %vm6142_vm5, 4294967295, %v7999_v3  ;;  %462 = vst.msk [vmem:[#allocation2 + $0x4] sm:$0xf] %vm460_vm0, %v6087_v4  ;;  %s5567_s23 = sshll.u32 %s8027_s22, 7  ;;  %vm1888_vm12 = vcmask 1042432   ;;  %s265_s12 = scalar_lea.vmem %s7989_s5, %s8027_s22 }
  0x11   : > { %8001 = vst [vmem:[#allocation5_spill] sm:$0xff] %v8000_v3  ;;  %464 = vst.msk [vmem:[#allocation2 + $0x8] sm:$0x1] %vm463_vm1, %v6087_v4  ;;  %v511_v5 = vld [vmem:[#allocation2 + $0x9c] sm:$0x1]  ;;  %s6154_s26 = scalar_lea.vmem %s7984_s0, %s5567_s23  ;;  %vm1889_vm13 = vcmask 1046532   ;;  %s268_s15 = scalar_lea.vmem %s7990_s6, %s8027_s22 }
  0x12   : > { %466 = vst.msk [vmem:[#allocation2 + $0xcc] sm:$0xf] %vm460_vm0, %v6087_v4  ;;  %467 = vst.msk [vmem:[#allocation2 + $0xd0] sm:$0xf] %vm460_vm0, %v6087_v4  ;;  %v478_v6 = vld [vmem:[#allocation2 + $0x18] sm:$0x1] }
  0x13   : > { %468 = vst.msk [vmem:[#allocation2 + $0xd4] sm:$0x1] %vm463_vm1, %v6087_v4  ;;  %477 = vst [vmem:[#allocation2 + $0xc] sm:$0x1] %v476_v2  ;;  %v512_v7 = vsel %vm6135_vm3, 0, %v511_v5  ;;  %v479_v8 = vsel %vm6135_vm3, 0, %v478_v6 }
  0x14   : > { %v508_v9 = vld [vmem:[#allocation2 + $0x90] sm:$0x1]  ;;  %v564_v10 = vld [vmem:[#allocation2 + $0x98] sm:$0x1]  ;;  %v5602_v11 = vld [vmem:[%s6154_s26] sm:$0xff]   ;;  %vm1227_vm15 = vcmask 523264  }
  0x15   : > { %v6164_v12 = vld [vmem:[%s7985_s1] ss:$0 sm:$0xff]  ;;  %513 = vst [vmem:[#allocation2 + $0x9c] sm:$0x1] %v512_v7  ;;  %480 = vst [vmem:[#allocation2 + $0x18] sm:$0x1] %v479_v8  ;;  %v5603_v16 = vunpack.c.l.bf16 %v5602_v11  ;;  %v5604_v17 = vunpack.c.h.bf16 %v5602_v11 }
  0x16   : > { %v5676_v13 = vld [vmem:[%s6154_s26 + $0x60] sm:$0xff]   ;;  %v509_v14 = vsel %vm6135_vm3, 0, %v508_v9  ;;  %v565_v15 = vsel %vm6142_vm5, 0, %v564_v10  ;;  %v5665_v20 = vld [vmem:[%s6154_s26 + $0x8] sm:$0xff]   ;;  %v5675_v21 = vld [vmem:[%s6154_s26 + $0x58] sm:$0xff]   ;;  %vm4967_vm1 = vcmask 64512  }
  0x17   : > { %v5651_v18 = vunpack.c.l.bf16 %v5676_v13  ;;  %v5652_v19 = vunpack.c.h.bf16 %v5676_v13  ;;  %510 = vst [vmem:[#allocation2 + $0x90] sm:$0x1] %v509_v14  ;;  %566 = vst [vmem:[#allocation2 + $0x98] sm:$0x1] %v565_v15  ;;  %v6176_v22 = vld [vmem:[%s7986_s2] ss:$0 sm:$0xff]  ;;  %v5607_v23 = vunpack.c.l.bf16 %v5665_v20  ;;  %v5608_v24 = vunpack.c.h.bf16 %v5665_v20 }
  0x18   : > { %vm662_vm6 = vsmask.f32 4368  ;;  %v5647_v25 = vunpack.c.l.bf16 %v5675_v21  ;;  %v5648_v26 = vunpack.c.h.bf16 %v5675_v21  ;;  %v341_v27 = vmul.f32 %v5603_v16, %v6164_v12  ;;  %v472_v31 = vld [vmem:[#allocation2] sm:$0x1]  ;;  %v528_v32 = vld [vmem:[#allocation2 + $0x8] sm:$0x1]  ;;  %vm6214_vm10 = vmand %vm460_vm0, %vm526_vm4 }
  0x19   : > { %v342_v28 = vmul.f32 %v5604_v17, %v6164_v12  ;;  %v365_v29 = vmul.f32 %v5651_v18, %v6164_v12  ;;  %v366_v30 = vmul.f32 %v5652_v19, %v6164_v12  ;;  %v1245_v33 = vld [vmem:[#allocation2 + $0x4] sm:$0xf]  ;;  %vm1292_vm7 = vsmask.f32 3328  ;;  %vm6206_vm9 = vmor %vm470_vm2, %vm662_vm6 }
  0x1a   : > { %vm1293_vm8 = vsmask.f32 7440  ;;  %v343_v34 = vmul.f32 %v5607_v23, %v6164_v12  ;;  %v344_v35 = vmul.f32 %v5608_v24, %v6164_v12  ;;  %v363_v36 = vmul.f32 %v5647_v25, %v6164_v12  ;;  %v987_v17 = vld [vmem:[#allocation2 + $0xc] sm:$0xf]  ;;  %vm6559_vm14 = vmor %vm1888_vm12, %vm1889_vm13 }
  0x1b   : > { %v6186_v37 = vmul.f32 %v5648_v26, %v6164_v12  ;;  %v380_v38 = vadd.f32 %v6176_v22, %v341_v27  ;;  %v381_v39 = vadd.f32 %v6176_v22, %v342_v28  ;;  %v473_v40 = vsel %vm6135_vm3, 0, %v472_v31  ;;  %vm6222_vm11 = vmor %vm1292_vm7, %vm1293_vm8 }
  0x1c   : > { %v529_v41 = vsel %vm6142_vm5, 0, %v528_v32  ;;  %474 = vst [vmem:[#allocation2] sm:$0x1] %v473_v40  ;;  %v1305_v42 = vshll.u32 %v1245_v33, 16  ;;  %v1309_v43 = vshrl.u32 %v1245_v33, 16  ;;  %v404_v44 = vadd.f32 %v6176_v22, %v365_v29 }
  0x1d   : > { %530 = vst [vmem:[#allocation2 + $0x8] sm:$0x1] %v529_v41  ;;  %v405_v45 = vadd.f32 %v6176_v22, %v366_v30  ;;  %v412_v46 = vmax.f32 %v380_v38, 0.0  ;;  %v413_v47 = vmax.f32 %v381_v39, 0.0  ;;  %v382_v48 = vadd.f32 %v6176_v22, %v343_v34  ;;  %v1071_v28 = vld [vmem:[#allocation2 + $0x9c] sm:$0xf] }
  0x1e   : > { %v383_v49 = vadd.f32 %v6176_v22, %v344_v35  ;;  %v6198_v50 = vrot.slane %v1305_v42, 5  ;;  %v1311_v51 = vrot.slane %v1309_v43, 4  ;;  %v436_v52 = vmax.f32 %v404_v44, 0.0  ;;  %v531_v42 = vld [vmem:[#allocation2 + $0x14] sm:$0x1] }
  0x1f   : > { %v437_v53 = vmax.f32 %v405_v45, 0.0  ;;  %v5569_v54 = vpack.c.bf16 %v412_v46, %v412_v46  ;;  %v5570_v55 = vpack.c.bf16 %v413_v47, %v413_v47  ;;  %v414_v56 = vmax.f32 %v382_v48, 0.0  ;;  %v5677_v47 = vld [vmem:[%s6154_s26 + $0x68] sm:$0xff]  }
  0x20   : > { %v415_v57 = vmax.f32 %v383_v49, 0.0  ;;  %v1312_v58 = vor.u32 %v1311_v51, %v6198_v50  ;;  %v5593_v59 = vpack.c.bf16 %v436_v52, %v436_v52  ;;  %v6202_v61 = vadd.f32 %v6176_v22, %v363_v36  ;;  %v994_v52 = vld [vmem:[#allocation2 + $0x18] sm:$0xf] }
  0x21   : > { %v5594_v60 = vpack.c.bf16 %v437_v53, %v437_v53  ;;  %v665_v62 = vshrl.u32 %v5569_v54, 16  ;;  %v668_v63 = vshll.u32 %v5569_v54, 16  ;;  %v673_v0 = vshrl.u32 %v5570_v55, 16  ;;  %v514_v54 = vld [vmem:[#allocation2 + $0xa8] sm:$0x1] }
  0x22   : > { %v676_v2 = vshll.u32 %v5570_v55, 16  ;;  %v1313_v4 = vrot.slane %v1312_v58, 4  ;;  %v869_v5 = vshrl.u32 %v5593_v59, 16  ;;  %v872_v6 = vshll.u32 %v5593_v59, 16 }
  0x23   : > { %v877_v7 = vshrl.u32 %v5594_v60, 16  ;;  %v667_v9 = vrot.slane %v665_v62, 7  ;;  %v6210_v10 = vrot.slane %v673_v0, 7  ;;  %v1244_v11 = vld [vmem:[#allocation2] sm:$0xf]  ;;  %v5571_v14 = vpack.c.bf16 %v414_v56, %v414_v56 }
  0x24   : > { %v1246_v13 = vld [vmem:[#allocation2 + $0x8] sm:$0x1]  ;;  %v5572_v15 = vpack.c.bf16 %v415_v57, %v415_v57  ;;  %v1296_v18 = vshrl.u32 %v1244_v11, 16  ;;  %v1299_v19 = vshll.u32 %v1244_v11, 16  ;;  %v871_v21 = vrot.slane %v869_v5, 7 }
  0x25   : > { %v1315_v20 = vshll.u32 %v1246_v13, 16  ;;  %v670_v23 = vor.u32 %v668_v63, %v667_v9  ;;  %v671_v24 = vrot.slane %v667_v9, 4  ;;  %v678_v25 = vor.u32 %v676_v2, %v6210_v10  ;;  %v5666_v9 = vld [vmem:[%s6154_s26 + $0x10] sm:$0xff]  }
  0x26   : > { %v680_v26 = vrot.slane %v6210_v10, 4  ;;  %v1298_v29 = vrot.slane %v1296_v18, 4  ;;  %v1301_v30 = vrot.slane %v1299_v19, 5  ;;  %v874_v32 = vor.u32 %v872_v6, %v871_v21 }
  0x27   : > { %v1317_v31 = vrot.slane %v1315_v20, 5  ;;  %v679_v33 = vsel %vm6206_vm9, %v671_v24, %v678_v25  ;;  %v988_v34 = vsel %vm6214_vm10, %v670_v23, %v987_v17  ;;  %v875_v35 = vrot.slane %v871_v21, 4  ;;  %v1064_v21 = vld [vmem:[#allocation2 + $0x90] sm:$0xf] }
  0x28   : > { %v6230_v36 = vrot.slane %v877_v7, 7  ;;  %989 = vst [vmem:[#allocation2 + $0xc] sm:$0xf] %v988_v34  ;;  %990 = vst.msk [vmem:[#allocation2 + $0x10] sm:$0xf] %vm460_vm0, %v679_v33  ;;  %v1302_v38 = vor.u32 %v1301_v30, %v1298_v29  ;;  %v880_v40 = vshll.u32 %v5594_v60, 16  ;;  %v1072_v41 = vsel %vm6214_vm10, %v874_v32, %v1071_v28 }
  0x29   : > { %v1318_v39 = vsel %vm6222_vm11, %v1313_v4, %v1317_v31  ;;  %1073 = vst [vmem:[#allocation2 + $0x9c] sm:$0xf] %v1072_v41  ;;  %v682_v44 = vshrl.u32 %v5571_v14, 16  ;;  %v685_v45 = vshll.u32 %v5571_v14, 16  ;;  %v690_v46 = vshrl.u32 %v5572_v15, 16 }
  0x2a   : > { %v884_v43 = vrot.slane %v6230_v36, 4  ;;  %v1303_v48 = vrot.slane %v1302_v38, 4  ;;  %v882_v49 = vor.u32 %v880_v40, %v6230_v36  ;;  %v693_v51 = vshll.u32 %v5572_v15, 16  ;;  %v1068_v33 = vld [vmem:[#allocation2 + $0x98] sm:$0x1] }
  0x2b   : > { %v403_v53 = vadd.f32 %v6176_v22, %v6186_v37  ;;  %v684_v55 = vrot.slane %v682_v44, 7  ;;  %v6242_v56 = vrot.slane %v690_v46, 7  ;;  %v434_v57 = vmax.f32 %v6202_v61, 0.0  ;;  %v481_v44 = vld [vmem:[#allocation2 + $0x24] sm:$0x1] }
  0x2c   : > { %v532_v58 = vsel %vm6142_vm5, 0, %v531_v42  ;;  %v1308_v59 = vsel %vm6222_vm11, %v1303_v48, %v6198_v50  ;;  %v883_v60 = vsel %vm6206_vm9, %v875_v35, %v882_v49  ;;  %v5655_v37 = vunpack.c.l.bf16 %v5677_v47 }
  0x2d   : > { %v435_v62 = vmax.f32 %v403_v53, 0.0  ;;  %533 = vst [vmem:[#allocation2 + $0x14] sm:$0x1] %v532_v58  ;;  %v5337_v63 = vcombine.low %v1308_v59, %v1318_v39  ;;  %1074 = vst.msk [vmem:[#allocation2 + $0xa0] sm:$0xf] %vm460_vm0, %v883_v60  ;;  %v687_v0 = vor.u32 %v685_v45, %v684_v55  ;;  %v688_v2 = vrot.slane %v684_v55, 4 }
  0x2e   : > { %v695_v61 = vor.u32 %v693_v51, %v6242_v56  ;;  %v697_v4 = vrot.slane %v6242_v56, 4  ;;  %v5591_v5 = vpack.c.bf16 %v434_v57, %v434_v57  ;;  %v5656_v7 = vunpack.c.h.bf16 %v5677_v47  ;;  %v567_v55 = vld [vmem:[#allocation2 + $0xa4] sm:$0x1] }
  0x2f   : > { %v5592_v6 = vpack.c.bf16 %v435_v62, %v435_v62  ;;  %v5990_v50 = vld [vmem:[#allocation2 + $0xc] sm:$0xff]   ;;  %1727 = vrot.lane.b32.xlu1 %v5337_v63, %s6088_s7  ;;  %v995_v13 = vsel %vm6214_vm10, %v687_v0, %v994_v52  ;;  %v367_v14 = vmul.f32 %v5655_v37, %v6164_v12  ;;  %v515_v15 = vsel %vm6135_vm3, 0, %v514_v54 }
  0x30   : > { %v696_v11 = vsel %vm6206_vm9, %v688_v2, %v695_v61  ;;  %996 = vst [vmem:[#allocation2 + $0x18] sm:$0xf] %v995_v13  ;;  %v852_v17 = vshrl.u32 %v5591_v5, 16  ;;  %v855_v18 = vshll.u32 %v5591_v5, 16  ;;  %516 = vst [vmem:[#allocation2 + $0xa8] sm:$0x1] %v515_v15  ;;  %2195 = vrot.lane.b32.xlu0 %v5990_v50, %s6088_s7  ;;  %v368_v25 = vmul.f32 %v5656_v7, %v6164_v12 }
  0x31   : > { %997 = vst.msk [vmem:[#allocation2 + $0x1c] sm:$0xf] %vm460_vm0, %v696_v11  ;;  %v860_v19 = vshrl.u32 %v5592_v6, 16  ;;  %v863_v20 = vshll.u32 %v5592_v6, 16  ;;  %v1247_v23 = vld [vmem:[#allocation2 + $0xc] sm:$0xf]  ;;  %v406_v28 = vadd.f32 %v6176_v22, %v367_v14  ;;  %v5611_v29 = vunpack.c.l.bf16 %v5666_v9 }
  0x32   : > { %v1248_v24 = vld [vmem:[#allocation2 + $0x10] sm:$0xf]  ;;  %v5612_v30 = vunpack.c.h.bf16 %v5666_v9  ;;  %v854_v31 = vrot.slane %v852_v17, 7  ;;  %v1320_v34 = vshrl.u32 %v1247_v23, 16  ;;  %v1323_v35 = vshll.u32 %v1247_v23, 16 }
  0x33   : > { %v862_v32 = vrot.slane %v860_v19, 7  ;;  %v1329_v39 = vshll.u32 %v1248_v24, 16  ;;  %v1333_v40 = vshrl.u32 %v1248_v24, 16  ;;  %v407_v41 = vadd.f32 %v6176_v22, %v368_v25  ;;  %v6282_v60 = vld [vmem:[#allocation2 + $0x9c] sm:$0xf]  ;;  %v6305_v24 = vld [vmem:[%s6154_s26 + $0x70] sm:$0xff]  }
  0x34   : > { %v991_v38 = vld [vmem:[#allocation2 + $0x14] sm:$0x1]  ;;  %v438_v42 = vmax.f32 %v406_v28, 0.0  ;;  %v5991_v45 = vld [vmem:[#allocation2 + $0x9c] sm:$0xff]   ;;  %v857_v46 = vor.u32 %v855_v18, %v854_v31  ;;  %v858_v47 = vrot.slane %v854_v31, 4  ;;  %v1322_v52 = vrot.slane %v1320_v34, 4 }
  0x35   : > { %v865_v48 = vor.u32 %v863_v20, %v862_v32  ;;  %v867_v49 = vrot.slane %v862_v32, 4  ;;  %v992_v51 = vsel %vm6135_vm3, %v680_v26, %v991_v38  ;;  %v1325_v53 = vrot.slane %v1323_v35, 5  ;;  %2219 = vrot.lane.b32.xlu0 %v5991_v45, %s6088_s7  ;;  %v6297_v17 = vld [vmem:[#allocation2 + $0xa0] sm:$0xf] }
  0x36   : > { %v6273_v54 = vrot.slane %v1329_v39, 5  ;;  %v1065_v58 = vsel %vm6214_vm10, %v857_v46, %v1064_v21  ;;  %993 = vst [vmem:[#allocation2 + $0x14] sm:$0x1] %v992_v51  ;;  %v1335_v10 = vrot.slane %v1333_v40, 4  ;;  %v439_v37 = vmax.f32 %v407_v41, 0.0 }
  0x37   : > { %v866_v57 = vsel %vm6206_vm9, %v858_v47, %v865_v48  ;;  %v1069_v59 = vsel %vm6135_vm3, %v867_v49, %v1068_v33  ;;  %1066 = vst [vmem:[#allocation2 + $0x90] sm:$0xf] %v1065_v58  ;;  %v1326_v62 = vor.u32 %v1325_v53, %v1322_v52  ;;  %v5595_v63 = vpack.c.bf16 %v438_v42, %v438_v42  ;;  %v1078_v51 = vld [vmem:[#allocation2 + $0xa8] sm:$0xf] }
  0x38   : > { %v5992_v26 = vld [vmem:[#allocation2 + $0x18] sm:$0xff]   ;;  %1067 = vst.msk [vmem:[#allocation2 + $0x94] sm:$0xf] %vm460_vm0, %v866_v57  ;;  %1070 = vst [vmem:[#allocation2 + $0x98] sm:$0x1] %v1069_v59  ;;  %v345_v0 = vmul.f32 %v5611_v29, %v6164_v12  ;;  %v1336_v2 = vor.u32 %v1335_v10, %v6273_v54  ;;  %v346_v61 = vmul.f32 %v5612_v30, %v6164_v12  ;;  %v482_v5 = vsel %vm6135_vm3, 0, %v481_v44 }
  0x39   : > { %v568_v6 = vsel %vm6142_vm5, 0, %v567_v55  ;;  %v6292_v7 = vrot.slane %v1326_v62, 4  ;;  %v5596_v9 = vpack.c.bf16 %v439_v37, %v439_v37  ;;  %v886_v50 = vshrl.u32 %v5595_v63, 16  ;;  %483 = vst [vmem:[#allocation2 + $0x24] sm:$0x1] %v482_v5  ;;  %2197 = vrot.lane.b32.xlu0 %v5992_v26, %s6088_s7 }
  0x3a   : > { %v889_v11 = vshll.u32 %v5595_v63, 16  ;;  %569 = vst [vmem:[#allocation2 + $0xa4] sm:$0x1] %v568_v6  ;;  %v1337_v13 = vrot.slane %v1336_v2, 4  ;;  %v384_v14 = vadd.f32 %v6176_v22, %v345_v0  ;;  %v385_v15 = vadd.f32 %v6176_v22, %v346_v61 }
  0x3b   : > { %v1608_v18 = vshrl.u32 %v6282_v60, 16  ;;  %v1332_v19 = vsel %vm6222_vm11, %v6292_v7, %v6273_v54  ;;  %v888_v20 = vrot.slane %v886_v50, 7  ;;  %v894_v21 = vshrl.u32 %v5596_v9, 16 }
  0x3c   : > { %v897_v23 = vshll.u32 %v5596_v9, 16  ;;  %v416_v25 = vmax.f32 %v384_v14, 0.0  ;;  %v417_v28 = vmax.f32 %v385_v15, 0.0  ;;  %v1611_v30 = vshll.u32 %v6282_v60, 16  ;;  %v534_v14 = vld [vmem:[#allocation2 + $0x20] sm:$0x1] }
  0x3d   : > { %v6307_v29 = vrot.slane %v1608_v18, 4  ;;  %v1249_v31 = vld [vmem:[#allocation2 + $0x14] sm:$0x1]  ;;  %v891_v32 = vor.u32 %v889_v11, %v888_v20  ;;  %v892_v33 = vrot.slane %v888_v20, 4  ;;  %v6310_v34 = vrot.slane %v894_v21, 7 }
  0x3e   : > { %v1617_v35 = vshll.u32 %v6297_v17, 16  ;;  %v1280_v38 = vld [vmem:[#allocation2 + $0x90] sm:$0xf]  ;;  %v5573_v41 = vpack.c.bf16 %v416_v25, %v416_v25  ;;  %v5574_v42 = vpack.c.bf16 %v417_v28, %v417_v28  ;;  %v5659_v44 = vunpack.c.l.bf16 %v6305_v24  ;;  %v1250_v15 = vld [vmem:[#allocation2 + $0x18] sm:$0xf] }
  0x3f   : > { %v1281_v39 = vld [vmem:[#allocation2 + $0x94] sm:$0xf]  ;;  %v1282_v40 = vld [vmem:[#allocation2 + $0x98] sm:$0x1]  ;;  %v5660_v45 = vunpack.c.h.bf16 %v6305_v24  ;;  %v1584_v46 = vshrl.u32 %v1280_v38, 16  ;;  %v1587_v47 = vshll.u32 %v1280_v38, 16  ;;  %v899_v54 = vor.u32 %v897_v23, %v6310_v34 }
  0x40   : > { %v1593_v48 = vshll.u32 %v1281_v39, 16  ;;  %v1597_v49 = vshrl.u32 %v1281_v39, 16  ;;  %v1603_v52 = vshll.u32 %v1282_v40, 16  ;;  %v1339_v53 = vshll.u32 %v1249_v31, 16  ;;  %v1001_v50 = vld [vmem:[#allocation2 + $0x24] sm:$0xf] }
  0x41   : > { %v901_v55 = vrot.slane %v6310_v34, 4  ;;  %v1586_v57 = vrot.slane %v1584_v46, 4  ;;  %v1589_v58 = vrot.slane %v1587_v47, 5  ;;  %v1075_v60 = vld [vmem:[#allocation2 + $0xa4] sm:$0x1]  ;;  %v900_v37 = vsel %vm6206_vm9, %v892_v33, %v899_v54 }
  0x42   : > { %v1595_v59 = vrot.slane %v1593_v48, 5  ;;  %v1599_v10 = vrot.slane %v1597_v49, 4  ;;  %v1605_v26 = vrot.slane %v1603_v52, 5  ;;  %v1341_v62 = vrot.slane %v1339_v53, 5  ;;  %1081 = vst.msk [vmem:[#allocation2 + $0xac] sm:$0xf] %vm460_vm0, %v900_v37 }
  0x43   : > { %v1079_v63 = vsel %vm6214_vm10, %v891_v32, %v1078_v51  ;;  %v1590_v0 = vor.u32 %v1589_v58, %v1586_v57  ;;  %v699_v61 = vshrl.u32 %v5573_v41, 16  ;;  %v702_v5 = vshll.u32 %v5573_v41, 16  ;;  %v1251_v31 = vld [vmem:[#allocation2 + $0x1c] sm:$0xf]  ;;  %v517_v54 = vld [vmem:[#allocation2 + $0xb4] sm:$0x1] }
  0x44   : > { %v1600_v2 = vor.u32 %v1599_v10, %v1595_v59  ;;  %1080 = vst [vmem:[#allocation2 + $0xa8] sm:$0xf] %v1079_v63  ;;  %v1342_v6 = vsel %vm6222_vm11, %v1337_v13, %v1341_v62  ;;  %v707_v7 = vshrl.u32 %v5574_v42, 16  ;;  %v710_v9 = vshll.u32 %v5574_v42, 16  ;;  %v7022_v1 = vld [vmem:[#allocation2 + $0x90] sm:$0xe] }
  0x45   : > { %v1076_v11 = vsel %vm6135_vm3, %v884_v43, %v1075_v60  ;;  %v1591_v18 = vrot.slane %v1590_v0, 4  ;;  %v5338_v21 = vcombine.low %v1332_v19, %v1342_v6  ;;  %v701_v23 = vrot.slane %v699_v61, 7  ;;  %v5667_v60 = vld [vmem:[%s6154_s26 + $0x18] sm:$0xff]  }
  0x46   : > { %v1601_v20 = vrot.slane %v1600_v2, 4  ;;  %1077 = vst [vmem:[#allocation2 + $0xa4] sm:$0x1] %v1076_v11  ;;  %v6328_v24 = vrot.slane %v707_v7, 7  ;;  %v1613_v25 = vrot.slane %v1611_v30, 5  ;;  %v6330_v28 = vrot.slane %v1617_v35, 5 }
  0x47   : > { %v1621_v13 = vshrl.u32 %v6297_v17, 16  ;;  %v1596_v36 = vsel %vm6222_vm11, %v1591_v18, %v1595_v59  ;;  %1729 = vrot.lane.b32.xlu0 %v5338_v21, %s6088_s7  ;;  %v704_v32 = vor.u32 %v702_v5, %v701_v23  ;;  %v705_v19 = vrot.slane %v701_v23, 4  ;;  %v570_v11 = vld [vmem:[#allocation2 + $0xb0] sm:$0x1] }
  0x48   : > { %v1606_v43 = vsel %vm6222_vm11, %v1601_v20, %v1605_v26  ;;  %v712_v38 = vor.u32 %v710_v9, %v6328_v24  ;;  %v714_v30 = vrot.slane %v6328_v24, 4  ;;  %v1614_v35 = vor.u32 %v1613_v25, %v6307_v29  ;;  %v6448_v24 = vld [vmem:[%s6154_s26 + $0x28] sm:$0xff]  }
  0x49   : > { %v5349_v33 = vcombine.low %v1596_v36, %v1606_v43  ;;  %v1002_v17 = vsel %vm6214_vm10, %v704_v32, %v1001_v50  ;;  %v1623_v39 = vrot.slane %v1621_v13, 4  ;;  %v535_v40 = vsel %vm6142_vm5, 0, %v534_v14  ;;  %v1287_v23 = vld [vmem:[#allocation2 + $0xac] sm:$0xf] }
  0x4a   : > { %v1344_v41 = vshrl.u32 %v1250_v15, 16  ;;  %v713_v46 = vsel %vm6206_vm9, %v705_v19, %v712_v38  ;;  %1003 = vst [vmem:[#allocation2 + $0x24] sm:$0xf] %v1002_v17  ;;  %v1615_v47 = vrot.slane %v1614_v35, 4  ;;  %536 = vst [vmem:[#allocation2 + $0x20] sm:$0x1] %v535_v40  ;;  %v369_v29 = vmul.f32 %v5659_v44, %v6164_v12 }
  0x4b   : > { %1751 = vrot.lane.b32.xlu1 %v5349_v33, %s6088_s7  ;;  %v5993_v42 = vld [vmem:[#allocation2 + $0xa8] sm:$0xff]   ;;  %v370_v48 = vmul.f32 %v5660_v45, %v6164_v12  ;;  %1004 = vst.msk [vmem:[#allocation2 + $0x28] sm:$0xf] %vm460_vm0, %v713_v46  ;;  %v1624_v49 = vor.u32 %v1623_v39, %v6330_v28  ;;  %v1347_v52 = vshll.u32 %v1250_v15, 16  ;;  %v1353_v53 = vshll.u32 %v1251_v31, 16 }
  0x4c   : > { %v1346_v51 = vrot.slane %v1344_v41, 4  ;;  %v1620_v58 = vsel %vm6222_vm11, %v1615_v47, %v6330_v28  ;;  %v1357_v59 = vshrl.u32 %v1251_v31, 16  ;;  %v408_v10 = vadd.f32 %v6176_v22, %v369_v29  ;;  %v484_v45 = vld [vmem:[#allocation2 + $0x30] sm:$0x1]  ;;  %v1286_v21 = vld [vmem:[#allocation2 + $0xa8] sm:$0xf] }
  0x4d   : > { %v1285_v57 = vld [vmem:[#allocation2 + $0xa4] sm:$0x1]  ;;  %v409_v44 = vadd.f32 %v6176_v22, %v370_v48  ;;  %v1625_v26 = vrot.slane %v1624_v49, 4  ;;  %v1349_v37 = vrot.slane %v1347_v52, 5  ;;  %v6358_v63 = vrot.slane %v1353_v53, 5 }
  0x4e   : > { %v1627_v62 = vshll.u32 %v1285_v57, 16  ;;  %v1359_v0 = vrot.slane %v1357_v59, 4  ;;  %v440_v2 = vmax.f32 %v408_v10, 0.0  ;;  %v518_v5 = vsel %vm6135_vm3, 0, %v517_v54  ;;  %v537_v49 = vld [vmem:[#allocation2 + $0x2c] sm:$0x1] }
  0x4f   : > { %2221 = vrot.lane.b32.xlu1 %v5993_v42, %s6088_s7  ;;  %v441_v61 = vmax.f32 %v409_v44, 0.0  ;;  %v1350_v7 = vor.u32 %v1349_v37, %v1346_v51  ;;  %519 = vst [vmem:[#allocation2 + $0xb4] sm:$0x1] %v518_v5  ;;  %v5615_v9 = vunpack.c.l.bf16 %v5667_v60  ;;  %v5616_v50 = vunpack.c.h.bf16 %v5667_v60 }
  0x50   : > { %v1629_v6 = vrot.slane %v1627_v62, 5  ;;  %v1360_v14 = vor.u32 %v1359_v0, %v6358_v63  ;;  %v5597_v15 = vpack.c.bf16 %v440_v2, %v440_v2  ;;  %v485_v20 = vsel %vm6135_vm3, 0, %v484_v45 }
  0x51   : > { %v5598_v18 = vpack.c.bf16 %v441_v61, %v441_v61  ;;  %v998_v28 = vld [vmem:[#allocation2 + $0x20] sm:$0x1]  ;;  %v6368_v13 = vrot.slane %v1350_v7, 4  ;;  %v347_v31 = vmul.f32 %v5615_v9, %v6164_v12  ;;  %v348_v36 = vmul.f32 %v5616_v50, %v6164_v12  ;;  %486 = vst [vmem:[#allocation2 + $0x30] sm:$0x1] %v485_v20 }
  0x52   : > { %v1630_v25 = vsel %vm6222_vm11, %v1625_v26, %v1629_v6  ;;  %v5994_v43 = vld [vmem:[#allocation2 + $0x24] sm:$0xff]   ;;  %v999_v19 = vsel %vm6135_vm3, %v697_v4, %v998_v28  ;;  %v6376_v33 = vrot.slane %v1360_v14, 4  ;;  %v903_v38 = vshrl.u32 %v5597_v15, 16 }
  0x53   : > { %v5350_v32 = vcombine.low %v1620_v58, %v1630_v25  ;;  %1000 = vst [vmem:[#allocation2 + $0x20] sm:$0x1] %v999_v19  ;;  %v1356_v35 = vsel %vm6222_vm11, %v6368_v13, %v6358_v63  ;;  %v906_v17 = vshll.u32 %v5597_v15, 16  ;;  %v911_v39 = vshrl.u32 %v5598_v18, 16  ;;  %2199 = vrot.lane.b32.xlu0 %v5994_v43, %s6088_s7  ;;  %v1253_v37 = vld [vmem:[#allocation2 + $0x24] sm:$0xf] }
  0x54   : > { %v914_v40 = vshll.u32 %v5598_v18, 16  ;;  %v905_v56 = vrot.slane %v903_v38, 7  ;;  %v386_v41 = vadd.f32 %v6176_v22, %v347_v31  ;;  %v387_v4 = vadd.f32 %v6176_v22, %v348_v36  ;;  %v1254_v6 = vld [vmem:[#allocation2 + $0x28] sm:$0xf] }
  0x55   : > { %1753 = vrot.lane.b32.xlu1 %v5350_v32, %s6088_s7  ;;  %v571_v42 = vsel %vm6142_vm5, 0, %v570_v11  ;;  %v6388_v46 = vrot.slane %v911_v39, 7  ;;  %v1632_v47 = vshrl.u32 %v1286_v21, 16  ;;  %v1635_v29 = vshll.u32 %v1286_v21, 16  ;;  %v5679_v39 = vld [vmem:[%s6154_s26 + $0x78] sm:$0xff]  }
  0x56   : > { %572 = vst [vmem:[#allocation2 + $0xb0] sm:$0x1] %v571_v42  ;;  %v1641_v48 = vshll.u32 %v1287_v23, 16  ;;  %v908_v51 = vor.u32 %v906_v17, %v905_v56  ;;  %v909_v52 = vrot.slane %v905_v56, 4  ;;  %v1085_v53 = vld [vmem:[#allocation2 + $0xb4] sm:$0xf]  ;;  %v5664_v63 = vunpack.c.h.bf16 %v5679_v39 }
  0x57   : > { %v418_v54 = vmax.f32 %v386_v41, 0.0  ;;  %v419_v57 = vmax.f32 %v387_v4, 0.0  ;;  %v916_v58 = vor.u32 %v914_v40, %v6388_v46  ;;  %v918_v59 = vrot.slane %v6388_v46, 4  ;;  %v520_v40 = vld [vmem:[#allocation2 + $0xc0] sm:$0x1] }
  0x58   : > { %v1634_v10 = vrot.slane %v1632_v47, 4  ;;  %v1637_v44 = vrot.slane %v1635_v29, 5  ;;  %v1086_v60 = vsel %vm6214_vm10, %v908_v51, %v1085_v53  ;;  %v6394_v62 = vrot.slane %v1641_v48, 5  ;;  %v1008_v32 = vld [vmem:[#allocation2 + $0x30] sm:$0xf]  ;;  %v5668_v48 = vld [vmem:[%s6154_s26 + $0x20] sm:$0xff]  }
  0x59   : > { %v5575_v45 = vpack.c.bf16 %v418_v54, %v418_v54  ;;  %v5576_v26 = vpack.c.bf16 %v419_v57, %v419_v57  ;;  %v917_v0 = vsel %vm6206_vm9, %v909_v52, %v916_v58  ;;  %1087 = vst [vmem:[#allocation2 + $0xb4] sm:$0xf] %v1086_v60  ;;  %v1645_v61 = vshrl.u32 %v1287_v23, 16 }
  0x5a   : > { %v1638_v2 = vor.u32 %v1637_v44, %v1634_v10  ;;  %v538_v5 = vsel %vm6142_vm5, 0, %v537_v49  ;;  %v1252_v7 = vld [vmem:[#allocation2 + $0x20] sm:$0x1]  ;;  %1088 = vst.msk [vmem:[#allocation2 + $0xb8] sm:$0xf] %vm460_vm0, %v917_v0  ;;  %v1368_v21 = vshrl.u32 %v1253_v37, 16  ;;  %v5663_v60 = vunpack.c.l.bf16 %v5679_v39 }
  0x5b   : > { %v716_v9 = vshrl.u32 %v5575_v45, 16  ;;  %v719_v50 = vshll.u32 %v5575_v45, 16  ;;  %v724_v11 = vshrl.u32 %v5576_v26, 16  ;;  %v727_v14 = vshll.u32 %v5576_v26, 16  ;;  %539 = vst [vmem:[#allocation2 + $0x2c] sm:$0x1] %v538_v5 }
  0x5c   : > { %v1363_v15 = vshll.u32 %v1252_v7, 16  ;;  %v6401_v18 = vrot.slane %v1638_v2, 4  ;;  %v1647_v20 = vrot.slane %v1645_v61, 4  ;;  %v1371_v31 = vshll.u32 %v1253_v37, 16  ;;  %v487_v49 = vld [vmem:[#allocation2 + $0x3c] sm:$0x1] }
  0x5d   : > { %v718_v25 = vrot.slane %v716_v9, 7  ;;  %v6403_v23 = vrot.slane %v724_v11, 7  ;;  %v1082_v28 = vld [vmem:[#allocation2 + $0xb0] sm:$0x1]  ;;  %v1377_v36 = vshll.u32 %v1254_v6, 16  ;;  %v1370_v47 = vrot.slane %v1368_v21, 4 }
  0x5e   : > { %v1365_v43 = vrot.slane %v1363_v15, 5  ;;  %v1083_v19 = vsel %vm6135_vm3, %v901_v55, %v1082_v28  ;;  %v1644_v38 = vsel %vm6222_vm11, %v6401_v18, %v6394_v62  ;;  %v1648_v17 = vor.u32 %v1647_v20, %v6394_v62 }
  0x5f   : > { %v721_v56 = vor.u32 %v719_v50, %v718_v25  ;;  %v722_v41 = vrot.slane %v718_v25, 4  ;;  %v729_v4 = vor.u32 %v727_v14, %v6403_v23  ;;  %v731_v42 = vrot.slane %v6403_v23, 4  ;;  %1084 = vst [vmem:[#allocation2 + $0xb0] sm:$0x1] %v1083_v19 }
  0x60   : > { %v1366_v34 = vsel %vm6222_vm11, %v6376_v33, %v1365_v43  ;;  %v6420_v55 = vrot.slane %v1648_v17, 4  ;;  %v1373_v29 = vrot.slane %v1371_v31, 5  ;;  %v6432_v54 = vrot.slane %v1377_v36, 5  ;;  %v573_v33 = vld [vmem:[#allocation2 + $0xbc] sm:$0x1] }
  0x61   : > { %v5339_v51 = vcombine.low %v1356_v35, %v1366_v34  ;;  %v730_v52 = vsel %vm6206_vm9, %v722_v41, %v729_v4  ;;  %v1009_v53 = vsel %vm6214_vm10, %v721_v56, %v1008_v32  ;;  %v5995_v57 = vld [vmem:[#allocation2 + $0xb4] sm:$0xff]   ;;  %v1381_v44 = vshrl.u32 %v1254_v6, 16 }
  0x62   : > { %1010 = vst [vmem:[#allocation2 + $0x30] sm:$0xf] %v1009_v53  ;;  %1011 = vst.msk [vmem:[#allocation2 + $0x34] sm:$0xf] %vm460_vm0, %v730_v52  ;;  %v1005_v58 = vld [vmem:[#allocation2 + $0x2c] sm:$0x1]  ;;  %v1374_v10 = vor.u32 %v1373_v29, %v1370_v47  ;;  %v5619_v45 = vunpack.c.l.bf16 %v5668_v48  ;;  %v5620_v26 = vunpack.c.h.bf16 %v5668_v48  ;;  %2223 = vrot.lane.b32.xlu1 %v5995_v57, %s6088_s7  ;;  %v371_v61 = vmul.f32 %v5663_v60, %v6164_v12 }
  0x63   : > { %1731 = vrot.lane.b32.xlu0 %v5339_v51, %s6088_s7  ;;  %v1006_v13 = vsel %vm6135_vm3, %v714_v30, %v1005_v58  ;;  %v521_v35 = vsel %vm6135_vm3, 0, %v520_v40  ;;  %v1289_v37 = vld [vmem:[#allocation2 + $0xb4] sm:$0xf]  ;;  %v1383_v2 = vrot.slane %v1381_v44, 4  ;;  %v372_v5 = vmul.f32 %v5664_v63, %v6164_v12  ;;  %v6478_v52 = vld [vmem:[%s7985_s1] ss:$0 sm:$0xff] }
  0x64   : > { %1007 = vst [vmem:[#allocation2 + $0x2c] sm:$0x1] %v1006_v13  ;;  %v6443_v0 = vrot.slane %v1374_v10, 4  ;;  %522 = vst [vmem:[#allocation2 + $0xc0] sm:$0x1] %v521_v35  ;;  %v6451_v30 = vld [vmem:[%s6154_s26 + $0x30] sm:$0xff]   ;;  %v349_v6 = vmul.f32 %v5619_v45, %v6164_v12  ;;  %v350_v7 = vmul.f32 %v5620_v26, %v6164_v12  ;;  %v410_v20 = vadd.f32 %v6176_v22, %v371_v61 }
  0x65   : > { %v488_v9 = vsel %vm6135_vm3, 0, %v487_v49  ;;  %v574_v50 = vsel %vm6142_vm5, 0, %v573_v33  ;;  %v1384_v15 = vor.u32 %v1383_v2, %v6432_v54  ;;  %v411_v21 = vadd.f32 %v6176_v22, %v372_v5  ;;  %v1290_v26 = vld [vmem:[#allocation2 + $0xb8] sm:$0xf] }
  0x66   : > { %v1288_v11 = vld [vmem:[#allocation2 + $0xb0] sm:$0x1]  ;;  %v1380_v14 = vsel %vm6222_vm11, %v6443_v0, %v6432_v54  ;;  %489 = vst [vmem:[#allocation2 + $0x3c] sm:$0x1] %v488_v9  ;;  %575 = vst [vmem:[#allocation2 + $0xbc] sm:$0x1] %v574_v50  ;;  %v388_v25 = vadd.f32 %v6176_v22, %v349_v6  ;;  %v389_v28 = vadd.f32 %v6176_v22, %v350_v7  ;;  %v5623_v40 = vunpack.c.l.bf16 %v6448_v24 }
  0x67   : > { %v1651_v12 = vshll.u32 %v1288_v11, 16  ;;  %v1656_v31 = vshrl.u32 %v1289_v37, 16  ;;  %v1385_v36 = vrot.slane %v1384_v15, 4  ;;  %v442_v43 = vmax.f32 %v410_v20, 0.0  ;;  %v540_v9 = vld [vmem:[#allocation2 + $0x38] sm:$0x1] }
  0x68   : > { %v443_v32 = vmax.f32 %v411_v21, 0.0  ;;  %v1659_v19 = vshll.u32 %v1289_v37, 16  ;;  %v5624_v56 = vunpack.c.h.bf16 %v6448_v24  ;;  %v5627_v41 = vunpack.c.l.bf16 %v6451_v30  ;;  %v7018_v11 = vld [vmem:[#allocation2 + $0x4] sm:$0xf] }
  0x69   : > { %v5996_v17 = vld [vmem:[#allocation2 + $0x30] sm:$0xff]   ;;  %v1653_v39 = vrot.slane %v1651_v12, 5  ;;  %v5599_v4 = vpack.c.bf16 %v442_v43, %v442_v43  ;;  %v420_v47 = vmax.f32 %v388_v25, 0.0  ;;  %v421_v29 = vmax.f32 %v389_v28, 0.0 }
  0x6a   : > { %v5600_v34 = vpack.c.bf16 %v443_v32, %v443_v32  ;;  %2201 = vrot.lane.b32.xlu0 %v5996_v17, %s6088_s7  ;;  %v1658_v49 = vrot.slane %v1656_v31, 4  ;;  %v1661_v51 = vrot.slane %v1659_v19, 5  ;;  %v6481_v53 = vmul.f32 %v6478_v52, %v5623_v40  ;;  %v1256_v46 = vld [vmem:[#allocation2 + $0x30] sm:$0xf]  ;;  %v1257_v21 = vld [vmem:[#allocation2 + $0x34] sm:$0xf] }
  0x6b   : > { %v1654_v22 = vsel %vm6222_vm11, %v6420_v55, %v1653_v39  ;;  %v1255_v48 = vld [vmem:[#allocation2 + $0x2c] sm:$0x1]  ;;  %v920_v57 = vshrl.u32 %v5599_v4, 16  ;;  %v923_v55 = vshll.u32 %v5599_v4, 16  ;;  %v5577_v44 = vpack.c.bf16 %v420_v47, %v420_v47  ;;  %v3236_v19 = vld [vmem:[#allocation2 + $0x18] sm:$0xf] }
  0x6c   : > { %v5351_v54 = vcombine.low %v1644_v38, %v1654_v22  ;;  %v1387_v33 = vshll.u32 %v1255_v48, 16  ;;  %v928_v58 = vshrl.u32 %v5600_v34, 16  ;;  %v931_v10 = vshll.u32 %v5600_v34, 16  ;;  %v1092_v38 = vld [vmem:[#allocation2 + $0xc0] sm:$0xf] }
  0x6d   : > { %v5578_v60 = vpack.c.bf16 %v421_v29, %v421_v29  ;;  %v1089_v63 = vld [vmem:[#allocation2 + $0xbc] sm:$0x1]  ;;  %v922_v35 = vrot.slane %v920_v57, 7  ;;  %v1662_v62 = vor.u32 %v1661_v51, %v1658_v49  ;;  %v733_v37 = vshrl.u32 %v5577_v44, 16 }
  0x6e   : > { %1755 = vrot.lane.b32.xlu1 %v5351_v54, %s6088_s7  ;;  %v1389_v13 = vrot.slane %v1387_v33, 5  ;;  %v1090_v45 = vsel %vm6135_vm3, %v918_v59, %v1089_v63  ;;  %v6493_v18 = vrot.slane %v928_v58, 7  ;;  %v736_v0 = vshll.u32 %v5577_v44, 16  ;;  %v1015_v20 = vld [vmem:[#allocation2 + $0x3c] sm:$0xf] }
  0x6f   : > { %v741_v2 = vshrl.u32 %v5578_v60, 16  ;;  %1091 = vst [vmem:[#allocation2 + $0xbc] sm:$0x1] %v1090_v45  ;;  %v925_v5 = vor.u32 %v923_v55, %v922_v35  ;;  %v926_v6 = vrot.slane %v922_v35, 4  ;;  %v744_v7 = vshll.u32 %v5578_v60, 16 }
  0x70   : > { %8008 = vst [vmem:[#allocation6_spill] sm:$0xff] %v6493_v18  ;;  %v1390_v61 = vsel %vm6222_vm11, %v1385_v36, %v1389_v13  ;;  %v933_v59 = vor.u32 %v931_v10, %v6493_v18  ;;  %v735_v15 = vrot.slane %v733_v37, 7  ;;  %v1663_v28 = vrot.slane %v1662_v62, 4  ;;  %v3237_v34 = vld [vmem:[#allocation2 + $0x1c] sm:$0xf] }
  0x71   : > { %v5340_v50 = vcombine.low %v1380_v14, %v1390_v61  ;;  %v1093_v12 = vsel %vm6214_vm10, %v925_v5, %v1092_v38  ;;  %v6501_v25 = vrot.slane %v741_v2, 7  ;;  %v1665_v31 = vshll.u32 %v1290_v26, 16  ;;  %v3238_v55 = vld [vmem:[#allocation2 + $0x20] sm:$0x1] }
  0x72   : > { %v934_v36 = vsel %vm6206_vm9, %v926_v6, %v933_v59  ;;  %1094 = vst [vmem:[#allocation2 + $0xc0] sm:$0xf] %v1093_v12  ;;  %v738_v14 = vor.u32 %v736_v0, %v735_v15  ;;  %v739_v43 = vrot.slane %v735_v15, 4  ;;  %v1669_v32 = vshrl.u32 %v1290_v26, 16  ;;  %v490_v0 = vld [vmem:[#allocation2 + $0x48] sm:$0x1] }
  0x73   : > { %1733 = vrot.lane.b32.xlu0 %v5340_v50, %s6088_s7  ;;  %1095 = vst.msk [vmem:[#allocation2 + $0xc4] sm:$0xf] %vm460_vm0, %v934_v36  ;;  %v746_v17 = vor.u32 %v744_v7, %v6501_v25  ;;  %v748_v39 = vrot.slane %v6501_v25, 4  ;;  %v1667_v40 = vrot.slane %v1665_v31, 5  ;;  %v541_v4 = vsel %vm6142_vm5, 0, %v540_v9 }
  0x74   : > { %v1016_v47 = vsel %vm6214_vm10, %v738_v14, %v1015_v20  ;;  %v1671_v29 = vrot.slane %v1669_v32, 4  ;;  %542 = vst [vmem:[#allocation2 + $0x38] sm:$0x1] %v541_v4  ;;  %v1392_v22 = vshrl.u32 %v1256_v46, 16  ;;  %v1395_v48 = vshll.u32 %v1256_v46, 16  ;;  %v6006_v32 = vld [vmem:[%s7987_s3 + $0x40] sm:$0xff]  }
  0x75   : > { %v747_v49 = vsel %vm6206_vm9, %v739_v43, %v746_v17  ;;  %1017 = vst [vmem:[#allocation2 + $0x3c] sm:$0xf] %v1016_v47  ;;  %v1668_v54 = vsel %vm6222_vm11, %v1663_v28, %v1667_v40  ;;  %v1401_v33 = vshll.u32 %v1257_v21, 16  ;;  %v1405_v57 = vshrl.u32 %v1257_v21, 16  ;;  %v2771_v7 = vld [vmem:[#allocation2 + $0xc] sm:$0xe]  ;;  %5680 = vmatprep.subr.bf16.mxu0 %v6006_v32  ;;  %5964 = vmatprep.subr.bf16.mxu1 %v6006_v32 }
  0x76   : > { %v1291_v51 = vld [vmem:[#allocation2 + $0xbc] sm:$0x1]  ;;  %1018 = vst.msk [vmem:[#allocation2 + $0x40] sm:$0xf] %vm460_vm0, %v747_v49  ;;  %v1672_v58 = vor.u32 %v1671_v29, %v1667_v40  ;;  %v1394_v44 = vrot.slane %v1392_v22, 4  ;;  %v1397_v60 = vrot.slane %v1395_v48, 5 }
  0x77   : > { %v1675_v10 = vshll.u32 %v1291_v51, 16  ;;  %v6518_v63 = vrot.slane %v1401_v33, 5  ;;  %v1407_v13 = vrot.slane %v1405_v57, 4  ;;  %v3285_v35 = vshrl.u32 %v3236_v19, 16  ;;  %v2772_v9 = vld [vmem:[#allocation2 + $0x10] sm:$0xf] }
  0x78   : > { %v3288_v45 = vshll.u32 %v3236_v19, 16  ;;  %v1673_v26 = vrot.slane %v1672_v58, 4  ;;  %v1398_v38 = vor.u32 %v1397_v60, %v1394_v44  ;;  %v3294_v37 = vshll.u32 %v3237_v34, 16  ;;  %v2773_v46 = vld [vmem:[#allocation2 + $0x14] sm:$0x1]  ;;  %v6007_v19 = vld [vmem:[%s7987_s3] sm:$0xff]  }
  0x79   : > { %v1677_v62 = vrot.slane %v1675_v10, 5  ;;  %v1408_v2 = vor.u32 %v1407_v13, %v6518_v63  ;;  %v3287_v61 = vrot.slane %v3285_v35, 4  ;;  %v3298_v6 = vshrl.u32 %v3237_v34, 16  ;;  %v543_v12 = vld [vmem:[#allocation2 + $0x44] sm:$0x1]  ;;  %v6008_v29 = vld [vmem:[%s7987_s3 + $0x48] sm:$0xff]   ;;  %5681 = vmatpush3.bf16.msra.mxu0 %v6007_v19  ;;  %5972 = vmatpush3.bf16.msra.mxu1 %v6007_v19 }
  0x7a   : > { %v3290_v5 = vrot.slane %v3288_v45, 5  ;;  %v5997_v50 = vld [vmem:[#allocation2 + $0xc0] sm:$0xff]   ;;  %v6523_v15 = vrot.slane %v1398_v38, 4  ;;  %v3296_v20 = vrot.slane %v3294_v37, 5  ;;  %v3304_v21 = vshll.u32 %v3238_v55, 16  ;;  %5682 = vmatprep.subr.bf16.mxu0 %v6008_v29  ;;  %v6010_v13 = vld [vmem:[%s7987_s3 + $0x50] sm:$0xff]   ;;  %5965 = vmatprep.subr.bf16.mxu1 %v6008_v29 }
  0x7b   : > { %v1678_v59 = vsel %vm6222_vm11, %v1673_v26, %v1677_v62  ;;  %v1012_v31 = vld [vmem:[#allocation2 + $0x38] sm:$0x1]  ;;  %v6525_v36 = vrot.slane %v1408_v2, 4  ;;  %v3300_v43 = vrot.slane %v3298_v6, 4  ;;  %2225 = vrot.lane.b32.xlu1 %v5997_v50, %s6088_s7  ;;  %v352_v34 = vmul.f32 %v6478_v52, %v5624_v56 }
  0x7c   : > { %v5352_v28 = vcombine.low %v1668_v54, %v1678_v59  ;;  %v3291_v14 = vor.u32 %v3290_v5, %v3287_v61  ;;  %v1013_v17 = vsel %vm6135_vm3, %v731_v42, %v1012_v31  ;;  %v1404_v40 = vsel %vm6222_vm11, %v6523_v15, %v6518_v63  ;;  %v1259_v47 = vld [vmem:[#allocation2 + $0x3c] sm:$0xf]  ;;  %v6551_v42 = vld [vmem:[%s7986_s2] ss:$0 sm:$0xff] }
  0x7d   : > { %v3306_v4 = vrot.slane %v3304_v21, 5  ;;  %v5998_v22 = vld [vmem:[#allocation2 + $0x3c] sm:$0xff]   ;;  %1014 = vst [vmem:[#allocation2 + $0x38] sm:$0x1] %v1013_v17  ;;  %v3301_v48 = vor.u32 %v3300_v43, %v3296_v20  ;;  %v390_v49 = vadd.f32 %v6551_v42, %v6481_v53  ;;  %v491_v24 = vsel %vm6135_vm3, 0, %v490_v0  ;;  %v6009_v53 = vld [vmem:[%s7987_s3 + $0x8] sm:$0xff]  }
  0x7e   : > { %v3292_v23 = vrot.slane %v3291_v14, 4  ;;  %v391_v51 = vadd.f32 %v6551_v42, %v352_v34  ;;  %492 = vst [vmem:[#allocation2 + $0x48] sm:$0x1] %v491_v24  ;;  %v5417_v54 = vrot.slane %v2771_v7, 9  ;;  %v2869_v33 = vrot.slane %v2772_v9, 5  ;;  %2203 = vrot.lane.b32.xlu0 %v5998_v22, %s6088_s7  ;;  %5683 = vmatpush3.bf16.msra.mxu0 %v6009_v53  ;;  %v6013_v29 = vld [vmem:[%s7987_s3 + $0x18] sm:$0xff]  }
  0x7f   : > { %v2872_v57 = vrot.slane %v2773_v46, 5  ;;  %v1260_v55 = vld [vmem:[#allocation2 + $0x40] sm:$0xf]  ;;  %v3302_v10 = vrot.slane %v3301_v48, 4  ;;  %v422_v44 = vmax.f32 %v390_v49, 0.0  ;;  %v544_v60 = vsel %vm6142_vm5, 0, %v543_v12  ;;  %1757 = vrot.lane.b32.xlu1 %v5352_v28, %s6088_s7  ;;  %5973 = vmatpush3.bf16.msra.mxu1 %v6009_v53 }
  0x80   : > { %v3297_v58 = vsel %vm6222_vm11, %v3292_v23, %v3296_v20  ;;  %v423_v35 = vmax.f32 %v391_v51, 0.0  ;;  %v2870_v45 = vsel %vm6559_vm14, %v5417_v54, %v2869_v33  ;;  %v2871_v26 = vrot.slane %v2869_v33, 4  ;;  %545 = vst [vmem:[#allocation2 + $0x44] sm:$0x1] %v544_v60  ;;  %v3239_v9 = vld [vmem:[#allocation2 + $0x24] sm:$0xf]  ;;  %5684 = vmatprep.subr.bf16.mxu0 %v6010_v13  ;;  %5966 = vmatprep.subr.bf16.mxu1 %v6010_v13 }
  0x81   : > { %v1416_v62 = vshrl.u32 %v1259_v47, 16  ;;  %v3307_v38 = vsel %vm6222_vm11, %v3302_v10, %v3306_v4  ;;  %v5579_v37 = vpack.c.bf16 %v422_v44, %v422_v44  ;;  %v1419_v0 = vshll.u32 %v1259_v47, 16  ;;  %v6011_v46 = vld [vmem:[%s7987_s3 + $0x10] sm:$0xff]   ;;  %v6585_v12 = vld [vmem:[#allocation2 + $0x28] sm:$0xf]  ;;  %v6012_v28 = vld [vmem:[%s7987_s3 + $0x58] sm:$0xff]  }
  0x82   : > { %v1425_v2 = vshll.u32 %v1260_v55, 16  ;;  %v5465_v61 = vcombine.low %v3297_v58, %v3307_v38  ;;  %v5580_v5 = vpack.c.bf16 %v423_v35, %v423_v35  ;;  %v2873_v6 = vsel %vm6559_vm14, %v2871_v26, %v2872_v57  ;;  %5685 = vmatpush3.bf16.msra.mxu0 %v6011_v46  ;;  %v6014_v53 = vld [vmem:[%s7987_s3 + $0x60] sm:$0xff]   ;;  %v3241_v13 = vld [vmem:[#allocation2 + $0x2c] sm:$0x1]  ;;  %v493_v35 = vld [vmem:[#allocation2 + $0x54] sm:$0x1] }
  0x83   : > { %v1418_v7 = vrot.slane %v1416_v62, 4  ;;  %v750_v50 = vshrl.u32 %v5579_v37, 16  ;;  %v753_v59 = vshll.u32 %v5579_v37, 16  ;;  %v5433_v20 = vcombine.low %v2870_v45, %v2873_v6  ;;  %5974 = vmatpush3.bf16.msra.mxu1 %v6011_v46  ;;  %5686 = vmatprep.subr.bf16.mxu0 %v6012_v28  ;;  %v2774_v38 = vld [vmem:[#allocation2 + $0x18] sm:$0xe] }
  0x84   : > { %v1421_v21 = vrot.slane %v1419_v0, 5  ;;  %v1258_v31 = vld [vmem:[#allocation2 + $0x38] sm:$0x1]  ;;  %3716 = vrot.lane.b32.xlu1 %v5465_v61, %s6088_s7  ;;  %v758_v14 = vshrl.u32 %v5580_v5, 16  ;;  %v761_v43 = vshll.u32 %v5580_v5, 16  ;;  %v6591_v32 = vrot.slane %v1425_v2, 5  ;;  %5967 = vmatprep.subr.bf16.mxu1 %v6012_v28 }
  0x85   : > { %v1429_v19 = vshrl.u32 %v1260_v55, 16  ;;  %v1411_v17 = vshll.u32 %v1258_v31, 16  ;;  %v752_v4 = vrot.slane %v750_v50, 7  ;;  %v3309_v47 = vshrl.u32 %v3239_v9, 16  ;;  %v1022_v23 = vld [vmem:[#allocation2 + $0x48] sm:$0xf] }
  0x86   : > { %v1422_v34 = vor.u32 %v1421_v21, %v1418_v7  ;;  %v6596_v22 = vrot.slane %v758_v14, 7  ;;  %v3312_v49 = vshll.u32 %v3239_v9, 16  ;;  %v3318_v24 = vshll.u32 %v6585_v12, 16  ;;  %v2775_v61 = vld [vmem:[#allocation2 + $0x1c] sm:$0xf]  ;;  %5687 = vmatpush3.bf16.msra.mxu0 %v6013_v29  ;;  %v6015_v5 = vld [vmem:[%s7987_s3 + $0x20] sm:$0xff]  }
  0x87   : > { %v1431_v48 = vrot.slane %v1429_v19, 4  ;;  %v1413_v51 = vrot.slane %v1411_v17, 5  ;;  %v755_v54 = vor.u32 %v753_v59, %v752_v4  ;;  %v756_v33 = vrot.slane %v752_v4, 4  ;;  %v1019_v57 = vld [vmem:[#allocation2 + $0x44] sm:$0x1]  ;;  %5975 = vmatpush3.bf16.msra.mxu1 %v6013_v29  ;;  %5688 = vmatprep.subr.bf16.mxu0 %v6014_v53  ;;  %v6016_v9 = vld [vmem:[%s7987_s3 + $0x68] sm:$0xff]  }
  0x88   : > { %v6599_v55 = vrot.slane %v1422_v34, 4  ;;  %v763_v58 = vor.u32 %v761_v43, %v6596_v22  ;;  %v765_v10 = vrot.slane %v6596_v22, 4  ;;  %3027 = vrot.lane.b32.xlu1 %v5433_v20, %s6088_s7  ;;  %v1020_v44 = vsel %vm6135_vm3, %v748_v39, %v1019_v57  ;;  %v546_v39 = vld [vmem:[#allocation2 + $0x50] sm:$0x1]  ;;  %v2776_v7 = vld [vmem:[#allocation2 + $0x20] sm:$0x1]  ;;  %5968 = vmatprep.subr.bf16.mxu1 %v6014_v53 }
  0x89   : > { %v1432_v60 = vor.u32 %v1431_v48, %v6591_v32  ;;  %v1414_v45 = vsel %vm6222_vm11, %v6525_v36, %v1413_v51  ;;  %v1023_v26 = vsel %vm6214_vm10, %v755_v54, %v1022_v23  ;;  %1021 = vst [vmem:[#allocation2 + $0x44] sm:$0x1] %v1020_v44  ;;  %v3311_v62 = vrot.slane %v3309_v47, 4  ;;  %v6648_v14 = vld [vmem:[#allocation2 + $0x30] sm:$0xf]  ;;  %v6663_v23 = vld [vmem:[%s6154_s26 + $0x38] sm:$0xff]  }
  0x8a   : > { %v1428_v25 = vsel %vm6222_vm11, %v6599_v55, %v6591_v32  ;;  %v5341_v37 = vcombine.low %v1404_v40, %v1414_v45  ;;  %v764_v36 = vsel %vm6206_vm9, %v756_v33, %v763_v58  ;;  %1024 = vst [vmem:[#allocation2 + $0x48] sm:$0xf] %v1023_v26  ;;  %v3314_v2 = vrot.slane %v3312_v49, 5  ;;  %5689 = vmatpush3.bf16.msra.mxu0 %v6015_v5  ;;  %v6019_v48 = vld [vmem:[%s7987_s3 + $0x70] sm:$0xff]   ;;  %v3244_v22 = vld [vmem:[#allocation2 + $0x38] sm:$0x1] }
  0x8b   : > { %v6628_v0 = vrot.slane %v1432_v60, 4  ;;  %1025 = vst.msk [vmem:[#allocation2 + $0x4c] sm:$0xf] %vm460_vm0, %v764_v36  ;;  %v6634_v6 = vrot.slane %v3318_v24, 5  ;;  %v3322_v63 = vshrl.u32 %v6585_v12, 16  ;;  %v3328_v15 = vshll.u32 %v3241_v13, 16  ;;  %5976 = vmatpush3.bf16.msra.mxu1 %v6015_v5  ;;  %5690 = vmatprep.subr.bf16.mxu0 %v6016_v9 }
  0x8c   : > { %v5628_v40 = vunpack.c.h.bf16 %v6451_v30  ;;  %1735 = vrot.lane.b32.xlu0 %v5341_v37, %s6088_s7  ;;  %v3315_v46 = vor.u32 %v3314_v2, %v3311_v62  ;;  %v353_v50 = vmul.f32 %v6478_v52, %v5627_v41  ;;  %v494_v59 = vsel %vm6135_vm3, 0, %v493_v35  ;;  %v6017_v41 = vld [vmem:[%s7987_s3 + $0x28] sm:$0xff]   ;;  %5969 = vmatprep.subr.bf16.mxu1 %v6016_v9  ;;  %v6020_v60 = vld [vmem:[%s7987_s3 + $0x30] sm:$0xff]   ;;  %v6021_v5 = vld [vmem:[%s7987_s3 + $0x78] sm:$0xff]  }
  0x8d   : > { %v5418_v20 = vrot.slane %v2774_v38, 9  ;;  %v3324_v21 = vrot.slane %v3322_v63, 4  ;;  %v3330_v12 = vrot.slane %v3328_v15, 5  ;;  %495 = vst [vmem:[#allocation2 + $0x54] sm:$0x1] %v494_v59  ;;  %v2876_v31 = vrot.slane %v2775_v61, 5 }
  0x8e   : > { %v354_v28 = vmul.f32 %v6478_v52, %v5628_v40  ;;  %v3316_v43 = vrot.slane %v3315_v46, 4  ;;  %v392_v19 = vadd.f32 %v6551_v42, %v353_v50  ;;  %v2879_v17 = vrot.slane %v2776_v7, 5  ;;  %5691 = vmatpush3.bf16.msra.mxu0 %v6017_v41  ;;  %v3243_v59 = vld [vmem:[#allocation2 + $0x34] sm:$0xf] }
  0x8f   : > { %v547_v30 = vsel %vm6142_vm5, 0, %v546_v39  ;;  %v3325_v4 = vor.u32 %v3324_v21, %v6634_v6  ;;  %v6660_v47 = vsel %vm6559_vm14, %v5418_v20, %v2876_v31  ;;  %v2878_v29 = vrot.slane %v2876_v31, 4  ;;  %5977 = vmatpush3.bf16.msra.mxu1 %v6017_v41  ;;  %5692 = vmatprep.subr.bf16.mxu0 %v6019_v48 }
  0x90   : > { %v393_v34 = vadd.f32 %v6551_v42, %v354_v28  ;;  %548 = vst [vmem:[#allocation2 + $0x50] sm:$0x1] %v547_v30  ;;  %v1261_v49 = vld [vmem:[#allocation2 + $0x44] sm:$0x1]  ;;  %v3321_v24 = vsel %vm6222_vm11, %v3316_v43, %v6634_v6  ;;  %v424_v51 = vmax.f32 %v392_v19, 0.0  ;;  %v3333_v54 = vshrl.u32 %v6648_v14, 16  ;;  %5970 = vmatprep.subr.bf16.mxu1 %v6019_v48 }
  0x91   : > { %v3336_v33 = vshll.u32 %v6648_v14, 16  ;;  %v1435_v57 = vshll.u32 %v1261_v49, 16  ;;  %v3326_v53 = vrot.slane %v3325_v4, 4  ;;  %v2880_v44 = vsel %vm6559_vm14, %v2878_v29, %v2879_v17  ;;  %v1262_v26 = vld [vmem:[#allocation2 + $0x48] sm:$0xf]  ;;  %v6026_v19 = vld [vmem:[%s7987_s3 + $0x100] sm:$0xff]  }
  0x92   : > { %v425_v58 = vmax.f32 %v393_v34, 0.0  ;;  %v5999_v13 = vld [vmem:[#allocation2 + $0x48] sm:$0xff]   ;;  %v5581_v35 = vpack.c.bf16 %v424_v51, %v424_v51  ;;  %v5434_v45 = vcombine.low %v6660_v47, %v2880_v44  ;;  %v3335_v62 = vrot.slane %v3333_v54, 4  ;;  %5693 = vmatpush3.bf16.msra.mxu0 %v6020_v60 }
  0x93   : > { %v5631_v38 = vunpack.c.l.bf16 %v6663_v23  ;;  %v1437_v39 = vrot.slane %v1435_v57, 5  ;;  %v3331_v37 = vsel %vm6222_vm11, %v3326_v53, %v3330_v12  ;;  %v1263_v2 = vld [vmem:[#allocation2 + $0x4c] sm:$0xf]  ;;  %v1440_v61 = vshrl.u32 %v1262_v26, 16  ;;  %2205 = vrot.lane.b32.xlu0 %v5999_v13, %s6088_s7  ;;  %5694 = vmatprep.subr.bf16.mxu0 %v6021_v5  ;;  %v549_v13 = vld [vmem:[#allocation2 + $0x5c] sm:$0x1] }
  0x94   : > { %v5582_v36 = vpack.c.bf16 %v425_v58, %v425_v58  ;;  %v5466_v6 = vcombine.low %v3321_v24, %v3331_v37  ;;  %v767_v63 = vshrl.u32 %v5581_v35, 16  ;;  %v770_v15 = vshll.u32 %v5581_v35, 16  ;;  %v1029_v43 = vld [vmem:[#allocation2 + $0x54] sm:$0xf]  ;;  %5978 = vmatpush3.bf16.msra.mxu1 %v6020_v60  ;;  %v2777_v60 = vld [vmem:[#allocation2 + $0x24] sm:$0xe] }
  0x95   : > { %v1443_v40 = vshll.u32 %v1262_v26, 16  ;;  %v1438_v7 = vsel %vm6222_vm11, %v6628_v0, %v1437_v39  ;;  %v1442_v50 = vrot.slane %v1440_v61, 4  ;;  %v1449_v31 = vshll.u32 %v1263_v2, 16  ;;  %v6022_v0 = vld [vmem:[%s7987_s3 + $0x38] sm:$0xff]   ;;  %5971 = vmatprep.subr.bf16.mxu1 %v6021_v5  ;;  %v2778_v39 = vld [vmem:[#allocation2 + $0x28] sm:$0xf] }
  0x96   : > { %v775_v9 = vshrl.u32 %v5582_v36, 16  ;;  %v778_v46 = vshll.u32 %v5582_v36, 16  ;;  %v5342_v20 = vcombine.low %v1428_v25, %v1438_v7  ;;  %3718 = vrot.lane.b32.xlu1 %v5466_v6, %s6088_s7  ;;  %v769_v21 = vrot.slane %v767_v63, 7  ;;  %5695 = vmatpush3.bf16.msra.mxu0 %v6022_v0  ;;  %v2779_v37 = vld [vmem:[#allocation2 + $0x2c] sm:$0x1] }
  0x97   : > { %v1026_v12 = vld [vmem:[#allocation2 + $0x50] sm:$0x1]  ;;  %v1445_v28 = vrot.slane %v1443_v40, 5  ;;  %v1453_v55 = vshrl.u32 %v1263_v2, 16  ;;  %v3338_v25 = vrot.slane %v3336_v33, 5  ;;  %v6708_v4 = vrot.slane %v1449_v31, 5  ;;  %5924 = vmatprep.subr.bf16.mxu0 %v6026_v19 }
  0x98   : > { %v6698_v14 = vrot.slane %v775_v9, 7  ;;  %v1027_v32 = vsel %vm6135_vm3, %v765_v10, %v1026_v12  ;;  %1737 = vrot.lane.b32.xlu0 %v5342_v20, %s6088_s7  ;;  %v772_v17 = vor.u32 %v770_v15, %v769_v21  ;;  %v773_v30 = vrot.slane %v769_v21, 4  ;;  %v6025_v10 = vld [vmem:[%s7987_s3 + $0xc0] sm:$0xff]   ;;  %5979 = vmatpush3.bf16.msra.mxu1 %v6022_v0  ;;  %v3245_v6 = vld [vmem:[#allocation2 + $0x3c] sm:$0xf] }
  0x99   : > { %1028 = vst [vmem:[#allocation2 + $0x50] sm:$0x1] %v1027_v32  ;;  %v1446_v41 = vor.u32 %v1445_v28, %v1442_v50  ;;  %v1455_v29 = vrot.slane %v1453_v55, 4  ;;  %v3339_v48 = vor.u32 %v3338_v25, %v3335_v62  ;;  %v3342_v51 = vshll.u32 %v3243_v59, 16  ;;  %v496_v33 = vld [vmem:[#allocation2 + $0x60] sm:$0x1]  ;;  %5792 = vmatprep.subr.bf16.mxu1 %v6025_v10 }
  0x9a   : > { %v780_v34 = vor.u32 %v778_v46, %v6698_v14  ;;  %v782_v47 = vrot.slane %v6698_v14, 4  ;;  %v1030_v49 = vsel %vm6214_vm10, %v772_v17, %v1029_v43  ;;  %3029 = vrot.lane.b32.xlu1 %v5434_v45, %s6088_s7  ;;  %v3346_v54 = vshrl.u32 %v3243_v59, 16 }
  0x9b   : > { %v6718_v24 = vrot.slane %v1446_v41, 4  ;;  %1031 = vst [vmem:[#allocation2 + $0x54] sm:$0xf] %v1030_v49  ;;  %v1456_v53 = vor.u32 %v1455_v29, %v6708_v4  ;;  %v3340_v58 = vrot.slane %v3339_v48, 4  ;;  %v3352_v44 = vshll.u32 %v3244_v22, 16 }
  0x9c   : > { %v781_v57 = vsel %vm6206_vm9, %v773_v30, %v780_v34  ;;  %v3344_v45 = vrot.slane %v3342_v51, 5  ;;  %v3348_v26 = vrot.slane %v3346_v54, 4  ;;  %v5632_v62 = vunpack.c.h.bf16 %v6663_v23 }
  0x9d   : > { %1032 = vst.msk [vmem:[#allocation2 + $0x58] sm:$0xf] %vm460_vm0, %v781_v57  ;;  %v1452_v35 = vsel %vm6222_vm11, %v6718_v24, %v6708_v4  ;;  %v1457_v36 = vrot.slane %v1456_v53, 4  ;;  %v3354_v2 = vrot.slane %v3352_v44, 5  ;;  %v355_v61 = vmul.f32 %v6478_v52, %v5631_v38  ;;  %v6741_v38 = vld [vmem:[%s6154_s26 + $0x40] sm:$0xff]  }
  0x9e   : > { %v497_v5 = vsel %vm6135_vm3, 0, %v496_v33  ;;  %v3345_v63 = vsel %vm6222_vm11, %v3340_v58, %v3344_v45  ;;  %v3349_v15 = vor.u32 %v3348_v26, %v3344_v45  ;;  %v356_v40 = vmul.f32 %v6478_v52, %v5632_v62  ;;  %v3246_v45 = vld [vmem:[#allocation2 + $0x40] sm:$0xf] }
  0x9f   : > { %498 = vst [vmem:[#allocation2 + $0x60] sm:$0x1] %v497_v5  ;;  %v5419_v7 = vrot.slane %v2777_v60, 9  ;;  %v394_v46 = vadd.f32 %v6551_v42, %v355_v61  ;;  %v2883_v50 = vrot.slane %v2778_v39, 5  ;;  %v2886_v59 = vrot.slane %v2779_v37, 5 }
  0xa0   : > { %v1264_v9 = vld [vmem:[#allocation2 + $0x50] sm:$0x1]  ;;  %v550_v23 = vsel %vm6142_vm5, 0, %v549_v13  ;;  %v3350_v21 = vrot.slane %v3349_v15, 4  ;;  %v395_v12 = vadd.f32 %v6551_v42, %v356_v40  ;;  %v3357_v28 = vshrl.u32 %v3245_v6, 16 }
  0xa1   : > { %v1459_v20 = vshll.u32 %v1264_v9, 16  ;;  %551 = vst [vmem:[#allocation2 + $0x5c] sm:$0x1] %v550_v23  ;;  %v426_v31 = vmax.f32 %v394_v46, 0.0  ;;  %v2884_v0 = vsel %vm6559_vm14, %v5419_v7, %v2883_v50  ;;  %v2885_v43 = vrot.slane %v2883_v50, 4 }
  0xa2   : > { %v3360_v32 = vshll.u32 %v3245_v6, 16  ;;  %v3355_v25 = vsel %vm6222_vm11, %v3350_v21, %v3354_v2  ;;  %v427_v19 = vmax.f32 %v395_v12, 0.0  ;;  %v1265_v17 = vld [vmem:[#allocation2 + $0x54] sm:$0xf]  ;;  %v5635_v30 = vunpack.c.l.bf16 %v6741_v38  ;;  %v3247_v7 = vld [vmem:[#allocation2 + $0x44] sm:$0x1] }
  0xa3   : > { %v1461_v55 = vrot.slane %v1459_v20, 5  ;;  %v5467_v4 = vcombine.low %v3345_v63, %v3355_v25  ;;  %v5583_v22 = vpack.c.bf16 %v426_v31, %v426_v31  ;;  %v2887_v10 = vsel %vm6559_vm14, %v2885_v43, %v2886_v59  ;;  %v499_v46 = vld [vmem:[#allocation2 + $0x6c] sm:$0x1]  ;;  %v2780_v50 = vld [vmem:[#allocation2 + $0x30] sm:$0xe] }
  0xa4   : > { %v6000_v41 = vld [vmem:[#allocation2 + $0x54] sm:$0xff]   ;;  %v1464_v29 = vshrl.u32 %v1265_v17, 16  ;;  %v5584_v49 = vpack.c.bf16 %v427_v19, %v427_v19  ;;  %v5435_v24 = vcombine.low %v2884_v0, %v2887_v10  ;;  %v1467_v51 = vshll.u32 %v1265_v17, 16  ;;  %v552_v31 = vld [vmem:[#allocation2 + $0x68] sm:$0x1] }
  0xa5   : > { %v1266_v34 = vld [vmem:[#allocation2 + $0x58] sm:$0xf]  ;;  %v1462_v48 = vsel %vm6222_vm11, %v1457_v36, %v1461_v55  ;;  %2207 = vrot.lane.b32.xlu0 %v6000_v41, %s6088_s7  ;;  %3720 = vrot.lane.b32.xlu1 %v5467_v4, %s6088_s7  ;;  %v784_v33 = vshrl.u32 %v5583_v22, 16  ;;  %v787_v57 = vshll.u32 %v5583_v22, 16  ;;  %v3359_v37 = vrot.slane %v3357_v28, 4 }
  0xa6   : > { %v5343_v54 = vcombine.low %v1452_v35, %v1462_v48  ;;  %v1466_v53 = vrot.slane %v1464_v29, 4  ;;  %v792_v58 = vshrl.u32 %v5584_v49, 16  ;;  %v795_v44 = vshll.u32 %v5584_v49, 16  ;;  %v1036_v61 = vld [vmem:[#allocation2 + $0x60] sm:$0xf] }
  0xa7   : > { %v1469_v60 = vrot.slane %v1467_v51, 5  ;;  %v1473_v13 = vshll.u32 %v1266_v34, 16  ;;  %v786_v26 = vrot.slane %v784_v33, 7  ;;  %v1477_v39 = vshrl.u32 %v1266_v34, 16  ;;  %v2781_v25 = vld [vmem:[#allocation2 + $0x34] sm:$0xf] }
  0xa8   : > { %v1033_v62 = vld [vmem:[#allocation2 + $0x5c] sm:$0x1]  ;;  %v3362_v36 = vrot.slane %v3360_v32, 5  ;;  %v6755_v2 = vrot.slane %v792_v58, 7  ;;  %v3366_v23 = vshll.u32 %v3246_v45, 16  ;;  %v3370_v28 = vshrl.u32 %v3246_v45, 16 }
  0xa9   : > { %v1034_v35 = vsel %vm6135_vm3, %v782_v47, %v1033_v62  ;;  %v1470_v5 = vor.u32 %v1469_v60, %v1466_v53  ;;  %v6761_v6 = vrot.slane %v1473_v13, 5  ;;  %1739 = vrot.lane.b32.xlu0 %v5343_v54, %s6088_s7  ;;  %v789_v63 = vor.u32 %v787_v57, %v786_v26  ;;  %3031 = vrot.lane.b32.xlu1 %v5435_v24, %s6088_s7  ;;  %v2782_v19 = vld [vmem:[#allocation2 + $0x38] sm:$0x1]  ;;  %v3248_v10 = vld [vmem:[#allocation2 + $0x48] sm:$0xf] }
  0xaa   : > { %v790_v15 = vrot.slane %v786_v26, 4  ;;  %1035 = vst [vmem:[#allocation2 + $0x5c] sm:$0x1] %v1034_v35  ;;  %v1479_v40 = vrot.slane %v1477_v39, 4  ;;  %v3363_v9 = vor.u32 %v3362_v36, %v3359_v37  ;;  %v797_v14 = vor.u32 %v795_v44, %v6755_v2 }
  0xab   : > { %v799_v59 = vrot.slane %v6755_v2, 4  ;;  %v1471_v47 = vrot.slane %v1470_v5, 4  ;;  %v1037_v20 = vsel %vm6214_vm10, %v789_v63, %v1036_v61  ;;  %v3368_v32 = vrot.slane %v3366_v23, 5  ;;  %v3249_v23 = vld [vmem:[#allocation2 + $0x4c] sm:$0xf] }
  0xac   : > { %v1480_v21 = vor.u32 %v1479_v40, %v6761_v6  ;;  %v3364_v12 = vrot.slane %v3363_v9, 4  ;;  %v798_v0 = vsel %vm6206_vm9, %v790_v15, %v797_v14  ;;  %1038 = vst [vmem:[#allocation2 + $0x60] sm:$0xf] %v1037_v20  ;;  %v3376_v55 = vshll.u32 %v3247_v7, 16 }
  0xad   : > { %v1476_v43 = vsel %vm6222_vm11, %v1471_v47, %v6761_v6  ;;  %1039 = vst.msk [vmem:[#allocation2 + $0x64] sm:$0xf] %vm460_vm0, %v798_v0  ;;  %v3372_v41 = vrot.slane %v3370_v28, 4  ;;  %v5636_v4 = vunpack.c.h.bf16 %v6741_v38  ;;  %v357_v22 = vmul.f32 %v6478_v52, %v5635_v30 }
  0xae   : > { %v1481_v17 = vrot.slane %v1480_v21, 4  ;;  %v3369_v34 = vsel %vm6222_vm11, %v3364_v12, %v3368_v32  ;;  %v3378_v29 = vrot.slane %v3376_v55, 5  ;;  %v500_v48 = vsel %vm6135_vm3, 0, %v499_v46 }
  0xaf   : > { %v5420_v49 = vrot.slane %v2780_v50, 9  ;;  %v3373_v24 = vor.u32 %v3372_v41, %v3368_v32  ;;  %v358_v51 = vmul.f32 %v6478_v52, %v5636_v4  ;;  %v396_v54 = vadd.f32 %v6551_v42, %v357_v22  ;;  %501 = vst [vmem:[#allocation2 + $0x6c] sm:$0x1] %v500_v48  ;;  %v3250_v48 = vld [vmem:[#allocation2 + $0x50] sm:$0x1] }
  0xb0   : > { %v2890_v33 = vrot.slane %v2781_v25, 5  ;;  %v2893_v38 = vrot.slane %v2782_v19, 5  ;;  %v553_v30 = vsel %vm6142_vm5, 0, %v552_v31  ;;  %v3381_v53 = vshrl.u32 %v3248_v10, 16 }
  0xb1   : > { %v1267_v57 = vld [vmem:[#allocation2 + $0x5c] sm:$0x1]  ;;  %v3384_v58 = vshll.u32 %v3248_v10, 16  ;;  %v3374_v60 = vrot.slane %v3373_v24, 4  ;;  %v397_v13 = vadd.f32 %v6551_v42, %v358_v51  ;;  %v428_v45 = vmax.f32 %v396_v54, 0.0 }
  0xb2   : > { %v1483_v44 = vshll.u32 %v1267_v57, 16  ;;  %554 = vst [vmem:[#allocation2 + $0x68] sm:$0x1] %v553_v30  ;;  %v2891_v52 = vsel %vm6559_vm14, %v5420_v49, %v2890_v33  ;;  %v2892_v26 = vrot.slane %v2890_v33, 4  ;;  %v3383_v62 = vrot.slane %v3381_v53, 4  ;;  %v5673_v33 = vld [vmem:[%s6154_s26 + $0x48] sm:$0xff]  }
  0xb3   : > { %v3386_v39 = vrot.slane %v3384_v58, 5  ;;  %v3379_v36 = vsel %vm6222_vm11, %v3374_v60, %v3378_v29  ;;  %v429_v61 = vmax.f32 %v397_v13, 0.0  ;;  %v5585_v35 = vpack.c.bf16 %v428_v45, %v428_v45  ;;  %v1268_v5 = vld [vmem:[#allocation2 + $0x60] sm:$0xf]  ;;  %v502_v30 = vld [vmem:[#allocation2 + $0x78] sm:$0x1] }
  0xb4   : > { %v1485_v37 = vrot.slane %v1483_v44, 5  ;;  %v6001_v6 = vld [vmem:[#allocation2 + $0x60] sm:$0xff]   ;;  %v5468_v63 = vcombine.low %v3369_v34, %v3379_v36  ;;  %v2894_v15 = vsel %vm6559_vm14, %v2892_v26, %v2893_v38  ;;  %v1488_v7 = vshrl.u32 %v1268_v5, 16  ;;  %v555_v53 = vld [vmem:[#allocation2 + $0x74] sm:$0x1] }
  0xb5   : > { %v1269_v40 = vld [vmem:[#allocation2 + $0x64] sm:$0xf]  ;;  %v3387_v9 = vor.u32 %v3386_v39, %v3383_v62  ;;  %v5586_v50 = vpack.c.bf16 %v429_v61, %v429_v61  ;;  %v801_v14 = vshrl.u32 %v5585_v35, 16  ;;  %v804_v47 = vshll.u32 %v5585_v35, 16  ;;  %2209 = vrot.lane.b32.xlu0 %v6001_v6, %s6088_s7  ;;  %v2783_v45 = vld [vmem:[#allocation2 + $0x3c] sm:$0xe] }
  0xb6   : > { %v1486_v46 = vsel %vm6222_vm11, %v1481_v17, %v1485_v37  ;;  %3722 = vrot.lane.b32.xlu1 %v5468_v63, %s6088_s7  ;;  %v5436_v21 = vcombine.low %v2891_v52, %v2894_v15  ;;  %v1490_v12 = vrot.slane %v1488_v7, 4  ;;  %v1491_v28 = vshll.u32 %v1268_v5, 16  ;;  %v1043_v55 = vld [vmem:[#allocation2 + $0x6c] sm:$0xf]  ;;  %v2784_v52 = vld [vmem:[#allocation2 + $0x40] sm:$0xf] }
  0xb7   : > { %v5344_v20 = vcombine.low %v1476_v43, %v1486_v46  ;;  %v803_v31 = vrot.slane %v801_v14, 7  ;;  %v809_v0 = vshrl.u32 %v5586_v50, 16  ;;  %v812_v32 = vshll.u32 %v5586_v50, 16  ;;  %v2785_v36 = vld [vmem:[#allocation2 + $0x44] sm:$0x1]  ;;  %v6836_v50 = vld [vmem:[%s6154_s26 + $0x50] sm:$0xff]  }
  0xb8   : > { %v1497_v25 = vshll.u32 %v1269_v40, 16  ;;  %v1493_v41 = vrot.slane %v1491_v28, 5  ;;  %v1501_v17 = vshrl.u32 %v1269_v40, 16  ;;  %v6797_v4 = vrot.slane %v3387_v9, 4  ;;  %v6820_v61 = vld [vmem:[#allocation2 + $0x54] sm:$0xf] }
  0xb9   : > { %v1040_v19 = vld [vmem:[#allocation2 + $0x68] sm:$0x1]  ;;  %v3390_v22 = vshll.u32 %v3249_v23, 16  ;;  %v806_v10 = vor.u32 %v804_v47, %v803_v31  ;;  %v807_v34 = vrot.slane %v803_v31, 4  ;;  %v6799_v43 = vrot.slane %v809_v0, 7  ;;  %1741 = vrot.lane.b32.xlu0 %v5344_v20, %s6088_s7 }
  0xba   : > { %v1041_v29 = vsel %vm6135_vm3, %v799_v59, %v1040_v19  ;;  %3033 = vrot.lane.b32.xlu1 %v5436_v21, %s6088_s7  ;;  %v1494_v49 = vor.u32 %v1493_v41, %v1490_v12  ;;  %v6807_v24 = vrot.slane %v1497_v25, 5  ;;  %v1503_v51 = vrot.slane %v1501_v17, 4  ;;  %v6831_v40 = vld [vmem:[%s7985_s1] ss:$0 sm:$0xff] }
  0xbb   : > { %1042 = vst [vmem:[#allocation2 + $0x68] sm:$0x1] %v1041_v29  ;;  %v3392_v54 = vrot.slane %v3390_v22, 5  ;;  %v814_v57 = vor.u32 %v812_v32, %v6799_v43  ;;  %v816_v38 = vrot.slane %v6799_v43, 4  ;;  %v1044_v2 = vsel %vm6214_vm10, %v806_v10, %v1043_v55 }
  0xbc   : > { %v3394_v59 = vshrl.u32 %v3249_v23, 16  ;;  %1045 = vst [vmem:[#allocation2 + $0x6c] sm:$0xf] %v1044_v2  ;;  %v1495_v58 = vrot.slane %v1494_v49, 4  ;;  %v1504_v44 = vor.u32 %v1503_v51, %v6807_v24  ;;  %v3400_v13 = vshll.u32 %v3250_v48, 16 }
  0xbd   : > { %v3393_v60 = vsel %vm6222_vm11, %v6797_v4, %v3392_v54  ;;  %v815_v26 = vsel %vm6206_vm9, %v807_v34, %v814_v57  ;;  %v5639_v39 = vunpack.c.l.bf16 %v5673_v33  ;;  %v5640_v37 = vunpack.c.h.bf16 %v5673_v33 }
  0xbe   : > { %v3396_v62 = vrot.slane %v3394_v59, 4  ;;  %1046 = vst.msk [vmem:[#allocation2 + $0x70] sm:$0xf] %vm460_vm0, %v815_v26  ;;  %v1500_v35 = vsel %vm6222_vm11, %v1495_v58, %v6807_v24  ;;  %v1505_v5 = vrot.slane %v1504_v44, 4  ;;  %v3402_v6 = vrot.slane %v3400_v13, 5 }
  0xbf   : > { %v503_v63 = vsel %vm6135_vm3, 0, %v502_v30  ;;  %v359_v7 = vmul.f32 %v6831_v40, %v5639_v39  ;;  %v360_v9 = vmul.f32 %v6831_v40, %v5640_v37  ;;  %v5421_v46 = vrot.slane %v2783_v45, 9  ;;  %v3252_v45 = vld [vmem:[#allocation2 + $0x58] sm:$0xf] }
  0xc0   : > { %v3397_v15 = vor.u32 %v3396_v62, %v3392_v54  ;;  %504 = vst [vmem:[#allocation2 + $0x78] sm:$0x1] %v503_v63  ;;  %v2897_v14 = vrot.slane %v2784_v52, 5  ;;  %v2900_v47 = vrot.slane %v2785_v36, 5  ;;  %v556_v23 = vsel %vm6142_vm5, 0, %v555_v53 }
  0xc1   : > { %v3405_v20 = vshrl.u32 %v6820_v61, 16  ;;  %v398_v28 = vadd.f32 %v6551_v42, %v359_v7  ;;  %v399_v31 = vadd.f32 %v6551_v42, %v360_v9  ;;  %557 = vst [vmem:[#allocation2 + $0x74] sm:$0x1] %v556_v23  ;;  %v3408_v0 = vshll.u32 %v6820_v61, 16  ;;  %v3253_v36 = vld [vmem:[#allocation2 + $0x5c] sm:$0x1]  ;;  %v6859_v61 = vpop.permute.xlu0 %2195 }
  0xc2   : > { %v1270_v21 = vld [vmem:[#allocation2 + $0x68] sm:$0x1]  ;;  %v3398_v12 = vrot.slane %v3397_v15, 4  ;;  %v2898_v55 = vsel %vm6559_vm14, %v5421_v46, %v2897_v14  ;;  %v2899_v25 = vrot.slane %v2897_v14, 4  ;;  %v5643_v10 = vunpack.c.l.bf16 %v6836_v50  ;;  %v2786_v23 = vld [vmem:[#allocation2 + $0x48] sm:$0xe] }
  0xc3   : > { %v1507_v32 = vshll.u32 %v1270_v21, 16  ;;  %v6846_v19 = vrot.slane %v3405_v20, 4  ;;  %v430_v17 = vmax.f32 %v398_v28, 0.0  ;;  %v431_v4 = vmax.f32 %v399_v31, 0.0  ;;  %v1271_v22 = vld [vmem:[#allocation2 + $0x6c] sm:$0xf] }
  0xc4   : > { %v3403_v41 = vsel %vm6222_vm11, %v3398_v12, %v3402_v6  ;;  %v2901_v29 = vsel %vm6559_vm14, %v2899_v25, %v2900_v47  ;;  %v1512_v48 = vshrl.u32 %v1271_v22, 16  ;;  %v1515_v57 = vshll.u32 %v1271_v22, 16  ;;  %v505_v47 = vld [vmem:[#allocation2 + $0x84] sm:$0x1]  ;;  %v6875_v25 = vpop.permute.xlu1 %1727 }
  0xc5   : > { %v1509_v34 = vrot.slane %v1507_v32, 5  ;;  %v5469_v42 = vcombine.low %v3393_v60, %v3403_v41  ;;  %v6002_v49 = vld [vmem:[#allocation2 + $0x6c] sm:$0xff]   ;;  %v5587_v24 = vpack.c.bf16 %v430_v17, %v430_v17  ;;  %v5588_v51 = vpack.c.bf16 %v431_v4, %v431_v4 }
  0xc6   : > { %v5437_v54 = vcombine.low %v2898_v55, %v2901_v29  ;;  %v1272_v33 = vld [vmem:[#allocation2 + $0x70] sm:$0xf]  ;;  %v1514_v59 = vrot.slane %v1512_v48, 4  ;;  %2211 = vrot.lane.b32.xlu0 %v6002_v49, %s6088_s7  ;;  %v1517_v62 = vrot.slane %v1515_v57, 5  ;;  %v3410_v15 = vrot.slane %v3408_v0, 5 }
  0xc7   : > { %v1510_v2 = vsel %vm6222_vm11, %v1505_v5, %v1509_v34  ;;  %3724 = vrot.lane.b32.xlu1 %v5469_v42, %s6088_s7  ;;  %v1521_v30 = vshll.u32 %v1272_v33, 16  ;;  %v1525_v53 = vshrl.u32 %v1272_v33, 16  ;;  %v818_v44 = vshrl.u32 %v5587_v24, 16  ;;  %v1050_v63 = vld [vmem:[#allocation2 + $0x78] sm:$0xf] }
  0xc8   : > { %v5345_v58 = vcombine.low %v1500_v35, %v1510_v2  ;;  %v821_v60 = vshll.u32 %v5587_v24, 16  ;;  %v826_v13 = vshrl.u32 %v5588_v51, 16  ;;  %v829_v52 = vshll.u32 %v5588_v51, 16  ;;  %v1047_v26 = vld [vmem:[#allocation2 + $0x74] sm:$0x1]  ;;  %v6890_v24 = vpop.permute.xlu0 %2219 }
  0xc9   : > { %v6857_v39 = vrot.slane %v1521_v30, 5  ;;  %v1527_v37 = vrot.slane %v1525_v53, 4  ;;  %v820_v5 = vrot.slane %v818_v44, 7  ;;  %v1048_v35 = vsel %vm6135_vm3, %v816_v38, %v1047_v26  ;;  %v2787_v32 = vld [vmem:[#allocation2 + $0x4c] sm:$0xf]  ;;  %v6900_v53 = vpop.permute.xlu1 %1751 }
  0xca   : > { %v6861_v6 = vrot.slane %v826_v13, 7  ;;  %1049 = vst [vmem:[#allocation2 + $0x74] sm:$0x1] %v1048_v35  ;;  %v1518_v7 = vor.u32 %v1517_v62, %v1514_v59  ;;  %v3414_v46 = vshll.u32 %v3252_v45, 16  ;;  %v3418_v14 = vshrl.u32 %v3252_v45, 16  ;;  %1743 = vrot.lane.b32.xlu0 %v5345_v58, %s6088_s7 }
  0xcb   : > { %3035 = vrot.lane.b32.xlu1 %v5437_v54, %s6088_s7  ;;  %v1528_v9 = vor.u32 %v1527_v37, %v6857_v39  ;;  %v823_v20 = vor.u32 %v821_v60, %v820_v5  ;;  %v824_v21 = vrot.slane %v820_v5, 4  ;;  %v3411_v31 = vor.u32 %v3410_v15, %v6846_v19  ;;  %v558_v55 = vld [vmem:[#allocation2 + $0x80] sm:$0x1]  ;;  %v2788_v34 = vld [vmem:[#allocation2 + $0x50] sm:$0x1] }
  0xcc   : > { %v831_v43 = vor.u32 %v829_v52, %v6861_v6  ;;  %v833_v12 = vrot.slane %v6861_v6, 4  ;;  %v6872_v38 = vrot.slane %v1518_v7, 4  ;;  %v3416_v0 = vrot.slane %v3414_v46, 5  ;;  %v3254_v42 = vld [vmem:[#allocation2 + $0x60] sm:$0xf] }
  0xcd   : > { %v1529_v28 = vrot.slane %v1528_v9, 4  ;;  %v1051_v17 = vsel %vm6214_vm10, %v823_v20, %v1050_v63  ;;  %v3420_v4 = vrot.slane %v3418_v14, 4  ;;  %v3424_v22 = vshll.u32 %v3253_v36, 16  ;;  %v6077_v30 = vld [vmem:[%s7986_s2] ss:$0 sm:$0xff]  ;;  %v6908_v9 = vpop.permute.xlu0 %2197 }
  0xce   : > { %v832_v41 = vsel %vm6206_vm9, %v824_v21, %v831_v43  ;;  %1052 = vst [vmem:[#allocation2 + $0x78] sm:$0xf] %v1051_v17  ;;  %v1524_v19 = vsel %vm6222_vm11, %v6872_v38, %v6857_v39  ;;  %v3412_v29 = vrot.slane %v3411_v31, 4  ;;  %v5644_v48 = vunpack.c.h.bf16 %v6836_v50 }
  0xcf   : > { %1053 = vst.msk [vmem:[#allocation2 + $0x7c] sm:$0xf] %vm460_vm0, %v832_v41  ;;  %v361_v49 = vmul.f32 %v6831_v40, %v5643_v10  ;;  %v3421_v51 = vor.u32 %v3420_v4, %v3416_v0  ;;  %v3426_v54 = vrot.slane %v3424_v22, 5  ;;  %v506_v33 = vsel %vm6135_vm3, 0, %v505_v47  ;;  %v3255_v4 = vld [vmem:[#allocation2 + $0x64] sm:$0xf] }
  0xd0   : > { %v5422_v57 = vrot.slane %v2786_v23, 9  ;;  %v3417_v2 = vsel %vm6222_vm11, %v3412_v29, %v3416_v0  ;;  %v362_v59 = vmul.f32 %v6831_v40, %v5644_v48  ;;  %507 = vst [vmem:[#allocation2 + $0x84] sm:$0x1] %v506_v33  ;;  %v2904_v10 = vrot.slane %v2787_v32, 5  ;;  %v6915_v0 = vpop.permute.xlu1 %2221 }
  0xd1   : > { %v400_v50 = vadd.f32 %v6077_v30, %v361_v49  ;;  %v1273_v58 = vld [vmem:[#allocation2 + $0x74] sm:$0x1]  ;;  %v3422_v44 = vrot.slane %v3421_v51, 4  ;;  %v2907_v60 = vrot.slane %v2788_v34, 5  ;;  %v559_v13 = vsel %vm6142_vm5, 0, %v558_v55 }
  0xd2   : > { %v3429_v45 = vshrl.u32 %v3254_v42, 16  ;;  %v1531_v52 = vshll.u32 %v1273_v58, 16  ;;  %v401_v26 = vadd.f32 %v6077_v30, %v362_v59  ;;  %v2905_v40 = vsel %vm6559_vm14, %v5422_v57, %v2904_v10  ;;  %560 = vst [vmem:[#allocation2 + $0x80] sm:$0x1] %v559_v13  ;;  %v3256_v30 = vld [vmem:[#allocation2 + $0x68] sm:$0x1] }
  0xd3   : > { %v432_v62 = vmax.f32 %v400_v50, 0.0  ;;  %v3427_v39 = vsel %vm6222_vm11, %v3422_v44, %v3426_v54  ;;  %v2906_v37 = vrot.slane %v2904_v10, 4  ;;  %v3432_v5 = vshll.u32 %v3254_v42, 16  ;;  %v6925_v50 = vpop.permute.xlu0 %1729  ;;  %v2790_v13 = vld [vmem:[#allocation2 + $0x58] sm:$0xf] }
  0xd4   : > { %v3431_v36 = vrot.slane %v3429_v45, 4  ;;  %v1533_v63 = vrot.slane %v1531_v52, 5  ;;  %v5470_v35 = vcombine.low %v3417_v2, %v3427_v39  ;;  %v433_v15 = vmax.f32 %v401_v26, 0.0  ;;  %v6933_v39 = vpop.permute.xlu1 %1753 }
  0xd5   : > { %v5589_v7 = vpack.c.bf16 %v432_v62, %v432_v62  ;;  %v2908_v14 = vsel %vm6559_vm14, %v2906_v37, %v2907_v60  ;;  %v3434_v47 = vrot.slane %v3432_v5, 5  ;;  %v1274_v38 = vld [vmem:[#allocation2 + $0x78] sm:$0xf]  ;;  %v2789_v60 = vld [vmem:[#allocation2 + $0x54] sm:$0xe]  ;;  %v3438_v26 = vshll.u32 %v3255_v4, 16 }
  0xd6   : > { %v6003_v46 = vld [vmem:[#allocation2 + $0x78] sm:$0xff]   ;;  %v1534_v23 = vsel %vm6222_vm11, %v1529_v28, %v1533_v63  ;;  %3726 = vrot.lane.b32.xlu1 %v5470_v35, %s6088_s7  ;;  %v5590_v20 = vpack.c.bf16 %v433_v15, %v433_v15  ;;  %v5438_v55 = vcombine.low %v2905_v40, %v2908_v14  ;;  %v1536_v41 = vshrl.u32 %v1274_v38, 16  ;;  %v561_v62 = vld [vmem:[#allocation2 + $0x8c] sm:$0x1]  ;;  %v3258_v35 = vld [vmem:[#allocation2 + $0x70] sm:$0xf] }
  0xd7   : > { %v835_v21 = vshrl.u32 %v5589_v7, 16  ;;  %v838_v43 = vshll.u32 %v5589_v7, 16  ;;  %v1275_v31 = vld [vmem:[#allocation2 + $0x7c] sm:$0xf]  ;;  %2213 = vrot.lane.b32.xlu0 %v6003_v46, %s6088_s7  ;;  %v5346_v32 = vcombine.low %v1524_v19, %v1534_v23  ;;  %v1539_v17 = vshll.u32 %v1274_v38, 16 }
  0xd8   : > { %v843_v34 = vshrl.u32 %v5590_v20, 16  ;;  %v846_v42 = vshll.u32 %v5590_v20, 16  ;;  %v1057_v28 = vld [vmem:[#allocation2 + $0x84] sm:$0xf]  ;;  %v1545_v29 = vshll.u32 %v1275_v31, 16  ;;  %v1538_v49 = vrot.slane %v1536_v41, 4 }
  0xd9   : > { %v837_v22 = vrot.slane %v835_v21, 7  ;;  %v1054_v48 = vld [vmem:[#allocation2 + $0x80] sm:$0x1]  ;;  %v1541_v51 = vrot.slane %v1539_v17, 5  ;;  %v1549_v54 = vshrl.u32 %v1275_v31, 16  ;;  %v3435_v33 = vor.u32 %v3434_v47, %v3431_v36 }
  0xda   : > { %v6918_v59 = vrot.slane %v843_v34, 7  ;;  %3037 = vrot.lane.b32.xlu1 %v5438_v55, %s6088_s7  ;;  %v1055_v19 = vsel %vm6135_vm3, %v833_v12, %v1054_v48  ;;  %v6928_v58 = vrot.slane %v1545_v29, 5  ;;  %v2791_v12 = vld [vmem:[#allocation2 + $0x5c] sm:$0x1]  ;;  %v3257_v40 = vld [vmem:[#allocation2 + $0x6c] sm:$0xf]  ;;  %v6950_v29 = vpop.permute.xlu1 %2223 }
  0xdb   : > { %v840_v57 = vor.u32 %v838_v43, %v837_v22  ;;  %v841_v2 = vrot.slane %v837_v22, 4  ;;  %1745 = vrot.lane.b32.xlu0 %v5346_v32, %s6088_s7  ;;  %1056 = vst [vmem:[#allocation2 + $0x80] sm:$0x1] %v1055_v19  ;;  %v1542_v10 = vor.u32 %v1541_v51, %v1538_v49  ;;  %v1551_v44 = vrot.slane %v1549_v54, 4  ;;  %v3259_v14 = vld [vmem:[#allocation2 + $0x74] sm:$0x1]  ;;  %v6942_v32 = vpop.permute.xlu0 %2199 }
  0xdc   : > { %v848_v45 = vor.u32 %v846_v42, %v6918_v59  ;;  %v3436_v52 = vrot.slane %v3435_v33, 4  ;;  %v850_v37 = vrot.slane %v6918_v59, 4  ;;  %v3442_v5 = vshrl.u32 %v3255_v4, 16  ;;  %8011 = vst [vmem:[#allocation7_spill] sm:$0xff] %v6942_v32  ;;  %8012 = vst [vmem:[#allocation8_spill] sm:$0xff] %v6950_v29 }
  0xdd   : > { %v1058_v6 = vsel %vm6214_vm10, %v840_v57, %v1057_v28  ;;  %v1552_v36 = vor.u32 %v1551_v44, %v6928_v58  ;;  %v3448_v63 = vshll.u32 %v3256_v30, 16  ;;  %v3440_v16 = vrot.slane %v3438_v26, 5 }
  0xde   : > { %1059 = vst [vmem:[#allocation2 + $0x84] sm:$0xf] %v1058_v6  ;;  %v849_v15 = vsel %vm6206_vm9, %v841_v2, %v848_v45  ;;  %v5423_v7 = vrot.slane %v2789_v60, 9  ;;  %v2911_v46 = vrot.slane %v2790_v13, 5  ;;  %v1543_v47 = vrot.slane %v1542_v10, 4 }
  0xdf   : > { %1060 = vst.msk [vmem:[#allocation2 + $0x88] sm:$0xf] %vm460_vm0, %v849_v15  ;;  %v1553_v23 = vrot.slane %v1552_v36, 4  ;;  %v3444_v20 = vrot.slane %v3442_v5, 4  ;;  %v3450_v21 = vrot.slane %v3448_v63, 5  ;;  %v3441_v43 = vsel %vm6222_vm11, %v3436_v52, %v3440_v16  ;;  %v6957_v36 = vpop.permute.xlu0 %1731 }
  0xe0   : > { %v2913_v38 = vrot.slane %v2911_v46, 4  ;;  %v2914_v31 = vrot.slane %v2791_v12, 5  ;;  %v562_v8 = vsel %vm6142_vm5, 0, %v561_v62  ;;  %v3453_v41 = vshrl.u32 %v3257_v40, 16  ;;  %v2792_v13 = vld [vmem:[#allocation2 + $0x60] sm:$0xe] }
  0xe1   : > { %v3445_v55 = vor.u32 %v3444_v20, %v3440_v16  ;;  %v3456_v17 = vshll.u32 %v3257_v40, 16  ;;  %v2912_v22 = vsel %vm6559_vm14, %v5423_v7, %v2911_v46  ;;  %563 = vst [vmem:[#allocation2 + $0x8c] sm:$0x1] %v562_v8  ;;  %v3462_v42 = vshll.u32 %v3258_v35, 16  ;;  %v2793_v40 = vld [vmem:[#allocation2 + $0x64] sm:$0xf] }
  0xe2   : > { %v1276_v4 = vld [vmem:[#allocation2 + $0x80] sm:$0x1]  ;;  %v2915_v34 = vsel %vm6559_vm14, %v2913_v38, %v2914_v31  ;;  %v3466_v28 = vshrl.u32 %v3258_v35, 16  ;;  %v3455_v51 = vrot.slane %v3453_v41, 4  ;;  %v3472_v54 = vshll.u32 %v3259_v14, 16  ;;  %v6005_v8 = vld [vmem:[#allocation2 + $0x90] sm:$0xff]  }
  0xe3   : > { %v1555_v48 = vshll.u32 %v1276_v4, 16  ;;  %v3446_v49 = vrot.slane %v3445_v55, 4  ;;  %v1548_v33 = vsel %vm6222_vm11, %v1543_v47, %v6928_v58  ;;  %v3458_v2 = vrot.slane %v3456_v17, 5  ;;  %v2794_v15 = vld [vmem:[#allocation2 + $0x68] sm:$0x1] }
  0xe4   : > { %v3464_v19 = vrot.slane %v3462_v42, 5  ;;  %v5439_v52 = vcombine.low %v2912_v22, %v2915_v34  ;;  %v3468_v62 = vrot.slane %v3466_v28, 4  ;;  %v3260_v47 = vld [vmem:[#allocation2 + $0x78] sm:$0xf]  ;;  %v3261_v20 = vld [vmem:[#allocation2 + $0x7c] sm:$0xf] }
  0xe5   : > { %v1277_v57 = vld [vmem:[#allocation2 + $0x84] sm:$0xf]  ;;  %v1557_v30 = vrot.slane %v1555_v48, 5  ;;  %v3451_v10 = vsel %vm6222_vm11, %v3446_v49, %v3450_v21  ;;  %v3459_v12 = vor.u32 %v3458_v2, %v3455_v51  ;;  %v6963_v21 = vpop.permute.xlu1 %1755  ;;  %v5424_v55 = vrot.slane %v2792_v13, 9  ;;  %v3262_v34 = vld [vmem:[#allocation2 + $0x80] sm:$0x1] }
  0xe6   : > { %v1560_v44 = vshrl.u32 %v1277_v57, 16  ;;  %v1563_v60 = vshll.u32 %v1277_v57, 16  ;;  %v6004_v45 = vld [vmem:[#allocation2 + $0x84] sm:$0xff]   ;;  %v5471_v6 = vcombine.low %v3441_v43, %v3451_v10  ;;  %v3469_v14 = vor.u32 %v3468_v62, %v3464_v19  ;;  %v2795_v42 = vld [vmem:[#allocation2 + $0x6c] sm:$0xe] }
  0xe7   : > { %v1278_v26 = vld [vmem:[#allocation2 + $0x88] sm:$0xf]  ;;  %v1558_v58 = vsel %vm6222_vm11, %v1553_v23, %v1557_v30  ;;  %2215 = vrot.lane.b32.xlu0 %v6004_v45, %s6088_s7  ;;  %v3460_v46 = vrot.slane %v3459_v12, 4  ;;  %v3474_v23 = vrot.slane %v3472_v54, 5  ;;  %v2918_v48 = vrot.slane %v2793_v40, 5 }
  0xe8   : > { %v1562_v5 = vrot.slane %v1560_v44, 4  ;;  %v1565_v63 = vrot.slane %v1563_v60, 5  ;;  %v1569_v35 = vshll.u32 %v1278_v26, 16  ;;  %v5347_v16 = vcombine.low %v1548_v33, %v1558_v58  ;;  %3728 = vrot.lane.b32.xlu1 %v5471_v6, %s6088_s7  ;;  %v1061_v43 = vld [vmem:[#allocation2 + $0x8c] sm:$0x1] }
  0xe9   : > { %v1573_v7 = vshrl.u32 %v1278_v26, 16  ;;  %v1062_v41 = vsel %vm6135_vm3, %v850_v37, %v1061_v43  ;;  %v3465_v4 = vsel %vm6222_vm11, %v3460_v46, %v3464_v19  ;;  %v3470_v22 = vrot.slane %v3469_v14, 4  ;;  %v2796_v54 = vld [vmem:[#allocation2 + $0x70] sm:$0xf]  ;;  %v2797_v33 = vld [vmem:[#allocation2 + $0x74] sm:$0x1]  ;;  %v6979_v19 = vpop.permute.xlu0 %2201 }
  0xea   : > { %v1566_v38 = vor.u32 %v1565_v63, %v1562_v5  ;;  %v6965_v31 = vrot.slane %v1569_v35, 5  ;;  %1063 = vst [vmem:[#allocation2 + $0x8c] sm:$0x1] %v1062_v41  ;;  %v2921_v49 = vrot.slane %v2794_v15, 5  ;;  %v3477_v51 = vshrl.u32 %v3260_v47, 16  ;;  %8013 = vst [vmem:[#allocation9_spill] sm:$0xff] %v6979_v19 }
  0xeb   : > { %v1575_v17 = vrot.slane %v1573_v7, 4  ;;  %1747 = vrot.lane.b32.xlu0 %v5347_v16, %s6088_s7  ;;  %v3475_v59 = vsel %vm6222_vm11, %v3470_v22, %v3474_v23  ;;  %v3480_v37 = vshll.u32 %v3260_v47, 16  ;;  %v3486_v57 = vshll.u32 %v3261_v20, 16  ;;  %v3263_v2 = vld [vmem:[#allocation2 + $0x84] sm:$0xf]  ;;  %v6065_v19 = vld [vmem:[#allocation2 + $0x6c] sm:$0xff]  }
  0xec   : > { %v6973_v28 = vrot.slane %v1566_v38, 4  ;;  %3039 = vrot.lane.b32.xlu1 %v5439_v52, %s6088_s7  ;;  %v5472_v10 = vcombine.low %v3465_v4, %v3475_v59  ;;  %v2919_v44 = vsel %vm6559_vm14, %v5424_v55, %v2918_v48  ;;  %v2920_v60 = vrot.slane %v2918_v48, 4  ;;  %v3264_v46 = vld [vmem:[#allocation2 + $0x88] sm:$0xf]  ;;  %v6998_v43 = vld [vmem:[#allocation2 + $0x78] sm:$0xe] }
  0xed   : > { %v1576_v30 = vor.u32 %v1575_v17, %v6965_v31  ;;  %v3479_v45 = vrot.slane %v3477_v51, 4  ;;  %v3482_v6 = vrot.slane %v3480_v37, 5  ;;  %v6988_v52 = vrot.slane %v3486_v57, 5  ;;  %v6990_v26 = vpop.permute.xlu1 %2225  ;;  %v7002_v41 = vpop.permute.xlu0 %1733  ;;  %v2799_v59 = vld [vmem:[#allocation2 + $0x7c] sm:$0xf]  ;;  %3227 = vst.msk [vmem:[#allocation3 + $0x130] sm:$0xff] %vm1227_vm15, %v6065_v19 }
  0xee   : > { %8014 = vst [vmem:[#allocation10_spill] sm:$0xff] %v6990_v26  ;;  %v2922_v12 = vsel %vm6559_vm14, %v2920_v60, %v2921_v49  ;;  %v3490_v62 = vshrl.u32 %v3261_v20, 16  ;;  %v3496_v40 = vshll.u32 %v3262_v34, 16  ;;  %v5425_v58 = vrot.slane %v2795_v42, 9  ;;  %v6023_v60 = vld [vmem:[#allocation2 + $0x90] sm:$0xff]   ;;  %v6064_v26 = vld [vmem:[#allocation2 + $0x84] sm:$0xff]  }
  0xef   : > { %2217 = vrot.lane.b32.xlu0 %v6005_v8, %s6088_s7  ;;  %v5440_v5 = vcombine.low %v2919_v44, %v2922_v12  ;;  %v3483_v63 = vor.u32 %v3482_v6, %v3479_v45  ;;  %v2925_v35 = vrot.slane %v2796_v54, 5  ;;  %v2928_v15 = vrot.slane %v2797_v33, 5  ;;  %v6018_v44 = vld [vmem:[#allocation2] sm:$0xff]   ;;  %v6024_v45 = vld [vmem:[#allocation2 + $0xc] sm:$0xff]   ;;  %v6029_v12 = vld [vmem:[#allocation2 + $0x18] sm:$0xff]   ;;  %1240 = vst.msk [vmem:[#allocation3 + $0x1e0] sm:$0xff] %vm1227_vm15, %v6023_v60 }
  0xf0   : > { %3730 = vrot.lane.b32.xlu1 %v5472_v10, %s6088_s7  ;;  %v6996_v16 = vrot.slane %v1576_v30, 4  ;;  %v3492_v7 = vrot.slane %v3490_v62, 4  ;;  %v3501_v14 = vshrl.u32 %v3263_v2, 16  ;;  %v3504_v47 = vshll.u32 %v3263_v2, 16  ;;  %v7013_v10 = vld [vmem:[#allocation2] sm:$0xe] }
  0xf1   : > { %v1279_v38 = vld [vmem:[#allocation2 + $0x8c] sm:$0x1]  ;;  %v3484_v20 = vrot.slane %v3483_v63, 4  ;;  %v3498_v23 = vrot.slane %v3496_v40, 5  ;;  %v2926_v55 = vsel %vm6559_vm14, %v5425_v58, %v2925_v35  ;;  %v2927_v8 = vrot.slane %v2925_v35, 4  ;;  %v7005_v48 = vpop.permute.xlu1 %1757  ;;  %v6027_v6 = vld [vmem:[#allocation2 + $0x9c] sm:$0xff]  }
  0xf2   : > { %v1579_v17 = vshll.u32 %v1279_v38, 16  ;;  %v3493_v4 = vor.u32 %v3492_v7, %v6988_v52  ;;  %v3265_v22 = vld [vmem:[#allocation2 + $0x8c] sm:$0x1]  ;;  %v3503_v34 = vrot.slane %v3501_v14, 4  ;;  %v3506_v42 = vrot.slane %v3504_v47, 5  ;;  %v6035_v40 = vld [vmem:[#allocation2 + $0x24] sm:$0xff]  }
  0xf3   : > { %v3489_v49 = vsel %vm6222_vm11, %v3484_v20, %v6988_v52  ;;  %v2929_v51 = vsel %vm6559_vm14, %v2927_v8, %v2928_v15  ;;  %v3510_v54 = vshll.u32 %v3264_v46, 16  ;;  %v3514_v33 = vshrl.u32 %v3264_v46, 16  ;;  %v6032_v62 = vld [vmem:[#allocation2 + $0xa8] sm:$0xff]   ;;  %v6038_v52 = vld [vmem:[#allocation2 + $0xb4] sm:$0xff]   ;;  %v6048_v63 = vld [vmem:[#allocation2 + $0x3c] sm:$0xff]   ;;  %1228 = vst.msk [vmem:[#allocation3] sm:$0xff] %vm1227_vm15, %v6018_v44 }
  0xf4   : > { %3041 = vrot.lane.b32.xlu1 %v5440_v5, %s6088_s7  ;;  %v1581_v37 = vrot.slane %v1579_v17, 5  ;;  %v3494_v57 = vrot.slane %v3493_v4, 4  ;;  %v5441_v2 = vcombine.low %v2926_v55, %v2929_v51  ;;  %v3507_v30 = vor.u32 %v3506_v42, %v3503_v34  ;;  %v6041_v58 = vld [vmem:[#allocation2 + $0x30] sm:$0xff]   ;;  %v6042_v5 = vld [vmem:[#allocation2 + $0x18] sm:$0xff]   ;;  %v6049_v35 = vld [vmem:[#allocation2 + $0x24] sm:$0xff]   ;;  %1229 = vst.msk [vmem:[#allocation3 + $0x28] sm:$0xff] %vm1227_vm15, %v6024_v45 }
  0xf5   : > { %v6052_v15 = vld [vmem:[#allocation2 + $0x48] sm:$0xff]   ;;  %v6053_v7 = vld [vmem:[#allocation2 + $0x30] sm:$0xff]   ;;  %v6055_v14 = vld [vmem:[#allocation2 + $0x3c] sm:$0xff]   ;;  %v7015_v17 = vrot.slane %v3510_v54, 5  ;;  %v3516_v4 = vrot.slane %v3514_v33, 4  ;;  %v3520_v34 = vshll.u32 %v3265_v22, 16 }
  0xf6   : > { %v6054_v46 = vld [vmem:[#allocation2 + $0x54] sm:$0xff]   ;;  %v6057_v47 = vld [vmem:[#allocation2 + $0x60] sm:$0xff]   ;;  %v6058_v38 = vld [vmem:[#allocation2 + $0x48] sm:$0xff]   ;;  %v5426_v51 = vrot.slane %v6998_v43, 9  ;;  %v1582_v18 = vsel %vm6222_vm11, %v6996_v16, %v1581_v37  ;;  %v3499_v3 = vsel %vm6222_vm11, %v3494_v57, %v3498_v23  ;;  %v7029_v54 = vrot.slane %v3507_v30, 4  ;;  %1241 = vst.msk [vmem:[#allocation3 + $0x208] sm:$0xff] %vm1227_vm15, %v6027_v6 }
  0xf7   : > { %v6059_v20 = vld [vmem:[#allocation2 + $0x6c] sm:$0xff]   ;;  %v6060_v55 = vld [vmem:[#allocation2 + $0x54] sm:$0xff]   ;;  %v2800_v42 = vld [vmem:[#allocation2 + $0x80] sm:$0x1]  ;;  %v2932_v33 = vrot.slane %v2799_v59, 5  ;;  %v8015_v43 = vsel %vm6222_vm11, %v6973_v28, %v6965_v31  ;;  %v7036_v32 = vcombine.low %v3489_v49, %v3499_v3  ;;  %v3517_v16 = vor.u32 %v3516_v4, %v7015_v17  ;;  %v7044_v59 = vpop.permute.xlu0 %2203  ;;  %v3717_v4 = vpop.permute.xlu1 %3716  ;;  %1230 = vst.msk [vmem:[#allocation3 + $0x50] sm:$0xff] %vm1227_vm15, %v6029_v12 }
  0xf8   : > { %v6061_v8 = vld [vmem:[#allocation2 + $0x78] sm:$0xff]   ;;  %v7020_v13 = vld [vmem:[#allocation2 + $0x8] sm:$0x1]  ;;  %v6062_v22 = vld [vmem:[#allocation2 + $0x60] sm:$0xff]   ;;  %v5348_v29 = vcombine.low %v8015_v43, %v1582_v18  ;;  %3043 = vrot.lane.b32.xlu1 %v5441_v2, %s6088_s7  ;;  %v3522_v37 = vrot.slane %v3520_v34, 5  ;;  %8016 = vst [vmem:[#allocation11_spill] sm:$0xff] %v7044_v59  ;;  %v3513_v31 = vsel %vm6222_vm11, %v7029_v54, %v7015_v17 }
  0xf9   : > { %v7040_v23 = vld [vmem:[#allocation2 + $0x94] sm:$0xf]  ;;  %v7042_v57 = vld [vmem:[#allocation2 + $0x98] sm:$0x1]  ;;  %v7052_v3 = vsel %vm6559_vm14, %v5426_v51, %v2932_v33  ;;  %v2934_v18 = vrot.slane %v2932_v33, 4  ;;  %v2935_v28 = vrot.slane %v2800_v42, 5 }
  0xfa   : > { %v6066_v30 = vld [vmem:[#allocation2 + $0x78] sm:$0xff]   ;;  %v7054_v49 = vld [vmem:[#allocation2 + $0x90] sm:$0xf]  ;;  %v7056_v2 = vld [vmem:[#allocation2 + $0x94] sm:$0xf]  ;;  %1749 = vrot.lane.b32.xlu0 %v5348_v29, %s6088_s7  ;;  %v3518_v34 = vrot.slane %v3517_v16, 4 }
  0xfb   : > { %vm1775_vm0 = vcmask 1048064   ;;  %v5353_v43 = vrot.slane %v7013_v10, 9  ;;  %v7060_v59 = vld [vmem:[#allocation2 + $0x98] sm:$0x1]  ;;  %v2936_v17 = vsel %vm6559_vm14, %v2934_v18, %v2935_v28  ;;  %v1893_v51 = vrot.slane %v7018_v11, 5  ;;  %1242 = vst.msk [vmem:[#allocation3 + $0x230] sm:$0xff] %vm1227_vm15, %v6032_v62  ;;  %v7136_v16 = vpop.permute.xlu1 %3027 }
  0xfc   : > { %v1896_v42 = vrot.slane %v7020_v13, 5  ;;  %v5365_v54 = vrot.slane %v7022_v1, 9  ;;  %1231 = vst.msk [vmem:[#allocation3 + $0x78] sm:$0xff] %vm1227_vm15, %v6035_v40  ;;  %1243 = vst.msk [vmem:[#allocation3 + $0x258] sm:$0xff] %vm1227_vm15, %v6038_v52  ;;  %v3523_v1 = vsel %vm6222_vm11, %v3518_v34, %v3522_v37  ;;  %v5442_v11 = vcombine.low %v7052_v3, %v2936_v17  ;;  %v2801_v10 = vld [vmem:[#allocation2 + $0x84] sm:$0xe] }
  0xfd   : > { %1232 = vst.msk [vmem:[#allocation3 + $0xa0] sm:$0xff] %vm1227_vm15, %v6041_v58  ;;  %3220 = vst.msk [vmem:[#allocation3 + $0x18] sm:$0xff] %vm1227_vm15, %v6042_v5  ;;  %v1977_v29 = vrot.slane %v7040_v23, 5  ;;  %v1980_v13 = vrot.slane %v7042_v57, 5  ;;  %v2802_v19 = vld [vmem:[#allocation2 + $0x88] sm:$0xf] }
  0xfe   : > { %1233 = vst.msk [vmem:[#allocation3 + $0xc8] sm:$0xff] %vm1227_vm15, %v6048_v63  ;;  %3221 = vst.msk [vmem:[#allocation3 + $0x40] sm:$0xff] %vm1227_vm15, %v6049_v35  ;;  %3732 = vrot.lane.b32.xlu0 %v7036_v32, %s6088_s7  ;;  %3045 = vrot.lane.b32.xlu1 %v5442_v11, %s6088_s7  ;;  %v3534_v44 = vshll.u32 %v7056_v2, 16  ;;  %v1797_v60 = vld [vmem:[#allocation2 + $0x14] sm:$0x1]  ;;  %v1736_v12 = vpop.permute.xlu0 %1735  ;;  %v6067_v62 = vld [vmem:[#allocation2 + $0x84] sm:$0xff]  }
  0xff   : > { %1234 = vst.msk [vmem:[#allocation3 + $0xf0] sm:$0xff] %vm1227_vm15, %v6052_v15  ;;  %3222 = vst.msk [vmem:[#allocation3 + $0x68] sm:$0xff] %vm1227_vm15, %v6053_v7  ;;  %v1795_v45 = vld [vmem:[#allocation2 + $0xc] sm:$0xe]  ;;  %v1831_v6 = vld [vmem:[#allocation2 + $0x9c] sm:$0xe] }
 0x100   : > { %1235 = vst.msk [vmem:[#allocation3 + $0x118] sm:$0xff] %vm1227_vm15, %v6054_v46  ;;  %3223 = vst.msk [vmem:[#allocation3 + $0x90] sm:$0xff] %vm1227_vm15, %v6055_v14  ;;  %v3538_v32 = vshrl.u32 %v7056_v2, 16  ;;  %v3544_v58 = vshll.u32 %v7060_v59, 16  ;;  %v3536_v15 = vrot.slane %v3534_v44, 5  ;;  %v1903_v23 = vrot.slane %v1797_v60, 5 }
 0x101   : > { %1236 = vst.msk [vmem:[#allocation3 + $0x140] sm:$0xff] %vm1227_vm15, %v6057_v47  ;;  %3224 = vst.msk [vmem:[#allocation3 + $0xb8] sm:$0xff] %vm1227_vm15, %v6058_v38  ;;  %v1832_v7 = vld [vmem:[#allocation2 + $0xa0] sm:$0xf]  ;;  %v7131_v46 = vld [vmem:[#allocation2 + $0xa4] sm:$0x1] }
 0x102   : > { %1237 = vst.msk [vmem:[#allocation3 + $0x168] sm:$0xff] %vm1227_vm15, %v6059_v20  ;;  %3225 = vst.msk [vmem:[#allocation3 + $0xe0] sm:$0xff] %vm1227_vm15, %v6060_v55  ;;  %v3540_v47 = vrot.slane %v3538_v32, 4  ;;  %v3546_v38 = vrot.slane %v3544_v58, 5  ;;  %v5427_v20 = vrot.slane %v2801_v10, 9  ;;  %v5354_v57 = vrot.slane %v1795_v45, 9 }
 0x103   : > { %1238 = vst.msk [vmem:[#allocation3 + $0x190] sm:$0xff] %vm1227_vm15, %v6061_v8  ;;  %3226 = vst.msk [vmem:[#allocation3 + $0x108] sm:$0xff] %vm1227_vm15, %v6062_v22  ;;  %v2939_v8 = vrot.slane %v2802_v19, 5  ;;  %v5366_v59 = vrot.slane %v1831_v6, 9  ;;  %v3271_v2 = vld [vmem:[#allocation2 + $0xa4] sm:$0x1] }
 0x104   : > { %1239 = vst.msk [vmem:[#allocation3 + $0x1b8] sm:$0xff] %vm1227_vm15, %v6064_v26  ;;  %3228 = vst.msk [vmem:[#allocation3 + $0x158] sm:$0xff] %vm1227_vm15, %v6066_v30  ;;  %v1796_v26 = vld [vmem:[#allocation2 + $0x10] sm:$0xf]  ;;  %v3541_v37 = vor.u32 %v3540_v47, %v3536_v15  ;;  %v3269_v30 = vld [vmem:[#allocation2 + $0x9c] sm:$0xf] }
 0x105   : > { %1776 = vst.msk [vmem:[#allocation3] sm:$0xff] %vm1775_vm0, %v6875_v25  ;;  %1788 = vst.msk [vmem:[#allocation3 + $0x1e0] sm:$0xff] %vm1775_vm0, %v6900_v53  ;;  %v5474_v25 = vcombine.low %v3513_v31, %v3523_v1  ;;  %v1894_v53 = vsel %vm6559_vm14, %v5353_v43, %v1893_v51  ;;  %v1900_v22 = vrot.slane %v1796_v26, 5  ;;  %v2940_v3 = vsel %vm6559_vm14, %v5427_v20, %v2939_v8  ;;  %v2804_v17 = vld [vmem:[#allocation2 + $0x90] sm:$0xe]  ;;  %v7154_v1 = vpop.permute.xlu0 %2205  ;;  %v6030_v58 = vld [vmem:[%s7987_s3 + $0xc8] sm:$0xff]  }
 0x106   : > { %1777 = vst.msk [vmem:[#allocation3 + $0x28] sm:$0xff] %vm1775_vm0, %v6925_v50  ;;  %1789 = vst.msk [vmem:[#allocation3 + $0x208] sm:$0xff] %vm1775_vm0, %v6933_v39  ;;  %v1895_v50 = vrot.slane %v1893_v51, 4  ;;  %v3525_v39 = vshrl.u32 %v7054_v49, 16  ;;  %v2941_v18 = vrot.slane %v2939_v8, 4  ;;  %v1984_v34 = vrot.slane %v1832_v7, 5 }
 0x107   : > { %1778 = vst.msk [vmem:[#allocation3 + $0x50] sm:$0xff] %vm1775_vm0, %v6957_v36  ;;  %1790 = vst.msk [vmem:[#allocation3 + $0x230] sm:$0xff] %vm1775_vm0, %v6963_v21  ;;  %v2803_v36 = vld [vmem:[#allocation2 + $0x8c] sm:$0x1]  ;;  %v1978_v21 = vsel %vm6559_vm14, %v5365_v54, %v1977_v29  ;;  %3734 = vrot.lane.b32.xlu0 %v5474_v25, %s6088_s7  ;;  %v1902_v28 = vrot.slane %v1900_v22, 4  ;;  %v1987_v43 = vrot.slane %v7131_v46, 5 }
 0x108   : > { %1779 = vst.msk [vmem:[#allocation3 + $0x78] sm:$0xff] %vm1775_vm0, %v7002_v41  ;;  %1791 = vst.msk [vmem:[#allocation3 + $0x258] sm:$0xff] %vm1775_vm0, %v7005_v48  ;;  %v1979_v41 = vrot.slane %v1977_v29, 4  ;;  %v3528_v48 = vshll.u32 %v7054_v49, 16  ;;  %v1897_v40 = vsel %vm6559_vm14, %v1895_v50, %v1896_v42  ;;  %v3527_v52 = vrot.slane %v3525_v39, 4  ;;  %v3719_v60 = vpop.permute.xlu1 %3718  ;;  %v6068_v45 = vld [vmem:[#allocation2 + $0x90] sm:$0xff]  }
 0x109   : > { %3764 = vst.msk [vmem:[#allocation3 + $0x18] sm:$0xff] %vm1775_vm0, %v3717_v4  ;;  %1780 = vst.msk [vmem:[#allocation3 + $0xa0] sm:$0xff] %vm1775_vm0, %v1736_v12  ;;  %v5369_v5 = vcombine.low %v1894_v53, %v1897_v40  ;;  %v2942_v33 = vrot.slane %v2803_v36, 5  ;;  %v3270_v49 = vld [vmem:[#allocation2 + $0xa0] sm:$0xf]  ;;  %v3542_v4 = vrot.slane %v3541_v37, 4  ;;  %v1904_v42 = vsel %vm6559_vm14, %v1902_v28, %v1903_v23 }
 0x10a   : > { %v1981_v63 = vsel %vm6559_vm14, %v1979_v41, %v1980_v13  ;;  %v3530_v35 = vrot.slane %v3528_v48, 5  ;;  %3229 = vst.msk [vmem:[#allocation3 + $0x180] sm:$0xff] %vm1227_vm15, %v6067_v62  ;;  %v3549_v54 = vshrl.u32 %v3269_v30, 16  ;;  %v1985_v10 = vsel %vm6559_vm14, %v5366_v59, %v1984_v34  ;;  %v2805_v25 = vld [vmem:[#allocation2 + $0x94] sm:$0xf]  ;;  %v6028_v48 = vld [vmem:[%s7987_s3 + $0x80] sm:$0xff]   ;;  %v1738_v47 = vpop.permute.xlu0 %1737 }
 0x10b   : > { %v5381_v14 = vcombine.low %v1978_v21, %v1981_v63  ;;  %2067 = vst.msk [vmem:[#allocation3 + $0x8] sm:$0xff] %vm1227_vm15, %v5369_v5  ;;  %v3547_v11 = vsel %vm6222_vm11, %v3542_v4, %v3546_v38  ;;  %v7160_v53 = vld [vmem:[#allocation2 + $0x98] sm:$0x1]  ;;  %v7162_v50 = vld [vmem:[#allocation2 + $0x18] sm:$0xe]  ;;  %v1986_v19 = vrot.slane %v1984_v34, 4 }
 0x10c   : > { %v3531_v55 = vor.u32 %v3530_v35, %v3527_v52  ;;  %2243 = vst.msk [vmem:[#allocation3 + $0x8] sm:$0xff] %vm1775_vm0, %v6859_v61  ;;  %v1901_v61 = vsel %vm6559_vm14, %v5354_v57, %v1900_v22  ;;  %v3551_v36 = vrot.slane %v3549_v54, 4  ;;  %v3552_v26 = vshll.u32 %v3269_v30, 16  ;;  %v7164_v21 = vld [vmem:[#allocation2 + $0x1c] sm:$0xf]  ;;  %3765 = vst.msk [vmem:[#allocation3 + $0x40] sm:$0xff] %vm1775_vm0, %v3719_v60 }
 0x10d   : > { %2079 = vst.msk [vmem:[#allocation3 + $0x1e8] sm:$0xff] %vm1227_vm15, %v5381_v14  ;;  %v5370_v13 = vcombine.low %v1901_v61, %v1904_v42  ;;  %v7166_v41 = vld [vmem:[#allocation2 + $0x20] sm:$0x1]  ;;  %v7171_v44 = vld [vmem:[#allocation2 + $0xa8] sm:$0xe]  ;;  %v4068_v6 = vld [vmem:[#allocation3] sm:$0xff]  ;;  %v1988_v63 = vsel %vm6559_vm14, %v1986_v19, %v1987_v43 }
 0x10e   : > { %2255 = vst.msk [vmem:[#allocation3 + $0x1e8] sm:$0xff] %vm1775_vm0, %v6890_v24  ;;  %v3532_v31 = vrot.slane %v3531_v55, 4  ;;  %v2943_v24 = vsel %vm6559_vm14, %v2941_v18, %v2942_v33  ;;  %v3558_v12 = vshll.u32 %v3270_v49, 16  ;;  %v3562_v62 = vshrl.u32 %v3270_v49, 16  ;;  %v1835_v32 = vld [vmem:[#allocation2 + $0xac] sm:$0xf] }
 0x10f   : > { %v5443_v29 = vcombine.low %v2940_v3, %v2943_v24  ;;  %2068 = vst.msk [vmem:[#allocation3 + $0x30] sm:$0xff] %vm1227_vm15, %v5370_v13  ;;  %v3568_v40 = vshll.u32 %v3271_v2, 16  ;;  %v5428_v52 = vrot.slane %v2804_v17, 9  ;;  %v3554_v35 = vrot.slane %v3552_v26, 5  ;;  %v4128_v46 = vld [vmem:[#allocation3 + $0x1e0] sm:$0xff]  ;;  %v6046_v14 = vld [vmem:[%s7987_s3 + $0x108] sm:$0xff]  }
 0x110   : > { %v3537_v51 = vsel %vm6222_vm11, %v3532_v31, %v3536_v15  ;;  %2244 = vst.msk [vmem:[#allocation3 + $0x30] sm:$0xff] %vm1775_vm0, %v6908_v9  ;;  %v2946_v15 = vrot.slane %v2805_v25, 5  ;;  %v2949_v7 = vrot.slane %v7160_v53, 5  ;;  %v5382_v38 = vcombine.low %v1985_v10, %v1988_v63  ;;  %v1836_v33 = vld [vmem:[#allocation2 + $0xb0] sm:$0x1]  ;;  %1781 = vst.msk [vmem:[#allocation3 + $0xc8] sm:$0xff] %vm1775_vm0, %v1738_v47 }
 0x111   : > { %v5475_v39 = vcombine.low %v3537_v51, %v3547_v11  ;;  %3047 = vrot.lane.b32.xlu1 %v5443_v29, %s6088_s7  ;;  %3230 = vst.msk [vmem:[#allocation3 + $0x1a8] sm:$0xff] %vm1227_vm15, %v6068_v45  ;;  %v3560_v20 = vrot.slane %v3558_v12, 5  ;;  %v3564_v9 = vrot.slane %v3562_v62, 4  ;;  %v3570_v55 = vrot.slane %v3568_v40, 5  ;;  %v6031_v59 = vld [vmem:[%s7987_s3 + $0x88] sm:$0xff]   ;;  %v6078_v18 = vld [vmem:[%s7987_s3 + $0x100] sm:$0xff]   ;;  %v7227_v45 = vpop.permute.xlu1 %3029 }
 0x112   : > { %v3555_v22 = vor.u32 %v3554_v35, %v3551_v36  ;;  %v2947_v37 = vsel %vm6559_vm14, %v5428_v52, %v2946_v15  ;;  %v2948_v23 = vrot.slane %v2946_v15, 4  ;;  %v5355_v57 = vrot.slane %v7162_v50, 9  ;;  %2080 = vst.msk [vmem:[#allocation3 + $0x210] sm:$0xff] %vm1227_vm15, %v5382_v38  ;;  %v3272_v49 = vld [vmem:[#allocation2 + $0xa8] sm:$0xf]  ;;  %v6033_v2 = vld [vmem:[%s7987_s3 + $0xd0] sm:$0xff]  }
 0x113   : > { %3736 = vrot.lane.b32.xlu0 %v5475_v39, %s6088_s7  ;;  %v4069_v5 = vld [vmem:[#allocation3 + $0x8] sm:$0xff]  ;;  %v3565_v30 = vor.u32 %v3564_v9, %v3560_v20  ;;  %v1907_v31 = vrot.slane %v7164_v21, 5  ;;  %v1910_v3 = vrot.slane %v7166_v41, 5  ;;  %v5367_v28 = vrot.slane %v7171_v44, 9  ;;  %2256 = vst.msk [vmem:[#allocation3 + $0x210] sm:$0xff] %vm1775_vm0, %v6915_v0  ;;  %v6056_v24 = vld [vmem:[%s7987_s3 + $0x110] sm:$0xff]  }
 0x114   : > { %4516 = vmatprep.mubr.bf16.mxu0 %v4069_v5  ;;  %v6069_v4 = vld [vmem:[#allocation2 + $0x9c] sm:$0xff]   ;;  %v3556_v61 = vrot.slane %v3555_v22, 4  ;;  %v2950_v34 = vsel %vm6559_vm14, %v2948_v23, %v2949_v7  ;;  %v1991_v43 = vrot.slane %v1835_v32, 5  ;;  %v1994_v17 = vrot.slane %v1836_v33, 5  ;;  %v3273_v51 = vld [vmem:[#allocation2 + $0xac] sm:$0xf] }
 0x115   : > { %v4129_v8 = vld [vmem:[#allocation3 + $0x1e8] sm:$0xff]  ;;  %4517 = vmatmul.mubr.bf16.vlgmr.msra.gmra.mrb[0].mxu0 %v4068_v6  ;;  %v3566_v42 = vrot.slane %v3565_v30, 4  ;;  %v5444_v54 = vcombine.low %v2947_v37, %v2950_v34  ;;  %v1908_v11 = vsel %vm6559_vm14, %v5355_v57, %v1907_v31  ;;  %v1909_v29 = vrot.slane %v1907_v31, 4  ;;  %v3274_v0 = vld [vmem:[#allocation2 + $0xb0] sm:$0x1]  ;;  %3231 = vst.msk [vmem:[#allocation3 + $0x1d0] sm:$0xff] %vm1227_vm15, %v6069_v4 }
 0x116   : > { %4612 = vmatprep.mubr.bf16.mxu1 %v4129_v8  ;;  %5925 = vmatpush3.bf16.msra.mxu0 %v6078_v18  ;;  %v2807_v13 = vld [vmem:[#allocation2 + $0x9c] sm:$0xe]  ;;  %v2808_v10 = vld [vmem:[#allocation2 + $0xa0] sm:$0xf]  ;;  %v7215_v25 = vld [vmem:[#allocation2 + $0xa4] sm:$0x1]  ;;  %v3561_v53 = vsel %vm6222_vm11, %v3556_v61, %v3560_v20  ;;  %v1992_v50 = vsel %vm6559_vm14, %v5367_v28, %v1991_v43 }
 0x117   : > { %4613 = vmatmul.mubr.bf16.vlgmr.msra.gmra.mrb[0].mxu1 %v4128_v46  ;;  %5926 = vmatprep.subr.bf16.mxu0 %v6046_v14  ;;  %v1993_v39 = vrot.slane %v1991_v43, 4  ;;  %v3573_v19 = vshrl.u32 %v3272_v49, 16  ;;  %v3571_v36 = vsel %vm6222_vm11, %v3566_v42, %v3570_v55  ;;  %v1911_v26 = vsel %vm6559_vm14, %v1909_v29, %v1910_v3  ;;  %v4074_v21 = vld [vmem:[#allocation3 + $0x30] sm:$0xff]  ;;  %v4073_v41 = vld [vmem:[#allocation3 + $0x28] sm:$0xff]  ;;  %v1837_v7 = vld [vmem:[#allocation2 + $0xb4] sm:$0xe]  ;;  %v3721_v29 = vpop.permute.xlu1 %3720 }
 0x118   : > { %5793 = vmatpush3.bf16.msra.mxu1 %v6028_v48  ;;  %3049 = vrot.lane.b32.xlu1 %v5444_v54, %s6088_s7  ;;  %v3576_v48 = vshll.u32 %v3272_v49, 16  ;;  %v3582_v44 = vshll.u32 %v3273_v51, 16  ;;  %v1801_v60 = vld [vmem:[#allocation2 + $0x24] sm:$0xe]  ;;  %v5476_v6 = vcombine.low %v3561_v53, %v3571_v36  ;;  %v5371_v12 = vcombine.low %v1908_v11, %v1911_v26  ;;  %v1802_v52 = vld [vmem:[#allocation2 + $0x28] sm:$0xf]  ;;  %v7265_v11 = vpop.permute.xlu0 %2207 }
 0x119   : > { %5794 = vmatprep.subr.bf16.mxu1 %v6030_v58  ;;  %4524 = vmatprep.mubr.bf16.mxu0 %v4074_v21  ;;  %v1995_v62 = vsel %vm6559_vm14, %v1993_v39, %v1994_v17  ;;  %v3575_v40 = vrot.slane %v3573_v19, 4  ;;  %v1803_v32 = vld [vmem:[#allocation2 + $0x2c] sm:$0x1]  ;;  %v6034_v58 = vld [vmem:[%s7987_s3 + $0x90] sm:$0xff]   ;;  %v3586_v15 = vshrl.u32 %v3273_v51, 16  ;;  %v6036_v47 = vld [vmem:[%s7987_s3 + $0xd8] sm:$0xff]  }
 0x11a   : > { %5927 = vmatpush3.bf16.msra.mxu0 %v6046_v14  ;;  %v5383_v5 = vcombine.low %v1992_v50, %v1995_v62  ;;  %v3578_v63 = vrot.slane %v3576_v48, 5  ;;  %v7234_v35 = vrot.slane %v3582_v44, 5  ;;  %v1838_v46 = vld [vmem:[#allocation2 + $0xb8] sm:$0xf]  ;;  %v7236_v14 = vld [vmem:[#allocation2 + $0xbc] sm:$0x1]  ;;  %3738 = vrot.lane.b32.xlu0 %v5476_v6, %s6088_s7 }
 0x11b   : > { %5928 = vmatprep.subr.bf16.mxu0 %v6056_v24  ;;  %2069 = vst.msk [vmem:[#allocation3 + $0x58] sm:$0xff] %vm1227_vm15, %v5371_v12  ;;  %v3592_v38 = vshll.u32 %v3274_v0, 16  ;;  %v5429_v20 = vrot.slane %v2807_v13, 9  ;;  %v2953_v9 = vrot.slane %v2808_v10, 5  ;;  %v2956_v55 = vrot.slane %v7215_v25, 5  ;;  %v4133_v8 = vld [vmem:[#allocation3 + $0x208] sm:$0xff] }
 0x11c   : > { %5795 = vmatpush3.bf16.msra.mxu1 %v6031_v59  ;;  %v6037_v33 = vld [vmem:[%s7987_s3 + $0x98] sm:$0xff]   ;;  %v8017_v37 = vld [vmem:[#allocation7_spill] sm:$0xff]  ;;  %2081 = vst.msk [vmem:[#allocation3 + $0x238] sm:$0xff] %vm1227_vm15, %v5383_v5  ;;  %v4134_v23 = vld [vmem:[#allocation3 + $0x210] sm:$0xff]  ;;  %v3579_v57 = vor.u32 %v3578_v63, %v3575_v40  ;;  %v3588_v59 = vrot.slane %v3586_v15, 4  ;;  %v5356_v30 = vrot.slane %v1801_v60, 9  ;;  %v1740_v15 = vpop.permute.xlu0 %1739 }
 0x11d   : > { %5796 = vmatprep.subr.bf16.mxu1 %v6033_v2  ;;  %4525 = vmatmul.mubr.bf16.gmra.mrb[4].mxu0 %v4073_v41  ;;  %v6063_v22 = vld [vmem:[%s7987_s3 + $0x118] sm:$0xff]   ;;  %2245 = vst.msk [vmem:[#allocation3 + $0x58] sm:$0xff] %vm1775_vm0, %v8017_v37  ;;  %v1914_v31 = vrot.slane %v1802_v52, 5  ;;  %v7253_v3 = vld [vmem:[#allocation2 + $0xb4] sm:$0xf]  ;;  %v6039_v18 = vld [vmem:[%s7987_s3 + $0xe0] sm:$0xff]   ;;  %v2954_v2 = vsel %vm6559_vm14, %v5429_v20, %v2953_v9 }
 0x11e   : > { %5929 = vmatpush3.bf16.msra.mxu0 %v6056_v24  ;;  %v8018_v28 = vld [vmem:[#allocation8_spill] sm:$0xff]  ;;  %4620 = vmatprep.mubr.bf16.mxu1 %v4134_v23  ;;  %v3594_v49 = vrot.slane %v3592_v38, 5  ;;  %v2955_v4 = vrot.slane %v2953_v9, 4  ;;  %v1917_v61 = vrot.slane %v1803_v32, 5  ;;  %v6070_v43 = vld [vmem:[#allocation2 + $0xa8] sm:$0xff]   ;;  %v3580_v17 = vrot.slane %v3579_v57, 4 }
 0x11f   : > { %2257 = vst.msk [vmem:[#allocation3 + $0x238] sm:$0xff] %vm1775_vm0, %v8018_v28  ;;  %v3276_v34 = vld [vmem:[#allocation2 + $0xb8] sm:$0xf]  ;;  %v3589_v51 = vor.u32 %v3588_v59, %v7234_v35  ;;  %v1915_v42 = vsel %vm6559_vm14, %v5356_v30, %v1914_v31  ;;  %v1916_v24 = vrot.slane %v1914_v31, 4  ;;  %4621 = vmatmul.mubr.bf16.gmra.mrb[4].mxu1 %v4133_v8  ;;  %v3277_v54 = vld [vmem:[#allocation2 + $0xbc] sm:$0x1]  ;;  %5930 = vmatprep.subr.bf16.mxu0 %v6063_v22 }
 0x120   : > { %5797 = vmatpush3.bf16.msra.mxu1 %v6034_v58  ;;  %v2957_v0 = vsel %vm6559_vm14, %v2955_v4, %v2956_v55  ;;  %v5368_v13 = vrot.slane %v1837_v7, 9  ;;  %v1998_v10 = vrot.slane %v1838_v46, 5  ;;  %v2001_v25 = vrot.slane %v7236_v14, 5  ;;  %3766 = vst.msk [vmem:[#allocation3 + $0x68] sm:$0xff] %vm1775_vm0, %v3721_v29  ;;  %v2810_v36 = vld [vmem:[#allocation2 + $0xa8] sm:$0xe] }
 0x121   : > { %5798 = vmatprep.subr.bf16.mxu1 %v6036_v47  ;;  %3232 = vst.msk [vmem:[#allocation3 + $0x1f8] sm:$0xff] %vm1227_vm15, %v6070_v43  ;;  %v3585_v53 = vsel %vm6222_vm11, %v3580_v17, %v7234_v35  ;;  %v3590_v50 = vrot.slane %v3589_v51, 4  ;;  %v5445_v39 = vcombine.low %v2954_v2, %v2957_v0  ;;  %v1918_v19 = vsel %vm6559_vm14, %v1916_v24, %v1917_v61  ;;  %v2811_v26 = vld [vmem:[#allocation2 + $0xac] sm:$0xf]  ;;  %v7277_v21 = vld [vmem:[#allocation2 + $0xb0] sm:$0x1] }
 0x122   : > { %v6040_v41 = vld [vmem:[%s7987_s3 + $0xa0] sm:$0xff]   ;;  %5931 = vmatpush3.bf16.msra.mxu0 %v6063_v22  ;;  %v5372_v48 = vcombine.low %v1915_v42, %v1918_v19  ;;  %v1999_v44 = vsel %vm6559_vm14, %v5368_v13, %v1998_v10  ;;  %v2000_v60 = vrot.slane %v1998_v10, 4  ;;  %v3597_v6 = vshrl.u32 %v7253_v3, 16  ;;  %v1804_v12 = vld [vmem:[#allocation2 + $0x30] sm:$0xe]  ;;  %v6043_v40 = vld [vmem:[%s7987_s3 + $0xe8] sm:$0xff]  }
 0x123   : > { %v1805_v62 = vld [vmem:[#allocation2 + $0x34] sm:$0xf]  ;;  %v3595_v52 = vsel %vm6222_vm11, %v3590_v50, %v3594_v49  ;;  %3051 = vrot.lane.b32.xlu1 %v5445_v39, %s6088_s7  ;;  %v4078_v32 = vld [vmem:[#allocation3 + $0x50] sm:$0xff]  ;;  %v3600_v58 = vshll.u32 %v7253_v3, 16  ;;  %v3606_v5 = vshll.u32 %v3276_v34, 16  ;;  %v3610_v63 = vshrl.u32 %v3276_v34, 16 }
 0x124   : > { %5799 = vmatpush3.bf16.msra.mxu1 %v6037_v33  ;;  %v7292_v35 = vld [vmem:[#allocation2 + $0x38] sm:$0x1]  ;;  %v5477_v7 = vcombine.low %v3585_v53, %v3595_v52  ;;  %2070 = vst.msk [vmem:[#allocation3 + $0x80] sm:$0xff] %vm1227_vm15, %v5372_v48  ;;  %v4079_v46 = vld [vmem:[#allocation3 + $0x58] sm:$0xff]  ;;  %v2002_v14 = vsel %vm6559_vm14, %v2000_v60, %v2001_v25  ;;  %v3599_v47 = vrot.slane %v3597_v6, 4  ;;  %v3616_v38 = vshll.u32 %v3277_v54, 16  ;;  %v7329_v48 = vpop.permute.xlu1 %3031 }
 0x125   : > { %5800 = vmatprep.subr.bf16.mxu1 %v6039_v18  ;;  %v4138_v20 = vld [vmem:[#allocation3 + $0x230] sm:$0xff]  ;;  %1782 = vst.msk [vmem:[#allocation3 + $0xf0] sm:$0xff] %vm1775_vm0, %v1740_v15  ;;  %v8019_v55 = vld [vmem:[#allocation9_spill] sm:$0xff]  ;;  %4532 = vmatprep.mubr.bf16.mxu0 %v4079_v46  ;;  %v5384_v8 = vcombine.low %v1999_v44, %v2002_v14  ;;  %v3602_v22 = vrot.slane %v3600_v58, 5  ;;  %v3608_v37 = vrot.slane %v3606_v5, 5  ;;  %v3612_v23 = vrot.slane %v3610_v63, 4 }
 0x126   : > { %v576_v9 = vld [vmem:[#allocation2 + $0xc8] sm:$0x1]  ;;  %2246 = vst.msk [vmem:[#allocation3 + $0x80] sm:$0xff] %vm1775_vm0, %v8019_v55  ;;  %v4139_v33 = vld [vmem:[#allocation3 + $0x238] sm:$0xff]  ;;  %v3278_v57 = vld [vmem:[#allocation2 + $0xc0] sm:$0xf]  ;;  %3740 = vrot.lane.b32.xlu0 %v5477_v7, %s6088_s7  ;;  %4533 = vmatmul.mubr.bf16.gmra.mrb[8].mxu0 %v4078_v32 }
 0x127   : > { %v7300_v59 = vld [vmem:[#allocation2 + $0xc4] sm:$0xf]  ;;  %v3618_v30 = vrot.slane %v3616_v38, 5  ;;  %v5430_v31 = vrot.slane %v2810_v36, 9  ;;  %v2960_v3 = vrot.slane %v2811_v26, 5  ;;  %v2963_v18 = vrot.slane %v7277_v21, 5  ;;  %4628 = vmatprep.mubr.bf16.mxu1 %v4139_v33 }
 0x128   : > { %2082 = vst.msk [vmem:[#allocation3 + $0x260] sm:$0xff] %vm1227_vm15, %v5384_v8  ;;  %v3603_v28 = vor.u32 %v3602_v22, %v3599_v47  ;;  %v3613_v49 = vor.u32 %v3612_v23, %v3608_v37  ;;  %v5357_v2 = vrot.slane %v1804_v12, 9  ;;  %v1921_v4 = vrot.slane %v1805_v62, 5  ;;  %5801 = vmatpush3.bf16.msra.mxu1 %v6040_v41  ;;  %v6044_v61 = vld [vmem:[%s7987_s3 + $0xa8] sm:$0xff]   ;;  %v6071_v34 = vld [vmem:[#allocation2 + $0xb4] sm:$0xff]  }
 0x129   : > { %v8020_v43 = vld [vmem:[#allocation10_spill] sm:$0xff]  ;;  %v2961_v17 = vsel %vm6559_vm14, %v5430_v31, %v2960_v3  ;;  %v2962_v51 = vrot.slane %v2960_v3, 4  ;;  %v1924_v42 = vrot.slane %v7292_v35, 5  ;;  %4629 = vmatmul.mubr.bf16.gmra.mrb[8].mxu1 %v4138_v20  ;;  %5802 = vmatprep.subr.bf16.mxu1 %v6043_v40  ;;  %v577_v54 = vsel %vm6142_vm5, 0, %v576_v9  ;;  %v2813_v29 = vld [vmem:[#allocation2 + $0xb4] sm:$0xe] }
 0x12a   : > { %2258 = vst.msk [vmem:[#allocation3 + $0x260] sm:$0xff] %vm1775_vm0, %v8020_v43  ;;  %v2814_v0 = vld [vmem:[#allocation2 + $0xb8] sm:$0xf]  ;;  %v6045_v13 = vld [vmem:[%s7987_s3 + $0xf0] sm:$0xff]   ;;  %v3604_v10 = vrot.slane %v3603_v28, 4  ;;  %v3614_v25 = vrot.slane %v3613_v49, 4  ;;  %v1922_v53 = vsel %vm6559_vm14, %v5357_v2, %v1921_v4 }
 0x12b   : > { %v1923_v50 = vrot.slane %v1921_v4, 4  ;;  %578 = vst [vmem:[#allocation2 + $0xc8] sm:$0x1] %v577_v54  ;;  %v7320_v39 = vld [vmem:[#allocation2 + $0xbc] sm:$0x1]  ;;  %3233 = vst.msk [vmem:[#allocation3 + $0x220] sm:$0xff] %vm1227_vm15, %v6071_v34  ;;  %v2964_v19 = vsel %vm6559_vm14, %v2962_v51, %v2963_v18 }
 0x12c   : > { %v3621_v36 = vshrl.u32 %v3278_v57, 16  ;;  %v3624_v26 = vshll.u32 %v3278_v57, 16  ;;  %v3630_v21 = vshll.u32 %v7300_v59, 16  ;;  %v6047_v41 = vld [vmem:[%s7987_s3 + $0xb0] sm:$0xff]   ;;  %v3609_v44 = vsel %vm6222_vm11, %v3604_v10, %v3608_v37  ;;  %5803 = vmatpush3.bf16.msra.mxu1 %v6044_v61  ;;  %v1807_v40 = vld [vmem:[#allocation2 + $0x3c] sm:$0xe] }
 0x12d   : > { %v3619_v60 = vsel %vm6222_vm11, %v3614_v25, %v3618_v30  ;;  %v5446_v6 = vcombine.low %v2961_v17, %v2964_v19  ;;  %v1925_v12 = vsel %vm6559_vm14, %v1923_v50, %v1924_v42  ;;  %v4083_v62 = vld [vmem:[#allocation3 + $0x78] sm:$0xff]  ;;  %v1808_v52 = vld [vmem:[#allocation2 + $0x40] sm:$0xf]  ;;  %v4084_v5 = vld [vmem:[#allocation3 + $0x80] sm:$0xff]  ;;  %5804 = vmatprep.subr.bf16.mxu1 %v6045_v13  ;;  %v3634_v14 = vshrl.u32 %v7300_v59, 16 }
 0x12e   : > { %v5478_v32 = vcombine.low %v3609_v44, %v3619_v60  ;;  %v5373_v58 = vcombine.low %v1922_v53, %v1925_v12  ;;  %v3623_v63 = vrot.slane %v3621_v36, 4  ;;  %v3626_v35 = vrot.slane %v3624_v26, 5  ;;  %v1809_v15 = vld [vmem:[#allocation2 + $0x44] sm:$0x1]  ;;  %v6050_v7 = vld [vmem:[%s7987_s3 + $0xf8] sm:$0xff]   ;;  %4540 = vmatprep.mubr.bf16.mxu0 %v4084_v5  ;;  %v4143_v23 = vld [vmem:[#allocation3 + $0x258] sm:$0xff] }
 0x12f   : > { %3053 = vrot.lane.b32.xlu1 %v5446_v6, %s6088_s7  ;;  %v7341_v46 = vrot.slane %v3630_v21, 5  ;;  %v5431_v47 = vrot.slane %v2813_v29, 9  ;;  %v2967_v38 = vrot.slane %v2814_v0, 5  ;;  %v2260_v20 = vld [vmem:[#allocation2 + $0x10] sm:$0xf]  ;;  %v6051_v9 = vld [vmem:[%s7987_s3 + $0xb8] sm:$0xff]   ;;  %4541 = vmatmul.mubr.bf16.gmra.mrb[12].mxu0 %v4083_v62  ;;  %v7358_v29 = vpop.permute.xlu0 %2209  ;;  %v3723_v0 = vpop.permute.xlu1 %3722 }
 0x130   : > { %3742 = vrot.lane.b32.xlu0 %v5478_v32, %s6088_s7  ;;  %2071 = vst.msk [vmem:[#allocation3 + $0xa8] sm:$0xff] %vm1227_vm15, %v5373_v58  ;;  %v3627_v55 = vor.u32 %v3626_v35, %v3623_v63  ;;  %v2970_v8 = vrot.slane %v7320_v39, 5  ;;  %v5358_v33 = vrot.slane %v1807_v40, 9  ;;  %v1928_v22 = vrot.slane %v1808_v52, 5  ;;  %v2261_v37 = vld [vmem:[#allocation2 + $0x14] sm:$0x1]  ;;  %5805 = vmatpush3.bf16.msra.mxu1 %v6047_v41 }
 0x131   : > { %v4071_v57 = vld [vmem:[#allocation3 + $0x18] sm:$0xff]  ;;  %v6072_v59 = vld [vmem:[#allocation2 + $0xc0] sm:$0xff]   ;;  %v4144_v31 = vld [vmem:[#allocation3 + $0x260] sm:$0xff]  ;;  %v3636_v3 = vrot.slane %v3634_v14, 4  ;;  %v2968_v18 = vsel %vm6559_vm14, %v5431_v47, %v2967_v38  ;;  %v2969_v28 = vrot.slane %v2967_v38, 4  ;;  %v1931_v49 = vrot.slane %v1809_v15, 5  ;;  %5806 = vmatprep.subr.bf16.mxu1 %v6050_v7 }
 0x132   : > { %v8022_v30 = vld [vmem:[#allocation11_spill] sm:$0xff]  ;;  %v2259_v2 = vld [vmem:[#allocation2 + $0xc] sm:$0xf]  ;;  %4636 = vmatprep.mubr.bf16.mxu1 %v4144_v31  ;;  %v1096_v34 = vld [vmem:[#allocation2 + $0xc8] sm:$0x1]  ;;  %v7354_v43 = vrot.slane %v3627_v55, 4  ;;  %v1929_v17 = vsel %vm6559_vm14, %v5358_v33, %v1928_v22 }
 0x133   : > { %2247 = vst.msk [vmem:[#allocation3 + $0xa8] sm:$0xff] %vm1775_vm0, %v8022_v30  ;;  %v523_v4 = vld [vmem:[#allocation2 + $0xcc] sm:$0x1]  ;;  %v579_v61 = vld [vmem:[#allocation2 + $0xd4] sm:$0x1]  ;;  %v1930_v51 = vrot.slane %v1928_v22, 4  ;;  %v3637_v50 = vor.u32 %v3636_v3, %v7341_v46  ;;  %v2971_v39 = vsel %vm6559_vm14, %v2969_v28, %v2970_v8  ;;  %4637 = vmatmul.mubr.bf16.gmra.mrb[12].mxu1 %v4143_v23  ;;  %v1742_v7 = vpop.permute.xlu0 %1741 }
 0x134   : > { %v2317_v42 = vshll.u32 %v2260_v20, 16  ;;  %v3282_v54 = vld [vmem:[#allocation2 + $0xd0] sm:$0xf]  ;;  %3234 = vst.msk [vmem:[#allocation3 + $0x248] sm:$0xff] %vm1227_vm15, %v6072_v59  ;;  %v8023_v13 = vld [vmem:[#allocation6_spill] sm:$0xff]  ;;  %v2321_v19 = vshrl.u32 %v2260_v20, 16  ;;  %v3633_v21 = vsel %vm6222_vm11, %v7354_v43, %v7341_v46  ;;  %v5447_v41 = vcombine.low %v2968_v18, %v2971_v39  ;;  %4677 = vmatprep.mubr.bf16.mxu1 %v4071_v57  ;;  %5807 = vmatpush3.bf16.msra.mxu1 %v6051_v9 }
 0x135   : > { %v8024_v10 = vrot.slane %v8023_v13, 4  ;;  %v2816_v36 = vld [vmem:[#allocation2 + $0xc0] sm:$0xe]  ;;  %v2817_v26 = vld [vmem:[#allocation2 + $0xc4] sm:$0xf]  ;;  %3767 = vst.msk [vmem:[#allocation3 + $0x90] sm:$0xff] %vm1775_vm0, %v3723_v0  ;;  %v1932_v44 = vsel %vm6559_vm14, %v1930_v51, %v1931_v49  ;;  %v7403_v13 = vpop.permute.xlu1 %3033 }
 0x136   : > { %v7375_v60 = vrot.slane %v2317_v42, 5  ;;  %v1810_v6 = vld [vmem:[#allocation2 + $0x48] sm:$0xe]  ;;  %v7377_v12 = vrot.slane %v3637_v50, 4  ;;  %v5374_v62 = vcombine.low %v1929_v17, %v1932_v44  ;;  %v2323_v40 = vrot.slane %v2321_v19, 4  ;;  %3055 = vrot.lane.b32.xlu1 %v5447_v41, %s6088_s7  ;;  %v4088_v38 = vld [vmem:[#allocation3 + $0xa0] sm:$0xff] }
 0x137   : > { %v1097_v53 = vsel %vm6135_vm3, %v8024_v10, %v1096_v34  ;;  %v2327_v52 = vshll.u32 %v2261_v37, 16  ;;  %v1811_v32 = vld [vmem:[#allocation2 + $0x4c] sm:$0xf]  ;;  %v2308_v58 = vshrl.u32 %v2259_v2, 16  ;;  %v2311_v5 = vshll.u32 %v2259_v2, 16  ;;  %1783 = vst.msk [vmem:[#allocation3 + $0x118] sm:$0xff] %vm1775_vm0, %v1742_v7 }
 0x138   : > { %1098 = vst [vmem:[#allocation2 + $0xc8] sm:$0x1] %v1097_v53  ;;  %v524_v63 = vsel %vm6135_vm3, 0, %v523_v4  ;;  %v580_v35 = vsel %vm6142_vm5, 0, %v579_v61  ;;  %v7384_v15 = vld [vmem:[#allocation2 + $0x50] sm:$0x1]  ;;  %v2324_v14 = vor.u32 %v2323_v40, %v7375_v60 }
 0x139   : > { %2072 = vst.msk [vmem:[#allocation3 + $0xd0] sm:$0xff] %vm1227_vm15, %v5374_v62  ;;  %v2329_v47 = vrot.slane %v2327_v52, 5  ;;  %525 = vst [vmem:[#allocation2 + $0xcc] sm:$0x1] %v524_v63  ;;  %v3654_v20 = vshll.u32 %v3282_v54, 16  ;;  %v3658_v9 = vshrl.u32 %v3282_v54, 16  ;;  %v3725_v43 = vpop.permute.xlu1 %3724 }
 0x13a   : > { %581 = vst [vmem:[#allocation2 + $0xd4] sm:$0x1] %v580_v35  ;;  %v2262_v55 = vld [vmem:[#allocation2 + $0x18] sm:$0xf]  ;;  %2248 = vst.msk [vmem:[#allocation3 + $0xd0] sm:$0xff] %vm1775_vm0, %v7154_v1  ;;  %v2310_v24 = vrot.slane %v2308_v58, 4 }
 0x13b   : > { %v2313_v8 = vrot.slane %v2311_v5, 5  ;;  %v4089_v33 = vld [vmem:[#allocation3 + $0xa8] sm:$0xff]  ;;  %v5432_v22 = vrot.slane %v2816_v36, 9  ;;  %v2974_v37 = vrot.slane %v2817_v26, 5  ;;  %v2325_v23 = vrot.slane %v2324_v14, 4  ;;  %3768 = vst.msk [vmem:[#allocation3 + $0xb8] sm:$0xff] %vm1775_vm0, %v3725_v43 }
 0x13c   : > { %4548 = vmatprep.mubr.bf16.mxu0 %v4089_v33  ;;  %v7391_v57 = vrot.slane %v3654_v20, 5  ;;  %v3660_v59 = vrot.slane %v3658_v9, 4  ;;  %v5359_v30 = vrot.slane %v1810_v6, 9  ;;  %v1935_v28 = vrot.slane %v1811_v32, 5  ;;  %v7395_v49 = vld [vmem:[#allocation2 + $0x1c] sm:$0xf] }
 0x13d   : > { %v2314_v31 = vor.u32 %v2313_v8, %v2310_v24  ;;  %4549 = vmatmul.mubr.bf16.gmra.mrb[16].mxu0 %v4088_v38  ;;  %v2975_v3 = vsel %vm6559_vm14, %v5432_v22, %v2974_v37  ;;  %v2976_v18 = vrot.slane %v2974_v37, 4  ;;  %v2330_v2 = vsel %vm6222_vm11, %v2325_v23, %v2329_v47  ;;  %v2264_v44 = vld [vmem:[#allocation2 + $0x20] sm:$0x1]  ;;  %v1813_v62 = vld [vmem:[#allocation2 + $0x54] sm:$0xe]  ;;  %v7457_v43 = vpop.permute.xlu1 %3035 }
 0x13e   : > { %v3661_v4 = vor.u32 %v3660_v59, %v7391_v57  ;;  %v1938_v34 = vrot.slane %v7384_v15, 5  ;;  %v2332_v17 = vshrl.u32 %v2262_v55, 16  ;;  %v1936_v0 = vsel %vm6559_vm14, %v5359_v30, %v1935_v28  ;;  %v4093_v63 = vld [vmem:[#allocation3 + $0xc8] sm:$0xff]  ;;  %v1814_v35 = vld [vmem:[#allocation2 + $0x58] sm:$0xf]  ;;  %v7433_v30 = vpop.permute.xlu0 %2211 }
 0x13f   : > { %v3280_v1 = vld [vmem:[#allocation2 + $0xc8] sm:$0x1]  ;;  %v2315_v42 = vrot.slane %v2314_v31, 4  ;;  %v1937_v25 = vrot.slane %v1935_v28, 4  ;;  %v2335_v50 = vshll.u32 %v2262_v55, 16  ;;  %v2341_v6 = vshll.u32 %v7395_v49, 16 }
 0x140   : > { %v2818_v61 = vld [vmem:[#allocation2 + $0xc8] sm:$0x1]  ;;  %v3640_v51 = vshll.u32 %v3280_v1, 16  ;;  %v7405_v10 = vrot.slane %v3661_v4, 4  ;;  %v2334_v53 = vrot.slane %v2332_v17, 4  ;;  %v6073_v7 = vld [vmem:[#allocation2 + $0xcc] sm:$0xff]  }
 0x141   : > { %v2977_v54 = vrot.slane %v2818_v61, 5  ;;  %v2320_v19 = vsel %vm6222_vm11, %v2315_v42, %v7375_v60  ;;  %v3281_v36 = vld [vmem:[#allocation2 + $0xcc] sm:$0xf]  ;;  %v3283_v26 = vld [vmem:[#allocation2 + $0xd4] sm:$0x1]  ;;  %v1939_v47 = vsel %vm6559_vm14, %v1937_v25, %v1938_v34  ;;  %v2337_v38 = vrot.slane %v2335_v50, 5 }
 0x142   : > { %v3642_v39 = vrot.slane %v3640_v51, 5  ;;  %v5401_v40 = vcombine.low %v2320_v19, %v2330_v2  ;;  %v3645_v52 = vshrl.u32 %v3281_v36, 16  ;;  %v3648_v32 = vshll.u32 %v3281_v36, 16  ;;  %v4094_v5 = vld [vmem:[#allocation3 + $0xd0] sm:$0xff]  ;;  %v1815_v15 = vld [vmem:[#allocation2 + $0x5c] sm:$0x1]  ;;  %v1744_v36 = vpop.permute.xlu0 %1743 }
 0x143   : > { %v2978_v41 = vsel %vm6559_vm14, %v2976_v18, %v2977_v54  ;;  %v3664_v58 = vshll.u32 %v3283_v26, 16  ;;  %4556 = vmatprep.mubr.bf16.mxu0 %v4094_v5  ;;  %3235 = vst.msk [vmem:[#allocation3 + $0x270] sm:$0xff] %vm1227_vm15, %v6073_v7  ;;  %v2338_v8 = vor.u32 %v2337_v38, %v2334_v53  ;;  %v2343_v33 = vrot.slane %v2341_v6, 5  ;;  %v2265_v46 = vld [vmem:[#allocation2 + $0x24] sm:$0xf]  ;;  %v4076_v53 = vld [vmem:[#allocation3 + $0x40] sm:$0xff] }
 0x144   : > { %v3643_v60 = vsel %vm6222_vm11, %v7377_v12, %v3642_v39  ;;  %v5448_v14 = vcombine.low %v2975_v3, %v2978_v41  ;;  %2755 = vst.msk [vmem:[#allocation3 + $0x10] sm:$0xff] %vm1227_vm15, %v5401_v40  ;;  %v3647_v9 = vrot.slane %v3645_v52, 4  ;;  %v3650_v55 = vrot.slane %v3648_v32, 5  ;;  %v1816_v34 = vld [vmem:[#allocation2 + $0x60] sm:$0xe]  ;;  %v4098_v38 = vld [vmem:[#allocation3 + $0xf0] sm:$0xff] }
 0x145   : > { %v5479_v20 = vcombine.low %v3633_v21, %v3643_v60  ;;  %v3666_v24 = vrot.slane %v3664_v58, 5  ;;  %3075 = vst.msk [vmem:[#allocation3 + $0x10] sm:$0xff] %vm1775_vm0, %v7136_v16  ;;  %v5375_v12 = vcombine.low %v1936_v0, %v1939_v47  ;;  %v2345_v22 = vshrl.u32 %v7395_v49, 16  ;;  %4557 = vmatmul.mubr.bf16.gmra.mrb[20].mxu0 %v4093_v63  ;;  %v2266_v16 = vld [vmem:[#allocation2 + $0x28] sm:$0xf]  ;;  %1784 = vst.msk [vmem:[#allocation3 + $0x140] sm:$0xff] %vm1775_vm0, %v1744_v36 }
 0x146   : > { %3057 = vrot.lane.b32.xlu1 %v5448_v14, %s6088_s7  ;;  %v3651_v21 = vor.u32 %v3650_v55, %v3647_v9  ;;  %v2351_v23 = vshll.u32 %v2264_v44, 16  ;;  %v5360_v59 = vrot.slane %v1813_v62, 9  ;;  %v2339_v31 = vrot.slane %v2338_v8, 4  ;;  %v2267_v49 = vld [vmem:[#allocation2 + $0x2c] sm:$0x1] }
 0x147   : > { %3744 = vrot.lane.b32.xlu0 %v5479_v20, %s6088_s7  ;;  %v3667_v37 = vsel %vm6222_vm11, %v7405_v10, %v3666_v24  ;;  %2073 = vst.msk [vmem:[#allocation3 + $0xf8] sm:$0xff] %vm1227_vm15, %v5375_v12  ;;  %v2347_v3 = vrot.slane %v2345_v22, 4  ;;  %v1942_v18 = vrot.slane %v1814_v35, 5  ;;  %v1945_v28 = vrot.slane %v1815_v15, 5  ;;  %v1817_v17 = vld [vmem:[#allocation2 + $0x64] sm:$0xf] }
 0x148   : > { %v3652_v1 = vrot.slane %v3651_v21, 4  ;;  %2249 = vst.msk [vmem:[#allocation3 + $0xf8] sm:$0xff] %vm1775_vm0, %v7265_v11  ;;  %v2353_v2 = vrot.slane %v2351_v23, 5  ;;  %v2356_v4 = vshrl.u32 %v2265_v46, 16  ;;  %v2359_v61 = vshll.u32 %v2265_v46, 16 }
 0x149   : > { %v2344_v51 = vsel %vm6222_vm11, %v2339_v31, %v2343_v33  ;;  %v2348_v42 = vor.u32 %v2347_v3, %v2343_v33  ;;  %v1943_v54 = vsel %vm6559_vm14, %v5360_v59, %v1942_v18  ;;  %v1944_v0 = vrot.slane %v1942_v18, 4  ;;  %v1818_v10 = vld [vmem:[#allocation2 + $0x68] sm:$0x1]  ;;  %v2268_v19 = vld [vmem:[#allocation2 + $0x30] sm:$0xf] }
 0x14a   : > { %v3657_v25 = vsel %vm6222_vm11, %v3652_v1, %v7391_v57  ;;  %v2358_v11 = vrot.slane %v2356_v4, 4  ;;  %v2361_v50 = vrot.slane %v2359_v61, 5  ;;  %v2365_v39 = vshll.u32 %v2266_v16, 16  ;;  %v2269_v62 = vld [vmem:[#allocation2 + $0x34] sm:$0xf] }
 0x14b   : > { %v5480_v26 = vcombine.low %v3657_v25, %v3667_v37  ;;  %v2349_v41 = vrot.slane %v2348_v42, 4  ;;  %v1946_v44 = vsel %vm6559_vm14, %v1944_v0, %v1945_v28  ;;  %v2369_v6 = vshrl.u32 %v2266_v16, 16  ;;  %v2270_v7 = vld [vmem:[#allocation2 + $0x38] sm:$0x1]  ;;  %v1819_v9 = vld [vmem:[#allocation2 + $0x6c] sm:$0xe] }
 0x14c   : > { %v4070_v40 = vld [vmem:[#allocation3 + $0x10] sm:$0xff]  ;;  %v5376_v52 = vcombine.low %v1943_v54, %v1946_v44  ;;  %v2362_v32 = vor.u32 %v2361_v50, %v2358_v11  ;;  %v2367_v58 = vrot.slane %v2365_v39, 5  ;;  %v2375_v57 = vshll.u32 %v2267_v49, 16  ;;  %v1820_v55 = vld [vmem:[#allocation2 + $0x70] sm:$0xf]  ;;  %v3727_v39 = vpop.permute.xlu1 %3726 }
 0x14d   : > { %3746 = vrot.lane.b32.xlu0 %v5480_v26, %s6088_s7  ;;  %v2354_v5 = vsel %vm6222_vm11, %v2349_v41, %v2353_v2  ;;  %4678 = vmatmul.mubr.bf16.vlgmr.msra.gmra.mrb[16].mxu1 %v4070_v40  ;;  %v2371_v63 = vrot.slane %v2369_v6, 4  ;;  %v5361_v35 = vrot.slane %v1816_v34, 9  ;;  %v1949_v15 = vrot.slane %v1817_v17, 5  ;;  %v1821_v46 = vld [vmem:[#allocation2 + $0x74] sm:$0x1]  ;;  %v2214_v40 = vpop.permute.xlu0 %2213  ;;  %3769 = vst.msk [vmem:[#allocation3 + $0xe0] sm:$0xff] %vm1775_vm0, %v3727_v39 }
 0x14e   : > { %v5402_v60 = vcombine.low %v2344_v51, %v2354_v5  ;;  %4685 = vmatprep.mubr.bf16.mxu1 %v4076_v53  ;;  %2074 = vst.msk [vmem:[#allocation3 + $0x120] sm:$0xff] %vm1227_vm15, %v5376_v52  ;;  %v2363_v14 = vrot.slane %v2362_v32, 4  ;;  %v2377_v47 = vrot.slane %v2375_v57, 5  ;;  %v1952_v20 = vrot.slane %v1818_v10, 5  ;;  %v2271_v2 = vld [vmem:[#allocation2 + $0x3c] sm:$0xf] }
 0x14f   : > { %2250 = vst.msk [vmem:[#allocation3 + $0x120] sm:$0xff] %vm1775_vm0, %v7358_v29  ;;  %v2372_v24 = vor.u32 %v2371_v63, %v2367_v58  ;;  %v4099_v12 = vld [vmem:[#allocation3 + $0xf8] sm:$0xff]  ;;  %v1950_v8 = vsel %vm6559_vm14, %v5361_v35, %v1949_v15  ;;  %v1951_v33 = vrot.slane %v1949_v15, 4  ;;  %v2380_v22 = vshrl.u32 %v2268_v19, 16  ;;  %v2272_v51 = vld [vmem:[#allocation2 + $0x40] sm:$0xf] }
 0x150   : > { %2756 = vst.msk [vmem:[#allocation3 + $0x38] sm:$0xff] %vm1227_vm15, %v5402_v60  ;;  %v2368_v21 = vsel %vm6222_vm11, %v2363_v14, %v2367_v58  ;;  %4564 = vmatprep.mubr.bf16.mxu0 %v4099_v12  ;;  %v2383_v37 = vshll.u32 %v2268_v19, 16  ;;  %v2389_v23 = vshll.u32 %v2269_v62, 16  ;;  %v2393_v59 = vshrl.u32 %v2269_v62, 16  ;;  %v2273_v10 = vld [vmem:[#allocation2 + $0x44] sm:$0x1] }
 0x151   : > { %3076 = vst.msk [vmem:[#allocation3 + $0x38] sm:$0xff] %vm1775_vm0, %v7227_v45  ;;  %v2373_v29 = vrot.slane %v2372_v24, 4  ;;  %4565 = vmatmul.mubr.bf16.gmra.mrb[24].mxu0 %v4098_v38  ;;  %v1953_v16 = vsel %vm6559_vm14, %v1951_v33, %v1952_v20  ;;  %v2382_v31 = vrot.slane %v2380_v22, 4  ;;  %v2399_v3 = vshll.u32 %v2270_v7, 16  ;;  %v1822_v19 = vld [vmem:[#allocation2 + $0x78] sm:$0xe] }
 0x152   : > { %v5377_v18 = vcombine.low %v1950_v8, %v1953_v16  ;;  %v2385_v28 = vrot.slane %v2383_v37, 5  ;;  %v2391_v49 = vrot.slane %v2389_v23, 5  ;;  %v2395_v1 = vrot.slane %v2393_v59, 4  ;;  %v1823_v36 = vld [vmem:[#allocation2 + $0x7c] sm:$0xf]  ;;  %v4103_v62 = vld [vmem:[#allocation3 + $0x118] sm:$0xff]  ;;  %v1746_v8 = vpop.permute.xlu0 %1745 }
 0x153   : > { %v2378_v4 = vsel %vm6222_vm11, %v2373_v29, %v2377_v47  ;;  %v2401_v61 = vrot.slane %v2399_v3, 5  ;;  %v5362_v34 = vrot.slane %v1819_v9, 9  ;;  %v1956_v17 = vrot.slane %v1820_v55, 5  ;;  %v7473_v26 = vld [vmem:[#allocation2 + $0x80] sm:$0x1]  ;;  %1785 = vst.msk [vmem:[#allocation3 + $0x168] sm:$0xff] %vm1775_vm0, %v1746_v8 }
 0x154   : > { %v5403_v45 = vcombine.low %v2368_v21, %v2378_v4  ;;  %2075 = vst.msk [vmem:[#allocation3 + $0x148] sm:$0xff] %vm1227_vm15, %v5377_v18  ;;  %v2386_v42 = vor.u32 %v2385_v28, %v2382_v31  ;;  %v2396_v54 = vor.u32 %v2395_v1, %v2391_v49  ;;  %v1959_v0 = vrot.slane %v1821_v46, 5  ;;  %v4081_v32 = vld [vmem:[#allocation3 + $0x68] sm:$0xff]  ;;  %v2274_v35 = vld [vmem:[#allocation2 + $0x48] sm:$0xf]  ;;  %s5568_s7 = sshll.u32 %s8027_s22, 8 }
 0x155   : > { %2251 = vst.msk [vmem:[#allocation3 + $0x148] sm:$0xff] %vm1775_vm0, %v7433_v30  ;;  %v1957_v25 = vsel %vm6559_vm14, %v5362_v34, %v1956_v17  ;;  %v1958_v53 = vrot.slane %v1956_v17, 4  ;;  %v2404_v11 = vshrl.u32 %v2271_v2, 16  ;;  %v2407_v50 = vshll.u32 %v2271_v2, 16  ;;  %v2275_v38 = vld [vmem:[#allocation2 + $0x4c] sm:$0xf]  ;;  %s7796_s26 = scalar_lea.vmem %s7988_s4, %s5568_s7 }
 0x156   : > { %2757 = vst.msk [vmem:[#allocation3 + $0x60] sm:$0xff] %vm1227_vm15, %v5403_v45  ;;  %v2387_v41 = vrot.slane %v2386_v42, 4  ;;  %v2397_v44 = vrot.slane %v2396_v54, 4  ;;  %v4104_v6 = vld [vmem:[#allocation3 + $0x120] sm:$0xff]  ;;  %v2413_v52 = vshll.u32 %v2272_v51, 16  ;;  %v2417_v30 = vshrl.u32 %v2272_v51, 16 }
 0x157   : > { %3077 = vst.msk [vmem:[#allocation3 + $0x60] sm:$0xff] %vm1775_vm0, %v7329_v48  ;;  %4572 = vmatprep.mubr.bf16.mxu0 %v4104_v6  ;;  %v1960_v58 = vsel %vm6559_vm14, %v1958_v53, %v1959_v0  ;;  %v2406_v57 = vrot.slane %v2404_v11, 4  ;;  %v2409_v5 = vrot.slane %v2407_v50, 5  ;;  %v2423_v63 = vshll.u32 %v2273_v10, 16  ;;  %v2276_v24 = vld [vmem:[#allocation2 + $0x50] sm:$0x1] }
 0x158   : > { %v4075_v15 = vld [vmem:[#allocation3 + $0x38] sm:$0xff]  ;;  %v2392_v7 = vsel %vm6222_vm11, %v2387_v41, %v2391_v49  ;;  %v2402_v60 = vsel %vm6222_vm11, %v2397_v44, %v2401_v61  ;;  %v5378_v14 = vcombine.low %v1957_v25, %v1960_v58  ;;  %v2415_v47 = vrot.slane %v2413_v52, 5  ;;  %v1825_v12 = vld [vmem:[#allocation2 + $0x84] sm:$0xe]  ;;  %v1826_v16 = vld [vmem:[#allocation2 + $0x88] sm:$0xf] }
 0x159   : > { %4686 = vmatmul.mubr.bf16.gmra.mrb[20].mxu1 %v4075_v15  ;;  %v5404_v48 = vcombine.low %v2392_v7, %v2402_v60  ;;  %4573 = vmatmul.mubr.bf16.gmra.mrb[28].mxu0 %v4103_v62  ;;  %v2410_v20 = vor.u32 %v2409_v5, %v2406_v57  ;;  %v2419_v9 = vrot.slane %v2417_v30, 4  ;;  %v2425_v55 = vrot.slane %v2423_v63, 5  ;;  %v1827_v1 = vld [vmem:[#allocation2 + $0x8c] sm:$0x1]  ;;  %v2277_v17 = vld [vmem:[#allocation2 + $0x54] sm:$0xf] }
 0x15a   : > { %4693 = vmatprep.mubr.bf16.mxu1 %v4081_v32  ;;  %2076 = vst.msk [vmem:[#allocation3 + $0x170] sm:$0xff] %vm1227_vm15, %v5378_v14  ;;  %v5363_v33 = vrot.slane %v1822_v19, 9  ;;  %v1963_v22 = vrot.slane %v1823_v36, 5  ;;  %v1966_v46 = vrot.slane %v7473_v26, 5  ;;  %v2428_v21 = vshrl.u32 %v2274_v35, 16  ;;  %v4108_v45 = vld [vmem:[#allocation3 + $0x140] sm:$0xff] }
 0x15b   : > { %2758 = vst.msk [vmem:[#allocation3 + $0x88] sm:$0xff] %vm1227_vm15, %v5404_v48  ;;  %v2411_v37 = vrot.slane %v2410_v20, 4  ;;  %v2420_v23 = vor.u32 %v2419_v9, %v2415_v47  ;;  %v2431_v59 = vshll.u32 %v2274_v35, 16  ;;  %v2437_v29 = vshll.u32 %v2275_v38, 16  ;;  %v4086_v10 = vld [vmem:[#allocation3 + $0x90] sm:$0xff] }
 0x15c   : > { %2252 = vst.msk [vmem:[#allocation3 + $0x170] sm:$0xff] %vm1775_vm0, %v2214_v40  ;;  %3078 = vst.msk [vmem:[#allocation3 + $0x88] sm:$0xff] %vm1775_vm0, %v7403_v13  ;;  %v4109_v31 = vld [vmem:[#allocation3 + $0x148] sm:$0xff]  ;;  %v1964_v3 = vsel %vm6559_vm14, %v5363_v33, %v1963_v22  ;;  %v1965_v18 = vrot.slane %v1963_v22, 4  ;;  %v2430_v28 = vrot.slane %v2428_v21, 4  ;;  %v2441_v49 = vshrl.u32 %v2275_v38, 16  ;;  %v3038_v40 = vpop.permute.xlu1 %3037 }
 0x15d   : > { %v2416_v2 = vsel %vm6222_vm11, %v2411_v37, %v2415_v47  ;;  %v2421_v4 = vrot.slane %v2420_v23, 4  ;;  %4580 = vmatprep.mubr.bf16.mxu0 %v4109_v31  ;;  %v2433_v61 = vrot.slane %v2431_v59, 5  ;;  %v2439_v34 = vrot.slane %v2437_v29, 5  ;;  %v2278_v39 = vld [vmem:[#allocation2 + $0x58] sm:$0xf]  ;;  %v4113_v21 = vld [vmem:[#allocation3 + $0x168] sm:$0xff]  ;;  %v2216_v31 = vpop.permute.xlu0 %2215 }
 0x15e   : > { %v4080_v51 = vld [vmem:[#allocation3 + $0x60] sm:$0xff]  ;;  %v1967_v13 = vsel %vm6559_vm14, %v1965_v18, %v1966_v46  ;;  %v2443_v42 = vrot.slane %v2441_v49, 4  ;;  %v2447_v54 = vshll.u32 %v2276_v24, 16  ;;  %v5364_v0 = vrot.slane %v1825_v12, 9  ;;  %v2280_v6 = vld [vmem:[#allocation2 + $0x60] sm:$0xf] }
 0x15f   : > { %v2426_v25 = vsel %vm6222_vm11, %v2421_v4, %v2425_v55  ;;  %v5379_v53 = vcombine.low %v1964_v3, %v1967_v13  ;;  %v2434_v11 = vor.u32 %v2433_v61, %v2430_v28  ;;  %v1970_v50 = vrot.slane %v1826_v16, 5  ;;  %v2279_v44 = vld [vmem:[#allocation2 + $0x5c] sm:$0x1]  ;;  %v2281_v58 = vld [vmem:[#allocation2 + $0x64] sm:$0xf]  ;;  %v4091_v16 = vld [vmem:[#allocation3 + $0xb8] sm:$0xff] }
 0x160   : > { %v5405_v19 = vcombine.low %v2416_v2, %v2426_v25  ;;  %v2444_v36 = vor.u32 %v2443_v42, %v2439_v34  ;;  %v2449_v26 = vrot.slane %v2447_v54, 5  ;;  %v1973_v41 = vrot.slane %v1827_v1, 5  ;;  %v2282_v38 = vld [vmem:[#allocation2 + $0x68] sm:$0x1]  ;;  %v2283_v24 = vld [vmem:[#allocation2 + $0x6c] sm:$0xf]  ;;  %v3729_v3 = vpop.permute.xlu1 %3728 }
 0x161   : > { %4694 = vmatmul.mubr.bf16.gmra.mrb[24].mxu1 %v4080_v51  ;;  %4581 = vmatmul.mubr.bf16.gmra.mrb[32].mxu0 %v4108_v45  ;;  %2077 = vst.msk [vmem:[#allocation3 + $0x198] sm:$0xff] %vm1227_vm15, %v5379_v53  ;;  %v2435_v62 = vrot.slane %v2434_v11, 4  ;;  %v1971_v52 = vsel %vm6559_vm14, %v5364_v0, %v1970_v50  ;;  %v1972_v30 = vrot.slane %v1970_v50, 4  ;;  %v2452_v32 = vshrl.u32 %v2277_v17, 16  ;;  %v2284_v22 = vld [vmem:[#allocation2 + $0x70] sm:$0xf] }
 0x162   : > { %4701 = vmatprep.mubr.bf16.mxu1 %v4086_v10  ;;  %2759 = vst.msk [vmem:[#allocation3 + $0xb0] sm:$0xff] %vm1227_vm15, %v5405_v19  ;;  %v2445_v57 = vrot.slane %v2444_v36, 4  ;;  %v2455_v63 = vshll.u32 %v2277_v17, 16  ;;  %v2461_v35 = vshll.u32 %v2278_v39, 16  ;;  %v2465_v15 = vshrl.u32 %v2278_v39, 16  ;;  %v1748_v19 = vpop.permute.xlu0 %1747 }
 0x163   : > { %v4114_v5 = vld [vmem:[#allocation3 + $0x170] sm:$0xff]  ;;  %3079 = vst.msk [vmem:[#allocation3 + $0xb0] sm:$0xff] %vm1775_vm0, %v7457_v43  ;;  %v2440_v7 = vsel %vm6222_vm11, %v2435_v62, %v2439_v34  ;;  %v1974_v60 = vsel %vm6559_vm14, %v1972_v30, %v1973_v41  ;;  %v2454_v14 = vrot.slane %v2452_v32, 4  ;;  %v2471_v47 = vshll.u32 %v2279_v44, 16  ;;  %v4085_v46 = vld [vmem:[#allocation3 + $0x88] sm:$0xff]  ;;  %2253 = vst.msk [vmem:[#allocation3 + $0x198] sm:$0xff] %vm1775_vm0, %v2216_v31 }
 0x164   : > { %4588 = vmatprep.mubr.bf16.mxu0 %v4114_v5  ;;  %v2450_v48 = vsel %vm6222_vm11, %v2445_v57, %v2449_v26  ;;  %v5380_v20 = vcombine.low %v1971_v52, %v1974_v60  ;;  %v2457_v9 = vrot.slane %v2455_v63, 5  ;;  %v2463_v55 = vrot.slane %v2461_v35, 5  ;;  %v2285_v1 = vld [vmem:[#allocation2 + $0x74] sm:$0x1]  ;;  %3770 = vst.msk [vmem:[#allocation3 + $0x108] sm:$0xff] %vm1775_vm0, %v3729_v3  ;;  %v3040_v26 = vpop.permute.xlu1 %3039  ;;  %1786 = vst.msk [vmem:[#allocation3 + $0x190] sm:$0xff] %vm1775_vm0, %v1748_v19 }
 0x165   : > { %v5406_v12 = vcombine.low %v2440_v7, %v2450_v48  ;;  %v2467_v8 = vrot.slane %v2465_v15, 4  ;;  %v2473_v43 = vrot.slane %v2471_v47, 5  ;;  %v2476_v33 = vshrl.u32 %v2280_v6, 16  ;;  %v3780_v51 = vld [vmem:[#allocation2 + $0x18] sm:$0xe] }
 0x166   : > { %2078 = vst.msk [vmem:[#allocation3 + $0x1c0] sm:$0xff] %vm1227_vm15, %v5380_v20  ;;  %v2458_v37 = vor.u32 %v2457_v9, %v2454_v14  ;;  %v2479_v23 = vshll.u32 %v2280_v6, 16  ;;  %v2485_v59 = vshll.u32 %v2281_v58, 16  ;;  %v2489_v29 = vshrl.u32 %v2281_v58, 16  ;;  %v3781_v0 = vld [vmem:[#allocation2 + $0x1c] sm:$0xf]  ;;  %v2218_v20 = vpop.permute.xlu0 %2217 }
 0x167   : > { %2760 = vst.msk [vmem:[#allocation3 + $0xd8] sm:$0xff] %vm1227_vm15, %v5406_v12  ;;  %v2468_v18 = vor.u32 %v2467_v8, %v2463_v55  ;;  %v2478_v28 = vrot.slane %v2476_v33, 4  ;;  %v2495_v49 = vshll.u32 %v2282_v38, 16  ;;  %v2500_v2 = vshrl.u32 %v2283_v24, 16  ;;  %v3782_v50 = vld [vmem:[#allocation2 + $0x20] sm:$0x1] }
 0x168   : > { %3080 = vst.msk [vmem:[#allocation3 + $0xd8] sm:$0xff] %vm1775_vm0, %v3038_v40  ;;  %v2459_v4 = vrot.slane %v2458_v37, 4  ;;  %v2481_v61 = vrot.slane %v2479_v23, 5  ;;  %v2487_v34 = vrot.slane %v2485_v59, 5  ;;  %v2491_v17 = vrot.slane %v2489_v29, 4  ;;  %v4096_v48 = vld [vmem:[#allocation3 + $0xe0] sm:$0xff] }
 0x169   : > { %4702 = vmatmul.mubr.bf16.gmra.mrb[28].mxu1 %v4085_v46  ;;  %4589 = vmatmul.mubr.bf16.gmra.mrb[36].mxu0 %v4113_v21  ;;  %v2469_v45 = vrot.slane %v2468_v18, 4  ;;  %v2497_v13 = vrot.slane %v2495_v49, 5  ;;  %v2502_v42 = vrot.slane %v2500_v2, 4  ;;  %v2503_v54 = vshll.u32 %v2283_v24, 16  ;;  %v3783_v39 = vld [vmem:[#allocation2 + $0x24] sm:$0xe] }
 0x16a   : > { %4709 = vmatprep.mubr.bf16.mxu1 %v4091_v16  ;;  %v2464_v10 = vsel %vm6222_vm11, %v2459_v4, %v2463_v55  ;;  %v2482_v25 = vor.u32 %v2481_v61, %v2478_v28  ;;  %v2492_v53 = vor.u32 %v2491_v17, %v2487_v34  ;;  %v2509_v11 = vshll.u32 %v2284_v22, 16  ;;  %v3784_v62 = vld [vmem:[#allocation2 + $0x28] sm:$0xf]  ;;  %v3785_v40 = vld [vmem:[#allocation2 + $0x2c] sm:$0x1]  ;;  %v4119_v9 = vld [vmem:[#allocation3 + $0x198] sm:$0xff]  ;;  %v3731_v55 = vpop.permute.xlu1 %3730 }
 0x16b   : > { %v2474_v36 = vsel %vm6222_vm11, %v2469_v45, %v2473_v43  ;;  %v2505_v41 = vrot.slane %v2503_v54, 5  ;;  %v2513_v44 = vshrl.u32 %v2284_v22, 16  ;;  %v2519_v6 = vshll.u32 %v2285_v1, 16  ;;  %v4090_v15 = vld [vmem:[#allocation3 + $0xb0] sm:$0xff]  ;;  %v2286_v38 = vld [vmem:[#allocation2 + $0x78] sm:$0xf]  ;;  %4596 = vmatprep.mubr.bf16.mxu0 %v4119_v9 }
 0x16c   : > { %v5407_v52 = vcombine.low %v2464_v10, %v2474_v36  ;;  %v2483_v30 = vrot.slane %v2482_v25, 4  ;;  %v2493_v32 = vrot.slane %v2492_v53, 4  ;;  %v2511_v58 = vrot.slane %v2509_v11, 5  ;;  %v2287_v33 = vld [vmem:[#allocation2 + $0x7c] sm:$0xf]  ;;  %2254 = vst.msk [vmem:[#allocation3 + $0x1c0] sm:$0xff] %vm1775_vm0, %v2218_v20 }
 0x16d   : > { %v2506_v57 = vor.u32 %v2505_v41, %v2502_v42  ;;  %v2515_v5 = vrot.slane %v2513_v44, 4  ;;  %v2521_v63 = vrot.slane %v2519_v6, 5  ;;  %v5481_v35 = vrot.slane %v3780_v51, 9  ;;  %3771 = vst.msk [vmem:[#allocation3 + $0x130] sm:$0xff] %vm1775_vm0, %v3731_v55  ;;  %v2288_v23 = vld [vmem:[#allocation2 + $0x80] sm:$0x1] }
 0x16e   : > { %2761 = vst.msk [vmem:[#allocation3 + $0x100] sm:$0xff] %vm1227_vm15, %v5407_v52  ;;  %v2488_v7 = vsel %vm6222_vm11, %v2483_v30, %v2487_v34  ;;  %v2498_v60 = vsel %vm6222_vm11, %v2493_v32, %v2497_v13  ;;  %v3878_v14 = vrot.slane %v3781_v0, 5  ;;  %v3881_v47 = vrot.slane %v3782_v50, 5  ;;  %v3786_v59 = vld [vmem:[#allocation2 + $0x30] sm:$0xe]  ;;  %v4118_v34 = vld [vmem:[#allocation3 + $0x190] sm:$0xff]  ;;  %v3042_v17 = vpop.permute.xlu1 %3041 }
 0x16f   : > { %3081 = vst.msk [vmem:[#allocation3 + $0x100] sm:$0xff] %vm1775_vm0, %v3040_v26  ;;  %v5408_v24 = vcombine.low %v2488_v7, %v2498_v60  ;;  %v2507_v12 = vrot.slane %v2506_v57, 4  ;;  %v2516_v8 = vor.u32 %v2515_v5, %v2511_v58  ;;  %v5482_v43 = vrot.slane %v3783_v39, 9  ;;  %v3787_v18 = vld [vmem:[#allocation2 + $0x34] sm:$0xf]  ;;  %v4101_v30 = vld [vmem:[#allocation3 + $0x108] sm:$0xff] }
 0x170   : > { %v3879_v22 = vsel %vm6559_vm14, %v5481_v35, %v3878_v14  ;;  %v3880_v46 = vrot.slane %v3878_v14, 4  ;;  %v3885_v21 = vrot.slane %v3784_v62, 5  ;;  %v3888_v37 = vrot.slane %v3785_v40, 5  ;;  %v3788_v4 = vld [vmem:[#allocation2 + $0x38] sm:$0x1]  ;;  %v4095_v44 = vld [vmem:[#allocation3 + $0xd8] sm:$0xff] }
 0x171   : > { %4710 = vmatmul.mubr.bf16.gmra.mrb[32].mxu1 %v4090_v15  ;;  %2762 = vst.msk [vmem:[#allocation3 + $0x128] sm:$0xff] %vm1227_vm15, %v5408_v24  ;;  %v2512_v29 = vsel %vm6222_vm11, %v2507_v12, %v2511_v58  ;;  %v2517_v16 = vrot.slane %v2516_v8, 4  ;;  %v2524_v31 = vshrl.u32 %v2286_v38, 16  ;;  %v2527_v3 = vshll.u32 %v2286_v38, 16  ;;  %v3789_v61 = vld [vmem:[#allocation2 + $0x3c] sm:$0xe]  ;;  %4597 = vmatmul.mubr.bf16.gmra.mrb[40].mxu0 %v4118_v34 }
 0x172   : > { %4717 = vmatprep.mubr.bf16.mxu1 %v4096_v48  ;;  %v3882_v28 = vsel %vm6559_vm14, %v3880_v46, %v3881_v47  ;;  %v3886_v49 = vsel %vm6559_vm14, %v5482_v43, %v3885_v21  ;;  %v3887_v1 = vrot.slane %v3885_v21, 4  ;;  %v2533_v2 = vshll.u32 %v2287_v33, 16  ;;  %v3790_v54 = vld [vmem:[#allocation2 + $0x40] sm:$0xf]  ;;  %3082 = vst.msk [vmem:[#allocation3 + $0x128] sm:$0xff] %vm1775_vm0, %v3042_v17  ;;  %v3044_v58 = vpop.permute.xlu1 %3043  ;;  %v1750_v47 = vpop.permute.xlu0 %1749 }
 0x173   : > { %v2522_v51 = vsel %vm6222_vm11, %v2517_v16, %v2521_v63  ;;  %v5497_v45 = vcombine.low %v3879_v22, %v3882_v28  ;;  %v2526_v13 = vrot.slane %v2524_v31, 4  ;;  %v2529_v42 = vrot.slane %v2527_v3, 5  ;;  %v3791_v11 = vld [vmem:[#allocation2 + $0x44] sm:$0x1]  ;;  %v2290_v41 = vld [vmem:[#allocation2 + $0x88] sm:$0xf] }
 0x174   : > { %v5409_v0 = vcombine.low %v2512_v29, %v2522_v51  ;;  %v3889_v10 = vsel %vm6559_vm14, %v3887_v1, %v3888_v37  ;;  %v2535_v25 = vrot.slane %v2533_v2, 5  ;;  %v2537_v53 = vshrl.u32 %v2287_v33, 16  ;;  %v2289_v50 = vld [vmem:[#allocation2 + $0x84] sm:$0xf]  ;;  %v4124_v32 = vld [vmem:[#allocation3 + $0x1c0] sm:$0xff]  ;;  %1787 = vst.msk [vmem:[#allocation3 + $0x1b8] sm:$0xff] %vm1775_vm0, %v1750_v47 }
 0x175   : > { %4052 = vst.msk [vmem:[#allocation3 + $0x20] sm:$0xff] %vm1227_vm15, %v5497_v45  ;;  %v5498_v39 = vcombine.low %v3886_v49, %v3889_v10  ;;  %v2530_v19 = vor.u32 %v2529_v42, %v2526_v13  ;;  %v2543_v36 = vshll.u32 %v2288_v23, 16  ;;  %v5483_v26 = vrot.slane %v3786_v59, 9  ;;  %4604 = vmatprep.mubr.bf16.mxu0 %v4124_v32  ;;  %v2291_v9 = vld [vmem:[#allocation2 + $0x8c] sm:$0x1] }
 0x176   : > { %2763 = vst.msk [vmem:[#allocation3 + $0x150] sm:$0xff] %vm1227_vm15, %v5409_v0  ;;  %v2539_v6 = vrot.slane %v2537_v53, 4  ;;  %v3892_v62 = vrot.slane %v3787_v18, 5  ;;  %v3895_v40 = vrot.slane %v3788_v4, 5  ;;  %v5484_v52 = vrot.slane %v3789_v61, 9  ;;  %v3733_v1 = vpop.permute.xlu0 %3732  ;;  %v3046_v4 = vpop.permute.xlu1 %3045  ;;  %v4100_v13 = vld [vmem:[#allocation3 + $0x100] sm:$0xff] }
 0x177   : > { %4053 = vst.msk [vmem:[#allocation3 + $0x48] sm:$0xff] %vm1227_vm15, %v5498_v39  ;;  %v2531_v57 = vrot.slane %v2530_v19, 4  ;;  %v2545_v5 = vrot.slane %v2543_v36, 5  ;;  %v3899_v63 = vrot.slane %v3790_v54, 5  ;;  %v3902_v35 = vrot.slane %v3791_v11, 5 }
 0x178   : > { %3083 = vst.msk [vmem:[#allocation3 + $0x150] sm:$0xff] %vm1775_vm0, %v3044_v58  ;;  %v2540_v15 = vor.u32 %v2539_v6, %v2535_v25  ;;  %v3893_v7 = vsel %vm6559_vm14, %v5483_v26, %v3892_v62  ;;  %v3894_v60 = vrot.slane %v3892_v62, 4  ;;  %v2548_v14 = vshrl.u32 %v2289_v50, 16  ;;  %v3792_v24 = vld [vmem:[#allocation2 + $0x48] sm:$0xe]  ;;  %3772 = vst.msk [vmem:[#allocation3 + $0x158] sm:$0xff] %vm1775_vm0, %v3733_v1 }
 0x179   : > { %4718 = vmatmul.mubr.bf16.gmra.mrb[36].mxu1 %v4095_v44  ;;  %v2536_v38 = vsel %vm6222_vm11, %v2531_v57, %v2535_v25  ;;  %v3900_v48 = vsel %vm6559_vm14, %v5484_v52, %v3899_v63  ;;  %v3901_v20 = vrot.slane %v3899_v63, 4  ;;  %v2551_v55 = vshll.u32 %v2289_v50, 16  ;;  %v3793_v22 = vld [vmem:[#allocation2 + $0x4c] sm:$0xf]  ;;  %v3794_v59 = vld [vmem:[#allocation2 + $0x50] sm:$0x1] }
 0x17a   : > { %4725 = vmatprep.mubr.bf16.mxu1 %v4101_v30  ;;  %v2541_v12 = vrot.slane %v2540_v15, 4  ;;  %v3896_v8 = vsel %vm6559_vm14, %v3894_v60, %v3895_v40  ;;  %v2550_v43 = vrot.slane %v2548_v14, 4  ;;  %v2557_v33 = vshll.u32 %v2290_v41, 16  ;;  %v3795_v29 = vld [vmem:[#allocation2 + $0x54] sm:$0xe]  ;;  %v4106_v25 = vld [vmem:[#allocation3 + $0x130] sm:$0xff]  ;;  %v3735_v52 = vpop.permute.xlu0 %3734 }
 0x17b   : > { %v5499_v46 = vcombine.low %v3893_v7, %v3896_v8  ;;  %v3903_v21 = vsel %vm6559_vm14, %v3901_v20, %v3902_v35  ;;  %v2553_v37 = vrot.slane %v2551_v55, 5  ;;  %v2561_v23 = vshrl.u32 %v2290_v41, 16  ;;  %v3796_v28 = vld [vmem:[#allocation2 + $0x58] sm:$0xf]  ;;  %v3797_v49 = vld [vmem:[#allocation2 + $0x5c] sm:$0x1] }
 0x17c   : > { %v2546_v16 = vsel %vm6222_vm11, %v2541_v12, %v2545_v5  ;;  %v5500_v31 = vcombine.low %v3900_v48, %v3903_v21  ;;  %v2559_v3 = vrot.slane %v2557_v33, 5  ;;  %v2567_v18 = vshll.u32 %v2291_v9, 16  ;;  %v2292_v51 = vld [vmem:[#allocation2 + $0x90] sm:$0xf]  ;;  %v2293_v45 = vld [vmem:[#allocation2 + $0x94] sm:$0xf] }
 0x17d   : > { %v5410_v2 = vcombine.low %v2536_v38, %v2546_v16  ;;  %4054 = vst.msk [vmem:[#allocation3 + $0x70] sm:$0xff] %vm1227_vm15, %v5499_v46  ;;  %v2554_v61 = vor.u32 %v2553_v37, %v2550_v43  ;;  %v2563_v34 = vrot.slane %v2561_v23, 4  ;;  %v5485_v17 = vrot.slane %v3792_v24, 9  ;;  %v4072_v19 = vld [vmem:[#allocation3 + $0x20] sm:$0xff]  ;;  %v3798_v62 = vld [vmem:[#allocation2 + $0x60] sm:$0xe] }
 0x17e   : > { %4055 = vst.msk [vmem:[#allocation3 + $0x98] sm:$0xff] %vm1227_vm15, %v5500_v31  ;;  %v2569_v42 = vrot.slane %v2567_v18, 5  ;;  %v3906_v54 = vrot.slane %v3793_v22, 5  ;;  %v3909_v0 = vrot.slane %v3794_v59, 5  ;;  %v5486_v10 = vrot.slane %v3795_v29, 9  ;;  %v4123_v40 = vld [vmem:[#allocation3 + $0x1b8] sm:$0xff] }
 0x17f   : > { %2764 = vst.msk [vmem:[#allocation3 + $0x178] sm:$0xff] %vm1227_vm15, %v5410_v2  ;;  %v2555_v53 = vrot.slane %v2554_v61, 4  ;;  %v2564_v11 = vor.u32 %v2563_v34, %v2559_v3  ;;  %v3913_v50 = vrot.slane %v3796_v28, 5  ;;  %v3916_v39 = vrot.slane %v3797_v49, 5  ;;  %v2294_v41 = vld [vmem:[#allocation2 + $0x98] sm:$0x1]  ;;  %4605 = vmatmul.mubr.bf16.gmra.mrb[44].mxu0 %v4123_v40 }
 0x180   : > { %3084 = vst.msk [vmem:[#allocation3 + $0x178] sm:$0xff] %vm1775_vm0, %v3046_v4  ;;  %v3907_v36 = vsel %vm6559_vm14, %v5485_v17, %v3906_v54  ;;  %v3908_v26 = vrot.slane %v3906_v54, 4  ;;  %v2572_v44 = vshrl.u32 %v2292_v51, 16  ;;  %v2575_v6 = vshll.u32 %v2292_v51, 16  ;;  %v3799_v5 = vld [vmem:[#allocation2 + $0x64] sm:$0xf]  ;;  %5932 = vmatprep.mubr.msk.bf16.mxu0 %vm1227_vm15, %v4072_v19 }
 0x181   : > { %4726 = vmatmul.mubr.bf16.gmra.mrb[40].mxu1 %v4100_v13  ;;  %v2560_v30 = vsel %vm6222_vm11, %v2555_v53, %v2559_v3  ;;  %v2565_v32 = vrot.slane %v2564_v11, 4  ;;  %v3914_v58 = vsel %vm6559_vm14, %v5486_v10, %v3913_v50  ;;  %v3915_v57 = vrot.slane %v3913_v50, 4  ;;  %3773 = vst.msk [vmem:[#allocation3 + $0x180] sm:$0xff] %vm1775_vm0, %v3735_v52  ;;  %v3800_v60 = vld [vmem:[#allocation2 + $0x68] sm:$0x1]  ;;  %v4105_v59 = vld [vmem:[#allocation3 + $0x128] sm:$0xff] }
 0x182   : > { %4733 = vmatprep.mubr.bf16.mxu1 %v4106_v25  ;;  %v3910_v63 = vsel %vm6559_vm14, %v3908_v26, %v3909_v0  ;;  %v2574_v35 = vrot.slane %v2572_v44, 4  ;;  %v2577_v15 = vrot.slane %v2575_v6, 5  ;;  %v2581_v7 = vshll.u32 %v2293_v45, 16  ;;  %v3801_v20 = vld [vmem:[#allocation2 + $0x6c] sm:$0xe]  ;;  %v4077_v18 = vld [vmem:[#allocation3 + $0x48] sm:$0xff] }
 0x183   : > { %v2570_v14 = vsel %vm6222_vm11, %v2565_v32, %v2569_v42  ;;  %v5501_v47 = vcombine.low %v3907_v36, %v3910_v63  ;;  %v3917_v38 = vsel %vm6559_vm14, %v3915_v57, %v3916_v39  ;;  %v2585_v48 = vshrl.u32 %v2293_v45, 16  ;;  %v3802_v9 = vld [vmem:[#allocation2 + $0x70] sm:$0xf]  ;;  %v3803_v43 = vld [vmem:[#allocation2 + $0x74] sm:$0x1]  ;;  %v3048_v17 = vpop.permute.xlu1 %3047 }
 0x184   : > { %v5411_v55 = vcombine.low %v2560_v30, %v2570_v14  ;;  %v5502_v24 = vcombine.low %v3914_v58, %v3917_v38  ;;  %v2578_v12 = vor.u32 %v2577_v15, %v2574_v35  ;;  %v2583_v8 = vrot.slane %v2581_v7, 5  ;;  %v2295_v33 = vld [vmem:[#allocation2 + $0x9c] sm:$0xf]  ;;  %v2296_v23 = vld [vmem:[#allocation2 + $0xa0] sm:$0xf]  ;;  %v4111_v28 = vld [vmem:[#allocation3 + $0x158] sm:$0xff] }
 0x185   : > { %4056 = vst.msk [vmem:[#allocation3 + $0xc0] sm:$0xff] %vm1227_vm15, %v5501_v47  ;;  %v2587_v22 = vrot.slane %v2585_v48, 4  ;;  %v2591_v46 = vshll.u32 %v2294_v41, 16  ;;  %v5487_v21 = vrot.slane %v3798_v62, 9  ;;  %v3920_v37 = vrot.slane %v3799_v5, 5  ;;  %v4082_v34 = vld [vmem:[#allocation3 + $0x70] sm:$0xff]  ;;  %v3737_v0 = vpop.permute.xlu0 %3736 }
 0x186   : > { %2765 = vst.msk [vmem:[#allocation3 + $0x1a0] sm:$0xff] %vm1227_vm15, %v5411_v55  ;;  %4057 = vst.msk [vmem:[#allocation3 + $0xe8] sm:$0xff] %vm1227_vm15, %v5502_v24  ;;  %v2579_v29 = vrot.slane %v2578_v12, 4  ;;  %v3923_v16 = vrot.slane %v3800_v60, 5  ;;  %v5488_v31 = vrot.slane %v3801_v20, 9  ;;  %v3927_v3 = vrot.slane %v3802_v9, 5 }
 0x187   : > { %v2588_v49 = vor.u32 %v2587_v22, %v2583_v8  ;;  %v2593_v1 = vrot.slane %v2591_v46, 5  ;;  %v3921_v2 = vsel %vm6559_vm14, %v5487_v21, %v3920_v37  ;;  %v3922_v4 = vrot.slane %v3920_v37, 4  ;;  %v2297_v61 = vld [vmem:[#allocation2 + $0xa4] sm:$0x1]  ;;  %v3804_v54 = vld [vmem:[#allocation2 + $0x78] sm:$0xe]  ;;  %5933 = vmatmul.mubr.msk.bf16.vlgmr.msra.gmra.mrb[48].mxu0 %vm1227_vm15, %v4077_v18 }
 0x188   : > { %v2584_v51 = vsel %vm6222_vm11, %v2579_v29, %v2583_v8  ;;  %v3928_v45 = vsel %vm6559_vm14, %v5488_v31, %v3927_v3  ;;  %v3929_v13 = vrot.slane %v3927_v3, 4  ;;  %v3930_v42 = vrot.slane %v3803_v43, 5  ;;  %3085 = vst.msk [vmem:[#allocation3 + $0x1a0] sm:$0xff] %vm1775_vm0, %v3048_v17  ;;  %3774 = vst.msk [vmem:[#allocation3 + $0x1a8] sm:$0xff] %vm1775_vm0, %v3737_v0  ;;  %v3805_v26 = vld [vmem:[#allocation2 + $0x7c] sm:$0xf]  ;;  %5936 = vmatprep.mubr.msk.bf16.mxu0 %vm1227_vm15, %v4082_v34 }
 0x189   : > { %4734 = vmatmul.mubr.bf16.gmra.mrb[44].mxu1 %v4105_v59  ;;  %v2589_v10 = vrot.slane %v2588_v49, 4  ;;  %v3924_v25 = vsel %vm6559_vm14, %v3922_v4, %v3923_v16  ;;  %v2596_v53 = vshrl.u32 %v2295_v33, 16  ;;  %v2599_v11 = vshll.u32 %v2295_v33, 16  ;;  %v3806_v41 = vld [vmem:[#allocation2 + $0x80] sm:$0x1]  ;;  %v4110_v47 = vld [vmem:[#allocation3 + $0x150] sm:$0xff] }
 0x18a   : > { %4741 = vmatprep.mubr.bf16.mxu1 %v4111_v28  ;;  %v5503_v50 = vcombine.low %v3921_v2, %v3924_v25  ;;  %v3931_v39 = vsel %vm6559_vm14, %v3929_v13, %v3930_v42  ;;  %v2605_v19 = vshll.u32 %v2296_v23, 16  ;;  %v2609_v36 = vshrl.u32 %v2296_v23, 16  ;;  %v3807_v52 = vld [vmem:[#allocation2 + $0x84] sm:$0xe]  ;;  %v3808_v30 = vld [vmem:[#allocation2 + $0x88] sm:$0xf]  ;;  %v3050_v59 = vpop.permute.xlu1 %3049 }
 0x18b   : > { %v2594_v44 = vsel %vm6222_vm11, %v2589_v10, %v2593_v1  ;;  %v5504_v6 = vcombine.low %v3928_v45, %v3931_v39  ;;  %v2598_v62 = vrot.slane %v2596_v53, 4  ;;  %v2601_v40 = vrot.slane %v2599_v11, 5  ;;  %v3809_v63 = vld [vmem:[#allocation2 + $0x8c] sm:$0x1]  ;;  %v2298_v14 = vld [vmem:[#allocation2 + $0xa8] sm:$0xf] }
 0x18c   : > { %v5412_v32 = vcombine.low %v2584_v51, %v2594_v44  ;;  %4058 = vst.msk [vmem:[#allocation3 + $0x110] sm:$0xff] %vm1227_vm15, %v5503_v50  ;;  %v2607_v58 = vrot.slane %v2605_v19, 5  ;;  %v2611_v57 = vrot.slane %v2609_v36, 4  ;;  %v2615_v5 = vshll.u32 %v2297_v61, 16  ;;  %v2299_v55 = vld [vmem:[#allocation2 + $0xac] sm:$0xf]  ;;  %v3739_v13 = vpop.permute.xlu0 %3738 }
 0x18d   : > { %4059 = vst.msk [vmem:[#allocation3 + $0x138] sm:$0xff] %vm1227_vm15, %v5504_v6  ;;  %v2602_v35 = vor.u32 %v2601_v40, %v2598_v62  ;;  %v5489_v15 = vrot.slane %v3804_v54, 9  ;;  %v3934_v7 = vrot.slane %v3805_v26, 5  ;;  %v3937_v60 = vrot.slane %v3806_v41, 5  ;;  %v4087_v24 = vld [vmem:[#allocation3 + $0x98] sm:$0xff]  ;;  %v4116_v12 = vld [vmem:[#allocation3 + $0x180] sm:$0xff] }
 0x18e   : > { %2766 = vst.msk [vmem:[#allocation3 + $0x1c8] sm:$0xff] %vm1227_vm15, %v5412_v32  ;;  %v2612_v38 = vor.u32 %v2611_v57, %v2607_v58  ;;  %v2617_v48 = vrot.slane %v2615_v5, 5  ;;  %v5490_v20 = vrot.slane %v3807_v52, 9  ;;  %v3941_v9 = vrot.slane %v3808_v30, 5  ;;  %v2300_v46 = vld [vmem:[#allocation2 + $0xb0] sm:$0x1] }
 0x18f   : > { %v2603_v8 = vrot.slane %v2602_v35, 4  ;;  %v3935_v43 = vsel %vm6559_vm14, %v5489_v15, %v3934_v7  ;;  %v3936_v33 = vrot.slane %v3934_v7, 4  ;;  %v3944_v22 = vrot.slane %v3809_v63, 5  ;;  %v3810_v21 = vld [vmem:[#allocation2 + $0x90] sm:$0xe]  ;;  %v4092_v23 = vld [vmem:[#allocation3 + $0xc0] sm:$0xff]  ;;  %5937 = vmatmul.mubr.msk.bf16.gmra.mrb[52].mxu0 %vm1227_vm15, %v4087_v24 }
 0x190   : > { %v3811_v37 = vld [vmem:[#allocation2 + $0x94] sm:$0xf]  ;;  %v2613_v29 = vrot.slane %v2612_v38, 4  ;;  %v3942_v16 = vsel %vm6559_vm14, %v5490_v20, %v3941_v9  ;;  %v3943_v31 = vrot.slane %v3941_v9, 4  ;;  %v2620_v3 = vshrl.u32 %v2298_v14, 16  ;;  %3086 = vst.msk [vmem:[#allocation3 + $0x1c8] sm:$0xff] %vm1775_vm0, %v3050_v59  ;;  %5940 = vmatprep.mubr.msk.bf16.mxu0 %vm1227_vm15, %v4092_v23 }
 0x191   : > { %v3812_v18 = vld [vmem:[#allocation2 + $0x98] sm:$0x1]  ;;  %4742 = vmatmul.mubr.bf16.gmra.mrb[48].mxu1 %v4110_v47  ;;  %v2608_v28 = vsel %vm6222_vm11, %v2603_v8, %v2607_v58  ;;  %v3938_v49 = vsel %vm6559_vm14, %v3936_v33, %v3937_v60  ;;  %v2623_v1 = vshll.u32 %v2298_v14, 16  ;;  %v2629_v2 = vshll.u32 %v2299_v55, 16  ;;  %v3813_v4 = vld [vmem:[#allocation2 + $0x9c] sm:$0xe] }
 0x192   : > { %4749 = vmatprep.mubr.bf16.mxu1 %v4116_v12  ;;  %v2618_v61 = vsel %vm6222_vm11, %v2613_v29, %v2617_v48  ;;  %v5505_v34 = vcombine.low %v3935_v43, %v3938_v49  ;;  %v3945_v17 = vsel %vm6559_vm14, %v3943_v31, %v3944_v22  ;;  %v2622_v51 = vrot.slane %v2620_v3, 4  ;;  %v3814_v45 = vld [vmem:[#allocation2 + $0xa0] sm:$0xf]  ;;  %v3815_v25 = vld [vmem:[#allocation2 + $0xa4] sm:$0x1]  ;;  %3775 = vst.msk [vmem:[#allocation3 + $0x1d0] sm:$0xff] %vm1775_vm0, %v3739_v13 }
 0x193   : > { %v5413_v42 = vcombine.low %v2608_v28, %v2618_v61  ;;  %v5506_v54 = vcombine.low %v3942_v16, %v3945_v17  ;;  %v2625_v0 = vrot.slane %v2623_v1, 5  ;;  %v7617_v10 = vrot.slane %v2629_v2, 5  ;;  %v2301_v19 = vld [vmem:[#allocation2 + $0xb4] sm:$0xf]  ;;  %v2302_v6 = vld [vmem:[#allocation2 + $0xb8] sm:$0xf] }
 0x194   : > { %4060 = vst.msk [vmem:[#allocation3 + $0x160] sm:$0xff] %vm1227_vm15, %v5505_v34  ;;  %v2633_v53 = vshrl.u32 %v2299_v55, 16  ;;  %v2639_v11 = vshll.u32 %v2300_v46, 16  ;;  %v5491_v50 = vrot.slane %v3810_v21, 9  ;;  %v3948_v39 = vrot.slane %v3811_v37, 5  ;;  %v4115_v62 = vld [vmem:[#allocation3 + $0x178] sm:$0xff] }
 0x195   : > { %2767 = vst.msk [vmem:[#allocation3 + $0x1f0] sm:$0xff] %vm1227_vm15, %v5413_v42  ;;  %4061 = vst.msk [vmem:[#allocation3 + $0x188] sm:$0xff] %vm1227_vm15, %v5506_v54  ;;  %v2626_v36 = vor.u32 %v2625_v0, %v2622_v51  ;;  %v3951_v26 = vrot.slane %v3812_v18, 5  ;;  %v5492_v41 = vrot.slane %v3813_v4, 9  ;;  %v3955_v44 = vrot.slane %v3814_v45, 5  ;;  %v4097_v57 = vld [vmem:[#allocation3 + $0xe8] sm:$0xff]  ;;  %v3052_v33 = vpop.permute.xlu1 %3051 }
 0x196   : > { %v2635_v40 = vrot.slane %v2633_v53, 4  ;;  %v2641_v52 = vrot.slane %v2639_v11, 5  ;;  %v3949_v30 = vsel %vm6559_vm14, %v5491_v50, %v3948_v39  ;;  %v3950_v32 = vrot.slane %v3948_v39, 4  ;;  %v2303_v58 = vld [vmem:[#allocation2 + $0xbc] sm:$0x1]  ;;  %v4121_v5 = vld [vmem:[#allocation3 + $0x1a8] sm:$0xff] }
 0x197   : > { %v2627_v63 = vrot.slane %v2626_v36, 4  ;;  %v3956_v35 = vsel %vm6559_vm14, %v5492_v41, %v3955_v44  ;;  %v3957_v15 = vrot.slane %v3955_v44, 4  ;;  %v3958_v7 = vrot.slane %v3815_v25, 5  ;;  %v4102_v60 = vld [vmem:[#allocation3 + $0x110] sm:$0xff]  ;;  %v3818_v43 = vld [vmem:[#allocation2 + $0xb0] sm:$0x1]  ;;  %5941 = vmatmul.mubr.msk.bf16.gmra.mrb[56].mxu0 %vm1227_vm15, %v4097_v57 }
 0x198   : > { %v2636_v14 = vor.u32 %v2635_v40, %v7617_v10  ;;  %v3952_v47 = vsel %vm6559_vm14, %v3950_v32, %v3951_v26  ;;  %v2644_v38 = vshrl.u32 %v2301_v19, 16  ;;  %v2647_v48 = vshll.u32 %v2301_v19, 16  ;;  %v3816_v20 = vld [vmem:[#allocation2 + $0xa8] sm:$0xe]  ;;  %v3817_v8 = vld [vmem:[#allocation2 + $0xac] sm:$0xf]  ;;  %5944 = vmatprep.mubr.msk.bf16.mxu0 %vm1227_vm15, %v4102_v60  ;;  %v3741_v34 = vpop.permute.xlu0 %3740 }
 0x199   : > { %4750 = vmatmul.mubr.bf16.gmra.mrb[52].mxu1 %v4115_v62  ;;  %v2632_v9 = vsel %vm6222_vm11, %v2627_v63, %v7617_v10  ;;  %v5507_v55 = vcombine.low %v3949_v30, %v3952_v47  ;;  %v3959_v24 = vsel %vm6559_vm14, %v3957_v15, %v3958_v7  ;;  %v2653_v12 = vshll.u32 %v2302_v6, 16  ;;  %v3819_v23 = vld [vmem:[#allocation2 + $0xb4] sm:$0xe]  ;;  %3087 = vst.msk [vmem:[#allocation3 + $0x1f0] sm:$0xff] %vm1775_vm0, %v3052_v33  ;;  %v3820_v3 = vld [vmem:[#allocation2 + $0xb8] sm:$0xf] }
 0x19a   : > { %4757 = vmatprep.mubr.bf16.mxu1 %v4121_v5  ;;  %v2637_v22 = vrot.slane %v2636_v14, 4  ;;  %v5508_v46 = vcombine.low %v3956_v35, %v3959_v24  ;;  %v2646_v21 = vrot.slane %v2644_v38, 4  ;;  %v2649_v37 = vrot.slane %v2647_v48, 5  ;;  %v3821_v2 = vld [vmem:[#allocation2 + $0xbc] sm:$0x1]  ;;  %v4107_v42 = vld [vmem:[#allocation3 + $0x138] sm:$0xff] }
 0x19b   : > { %4062 = vst.msk [vmem:[#allocation3 + $0x1b0] sm:$0xff] %vm1227_vm15, %v5507_v55  ;;  %v2655_v59 = vrot.slane %v2653_v12, 5  ;;  %v2657_v29 = vshrl.u32 %v2302_v6, 16  ;;  %v2663_v16 = vshll.u32 %v2303_v58, 16  ;;  %v5493_v31 = vrot.slane %v3816_v20, 9  ;;  %v4120_v61 = vld [vmem:[#allocation3 + $0x1a0] sm:$0xff] }
 0x19c   : > { %v2642_v18 = vsel %vm6222_vm11, %v2637_v22, %v2641_v52  ;;  %4063 = vst.msk [vmem:[#allocation3 + $0x1d8] sm:$0xff] %vm1227_vm15, %v5508_v46  ;;  %v2650_v28 = vor.u32 %v2649_v37, %v2646_v21  ;;  %v3962_v49 = vrot.slane %v3817_v8, 5  ;;  %v3965_v1 = vrot.slane %v3818_v43, 5  ;;  %v2304_v4 = vld [vmem:[#allocation2 + $0xc0] sm:$0xf]  ;;  %v4126_v11 = vld [vmem:[#allocation3 + $0x1d0] sm:$0xff] }
 0x19d   : > { %v5414_v17 = vcombine.low %v2632_v9, %v2642_v18  ;;  %v2659_v51 = vrot.slane %v2657_v29, 4  ;;  %v2665_v45 = vrot.slane %v2663_v16, 5  ;;  %v5494_v13 = vrot.slane %v3819_v23, 9  ;;  %3776 = vst.msk [vmem:[#allocation3 + $0x1f8] sm:$0xff] %vm1775_vm0, %v3741_v34  ;;  %v2305_v53 = vld [vmem:[#allocation2 + $0xc4] sm:$0xf] }
 0x19e   : > { %v2651_v54 = vrot.slane %v2650_v28, 4  ;;  %v3963_v0 = vsel %vm6559_vm14, %v5493_v31, %v3962_v49  ;;  %v3964_v10 = vrot.slane %v3962_v49, 4  ;;  %v3969_v25 = vrot.slane %v3820_v3, 5  ;;  %v2306_v19 = vld [vmem:[#allocation2 + $0xc8] sm:$0x1]  ;;  %v4112_v41 = vld [vmem:[#allocation3 + $0x160] sm:$0xff] }
 0x19f   : > { %2768 = vst.msk [vmem:[#allocation3 + $0x218] sm:$0xff] %vm1227_vm15, %v5414_v17  ;;  %v2660_v50 = vor.u32 %v2659_v51, %v2655_v59  ;;  %v3972_v39 = vrot.slane %v3821_v2, 5  ;;  %v2668_v36 = vshrl.u32 %v2304_v4, 16  ;;  %v2671_v26 = vshll.u32 %v2304_v4, 16  ;;  %v3822_v52 = vld [vmem:[#allocation2 + $0xc0] sm:$0xe]  ;;  %5945 = vmatmul.mubr.msk.bf16.gmra.mrb[60].mxu0 %vm1227_vm15, %v4107_v42 }
 0x1a0   : > { %v2656_v44 = vsel %vm6222_vm11, %v2651_v54, %v2655_v59  ;;  %v3966_v6 = vsel %vm6559_vm14, %v3964_v10, %v3965_v1  ;;  %v3970_v62 = vsel %vm6559_vm14, %v5494_v13, %v3969_v25  ;;  %v3971_v40 = vrot.slane %v3969_v25, 4  ;;  %v3823_v30 = vld [vmem:[#allocation2 + $0xc4] sm:$0xf]  ;;  %v3824_v63 = vld [vmem:[#allocation2 + $0xc8] sm:$0x1]  ;;  %5948 = vmatprep.mubr.msk.bf16.mxu0 %vm1227_vm15, %v4112_v41 }
 0x1a1   : > { %4758 = vmatmul.mubr.bf16.gmra.mrb[56].mxu1 %v4120_v61  ;;  %v2661_v32 = vrot.slane %v2660_v50, 4  ;;  %v5509_v58 = vcombine.low %v3963_v0, %v3966_v6  ;;  %v2670_v57 = vrot.slane %v2668_v36, 4  ;;  %v2673_v5 = vrot.slane %v2671_v26, 5  ;;  %v3825_v14 = vld [vmem:[#allocation2 + $0xcc] sm:$0xe]  ;;  %v3054_v24 = vpop.permute.xlu1 %3053  ;;  %v4125_v23 = vld [vmem:[#allocation3 + $0x1c8] sm:$0xff] }
 0x1a2   : > { %4765 = vmatprep.mubr.bf16.mxu1 %v4126_v11  ;;  %v3973_v35 = vsel %vm6559_vm14, %v3971_v40, %v3972_v39  ;;  %v2677_v15 = vshll.u32 %v2305_v53, 16  ;;  %v2681_v7 = vshrl.u32 %v2305_v53, 16  ;;  %v2687_v60 = vshll.u32 %v2306_v19, 16  ;;  %v3826_v9 = vld [vmem:[#allocation2 + $0xd0] sm:$0xf]  ;;  %v3743_v33 = vpop.permute.xlu0 %3742  ;;  %3088 = vst.msk [vmem:[#allocation3 + $0x218] sm:$0xff] %vm1775_vm0, %v3054_v24 }
 0x1a3   : > { %v2666_v47 = vsel %vm6222_vm11, %v2661_v32, %v2665_v45  ;;  %4064 = vst.msk [vmem:[#allocation3 + $0x200] sm:$0xff] %vm1227_vm15, %v5509_v58  ;;  %v5510_v38 = vcombine.low %v3970_v62, %v3973_v35  ;;  %v2674_v48 = vor.u32 %v2673_v5, %v2670_v57  ;;  %v5495_v20 = vrot.slane %v3822_v52, 9  ;;  %v3827_v55 = vld [vmem:[#allocation2 + $0xd4] sm:$0x1]  ;;  %v4117_v3 = vld [vmem:[#allocation3 + $0x188] sm:$0xff]  ;;  %v4122_v1 = vld [vmem:[#allocation3 + $0x1b0] sm:$0xff] }
 0x1a4   : > { %v5415_v12 = vcombine.low %v2656_v44, %v2666_v47  ;;  %v2679_v8 = vrot.slane %v2677_v15, 5  ;;  %v2683_v43 = vrot.slane %v2681_v7, 4  ;;  %v3976_v46 = vrot.slane %v3823_v30, 5  ;;  %3777 = vst.msk [vmem:[#allocation3 + $0x220] sm:$0xff] %vm1775_vm0, %v3743_v33  ;;  %v4131_v18 = vld [vmem:[#allocation3 + $0x1f8] sm:$0xff]  ;;  %v4130_v10 = vld [vmem:[#allocation3 + $0x1f0] sm:$0xff] }
 0x1a5   : > { %4065 = vst.msk [vmem:[#allocation3 + $0x228] sm:$0xff] %vm1227_vm15, %v5510_v38  ;;  %v2675_v22 = vrot.slane %v2674_v48, 4  ;;  %v3979_v21 = vrot.slane %v3824_v63, 5  ;;  %v5496_v37 = vrot.slane %v3825_v14, 9  ;;  %v2689_v29 = vrot.slane %v2687_v60, 5  ;;  %v4127_v27 = vld [vmem:[#allocation3 + $0x1d8] sm:$0xff] }
 0x1a6   : > { %2769 = vst.msk [vmem:[#allocation3 + $0x240] sm:$0xff] %vm1227_vm15, %v5415_v12  ;;  %v2684_v59 = vor.u32 %v2683_v43, %v2679_v8  ;;  %v3983_v16 = vrot.slane %v3826_v9, 5  ;;  %v3986_v31 = vrot.slane %v3827_v55, 5  ;;  %v3977_v28 = vsel %vm6559_vm14, %v5495_v20, %v3976_v46 }
 0x1a7   : > { %v3978_v49 = vrot.slane %v3976_v46, 4  ;;  %v2680_v2 = vsel %vm6222_vm11, %v2675_v22, %v2679_v8  ;;  %5949 = vmatmul.mubr.msk.bf16.gmra.mrb[64].mxu0 %vm1227_vm15, %v4117_v3  ;;  %vm5069_vm2 = vcmask 57344  }
 0x1a8   : > { %v2685_v4 = vrot.slane %v2684_v59, 4  ;;  %v3984_v61 = vsel %vm6559_vm14, %v5496_v37, %v3983_v16  ;;  %v3985_v34 = vrot.slane %v3983_v16, 4  ;;  %5952 = vmatprep.mubr.msk.bf16.mxu0 %vm1227_vm15, %v4122_v1  ;;  %v3056_v42 = vpop.permute.xlu1 %3055 }
 0x1a9   : > { %4766 = vmatmul.mubr.bf16.gmra.mrb[60].mxu1 %v4125_v23  ;;  %v3980_v17 = vsel %vm6559_vm14, %v3978_v49, %v3979_v21  ;;  %3089 = vst.msk [vmem:[#allocation3 + $0x240] sm:$0xff] %vm1775_vm0, %v3056_v42  ;;  %v4135_v56 = vld [vmem:[#allocation3 + $0x218] sm:$0xff] }
 0x1aa   : > { %4773 = vmatprep.mubr.bf16.mxu1 %v4131_v18  ;;  %v2690_v51 = vsel %vm6222_vm11, %v2685_v4, %v2689_v29  ;;  %v5511_v45 = vcombine.low %v3977_v28, %v3980_v17  ;;  %v3987_v13 = vsel %vm6559_vm14, %v3985_v34, %v3986_v31  ;;  %v4132_v53 = vld [vmem:[#allocation3 + $0x200] sm:$0xff] }
 0x1ab   : > { %v5416_v54 = vcombine.low %v2680_v2, %v2690_v51  ;;  %v5512_v0 = vcombine.low %v3984_v61, %v3987_v13  ;;  %v4136_v25 = vld [vmem:[#allocation3 + $0x220] sm:$0xff] }
 0x1ac   : > { %4066 = vst.msk [vmem:[#allocation3 + $0x250] sm:$0xff] %vm1227_vm15, %v5511_v45  ;;  %v4137_v11 = vld [vmem:[#allocation3 + $0x228] sm:$0xff] }
 0x1ad   : > { %2770 = vst.msk [vmem:[#allocation3 + $0x268] sm:$0xff] %vm1227_vm15, %v5416_v54  ;;  %4067 = vst.msk [vmem:[#allocation3 + $0x278] sm:$0xff] %vm1227_vm15, %v5512_v0 }
 0x1af   : > { %5953 = vmatmul.mubr.msk.bf16.gmra.mrb[68].mxu0 %vm1227_vm15, %v4127_v27 }
 0x1b0   : > { %5956 = vmatprep.mubr.msk.bf16.mxu0 %vm1227_vm15, %v4132_v53  ;;  %v4140_v26 = vld [vmem:[#allocation3 + $0x240] sm:$0xff] }
 0x1b1   : > { %4774 = vmatmul.mubr.bf16.gmra.mrb[64].mxu1 %v4130_v10 }
 0x1b2   : > { %4781 = vmatprep.mubr.bf16.mxu1 %v4136_v25 }
 0x1b3   : > { %v4142_v19 = vld [vmem:[#allocation3 + $0x250] sm:$0xff] }
 0x1b4   : > { %v4147_v41 = vld [vmem:[#allocation3 + $0x278] sm:$0xff] }
 0x1b7   : > { %5957 = vmatmul.mubr.msk.bf16.gmra.mrb[72].mxu0 %vm1227_vm15, %v4137_v11 }
 0x1b8   : > { %v3058_v50 = vpop.permute.xlu1 %3057  ;;  %5960 = vmatprep.mubr.msk.bf16.mxu0 %vm1227_vm15, %v4142_v19 }
 0x1b9   : > { %v3745_v39 = vpop.permute.xlu0 %3744  ;;  %3090 = vst.msk [vmem:[#allocation3 + $0x268] sm:$0xff] %vm1775_vm0, %v3058_v50  ;;  %4782 = vmatmul.mubr.bf16.gmra.mrb[68].mxu1 %v4135_v56 }
 0x1ba   : > { %3778 = vst.msk [vmem:[#allocation3 + $0x248] sm:$0xff] %vm1775_vm0, %v3745_v39 }
 0x1bf   : > { %v3747_v36 = vpop.permute.xlu0 %3746  ;;  %5961 = vmatmul.mubr.msk.bf16.gmra.mrb[76].mxu0 %vm1227_vm15, %v4147_v41 }
 0x1c0   : > { %3779 = vst.msk [vmem:[#allocation3 + $0x270] sm:$0xff] %vm1775_vm0, %v3747_v36  ;;  %v4145_v62 = vld [vmem:[#allocation3 + $0x268] sm:$0xff] }
 0x1c1   : > { %v4141_v44 = vld [vmem:[#allocation3 + $0x248] sm:$0xff] }
 0x1c2   : > { %4789 = vmatprep.mubr.bf16.mxu1 %v4141_v44 }
 0x1c3   : > { %4790 = vmatmul.mubr.bf16.gmra.mrb[72].mxu1 %v4140_v26 }
 0x1c7   : > { %v4146_v6 = vld [vmem:[#allocation3 + $0x270] sm:$0xff] }
 0x1c8   : > { %4797 = vmatprep.mubr.bf16.mxu1 %v4146_v6 }
 0x1cb   : > { %4798 = vmatmul.mubr.bf16.gmra.mrb[76].mxu1 %v4145_v62 }
 0x1e8   : > { %v5696_v40 = vpop.f32.mrb[0].mxu0 }
 0x1e9   : > { %v5697_v52 = vpop.f32.mrb[1].mxu0 }
 0x1ea   : > { %v5768_v30 = vpop.f32.mrb[0].mxu1  ;;  %v7689_v32 = vadd.f32 %v5697_v52, %v5696_v40  ;;  %v5699_v58 = vpop.f32.mrb[2].mxu0 }
 0x1eb   : > { %v5769_v57 = vpop.f32.mrb[1].mxu1  ;;  %v5700_v5 = vpop.f32.mrb[3].mxu0 }
 0x1ec   : > { %v7691_v63 = vadd.f32 %v5769_v57, %v5768_v30  ;;  %v5771_v35 = vpop.f32.mrb[2].mxu1  ;;  %v5701_v15 = vadd.f32 %v5700_v5, %v5699_v58 }
 0x1ed   : > { %v5772_v7 = vpop.f32.mrb[3].mxu1 }
 0x1ee   : > { %v7693_v60 = vadd.f32 %v5772_v7, %v5771_v35 }
 0x1f0   : > { %v5702_v14 = vpop.f32.mrb[4].mxu0 }
 0x1f1   : > { %v5703_v47 = vpop.f32.mrb[5].mxu0 }
 0x1f2   : > { %v7695_v38 = vadd.f32 %v5703_v47, %v5702_v14  ;;  %v5705_v48 = vpop.f32.mrb[6].mxu0  ;;  %v5774_v9 = vpop.f32.mrb[4].mxu1 }
 0x1f3   : > { %v5706_v20 = vpop.f32.mrb[7].mxu0  ;;  %v5775_v24 = vpop.f32.mrb[5].mxu1 }
 0x1f4   : > { %v7697_v55 = vadd.f32 %v5706_v20, %v5705_v48  ;;  %v7699_v12 = vadd.f32 %v5775_v24, %v5774_v9  ;;  %v5777_v8 = vpop.f32.mrb[6].mxu1 }
 0x1f5   : > { %v5778_v43 = vpop.f32.mrb[7].mxu1 }
 0x1f6   : > { %v7701_v33 = vadd.f32 %v5778_v43, %v5777_v8 }
 0x1f9   : > { %v5708_v22 = vpop.f32.mrb[8].mxu0 }
 0x1fa   : > { %v5709_v46 = vpop.f32.mrb[9].mxu0 }
 0x1fb   : > { %v7703_v21 = vadd.f32 %v5709_v46, %v5708_v22  ;;  %v5711_v37 = vpop.f32.mrb[10].mxu0 }
 0x1fc   : > { %v5780_v23 = vpop.f32.mrb[8].mxu1  ;;  %v5712_v59 = vpop.f32.mrb[11].mxu0 }
 0x1fd   : > { %v5781_v29 = vpop.f32.mrb[9].mxu1  ;;  %v7705_v16 = vadd.f32 %v5712_v59, %v5711_v37 }
 0x1fe   : > { %v7707_v31 = vadd.f32 %v5781_v29, %v5780_v23  ;;  %v5783_v3 = vpop.f32.mrb[10].mxu1 }
 0x1ff   : > { %v5784_v18 = vpop.f32.mrb[11].mxu1 }
 0x200   : > { %v7709_v28 = vadd.f32 %v5784_v18, %v5783_v3 }
 0x202   : > { %v5714_v49 = vpop.f32.mrb[12].mxu0 }
 0x203   : > { %v5715_v1 = vpop.f32.mrb[13].mxu0 }
 0x204   : > { %v7711_v2 = vadd.f32 %v5715_v1, %v5714_v49  ;;  %v5717_v4 = vpop.f32.mrb[14].mxu0 }
 0x205   : > { %v5718_v61 = vpop.f32.mrb[15].mxu0 }
 0x206   : > { %v5786_v34 = vpop.f32.mrb[12].mxu1  ;;  %v7713_v17 = vadd.f32 %v5718_v61, %v5717_v4 }
 0x207   : > { %v5787_v51 = vpop.f32.mrb[13].mxu1 }
 0x208   : > { %v7715_v45 = vadd.f32 %v5787_v51, %v5786_v34  ;;  %v5789_v13 = vpop.f32.mrb[14].mxu1 }
 0x209   : > { %v5790_v42 = vpop.f32.mrb[15].mxu1 }
 0x20a   : > { %v7717_v54 = vadd.f32 %v5790_v42, %v5789_v13 }
 0x210   : > { %v5720_v0 = vpop.f32.mrb[16].mxu0 }
 0x211   : > { %v5721_v10 = vpop.f32.mrb[17].mxu0 }
 0x212   : > { %v7719_v27 = vadd.f32 %v5721_v10, %v5720_v0  ;;  %v5723_v25 = vpop.f32.mrb[18].mxu0 }
 0x213   : > { %v5724_v53 = vpop.f32.mrb[19].mxu0 }
 0x214   : > { %v7721_v56 = vadd.f32 %v5724_v53, %v5723_v25 }
 0x218   : > { %v5726_v11 = vpop.f32.mrb[20].mxu0 }
 0x219   : > { %v5727_v50 = vpop.f32.mrb[21].mxu0 }
 0x21a   : > { %v7723_v39 = vadd.f32 %v5727_v50, %v5726_v11  ;;  %v5729_v19 = vpop.f32.mrb[22].mxu0 }
 0x21b   : > { %v5730_v36 = vpop.f32.mrb[23].mxu0 }
 0x21c   : > { %v7725_v26 = vadd.f32 %v5730_v36, %v5729_v19 }
 0x220   : > { %v5808_v41 = vpop.f32.mrb[16].mxu1 }
 0x221   : > { %v5809_v44 = vpop.f32.mrb[17].mxu1 }
 0x222   : > { %v5810_v6 = vadd.f32 %v5809_v44, %v5808_v41  ;;  %v5811_v62 = vpop.f32.mrb[18].mxu1 }
 0x223   : > { %v5812_v40 = vpop.f32.mrb[19].mxu1 }
 0x224   : > { %v5813_v52 = vadd.f32 %v5812_v40, %v5811_v62  ;;  %v5732_v30 = vpop.f32.mrb[24].mxu0  ;;  %v7728_v58 = vadd.f32 %v5810_v6, %v7689_v32 }
 0x225   : > { %v5733_v57 = vpop.f32.mrb[25].mxu0 }
 0x226   : > { %v7730_v5 = vadd.f32 %v5733_v57, %v5732_v30  ;;  %v5735_v35 = vpop.f32.mrb[26].mxu0  ;;  %v7732_v7 = vadd.f32 %v5813_v52, %v5701_v15 }
 0x227   : > { %v5736_v14 = vpop.f32.mrb[27].mxu0 }
 0x228   : > { %v7734_v47 = vadd.f32 %v5736_v14, %v5735_v35 }
 0x22c   : > { %v5814_v48 = vpop.f32.mrb[20].mxu1  ;;  %v5738_v20 = vpop.f32.mrb[28].mxu0 }
 0x22d   : > { %v5815_v9 = vpop.f32.mrb[21].mxu1  ;;  %v5739_v24 = vpop.f32.mrb[29].mxu0 }
 0x22e   : > { %v5816_v8 = vadd.f32 %v5815_v9, %v5814_v48  ;;  %v5817_v43 = vpop.f32.mrb[22].mxu1  ;;  %v7736_v22 = vadd.f32 %v5739_v24, %v5738_v20  ;;  %v5741_v46 = vpop.f32.mrb[30].mxu0 }
 0x22f   : > { %v5818_v32 = vpop.f32.mrb[23].mxu1  ;;  %v5742_v37 = vpop.f32.mrb[31].mxu0 }
 0x230   : > { %v5819_v23 = vadd.f32 %v5818_v32, %v5817_v43  ;;  %v7738_v59 = vadd.f32 %v5742_v37, %v5741_v46  ;;  %v7741_v15 = vadd.f32 %v5816_v8, %v7695_v38 }
 0x232   : > { %v7744_v29 = vadd.f32 %v5819_v23, %v7697_v55 }
 0x234   : > { %v5820_v3 = vpop.f32.mrb[24].mxu1  ;;  %v5744_v18 = vpop.f32.mrb[32].mxu0 }
 0x235   : > { %v5821_v49 = vpop.f32.mrb[25].mxu1  ;;  %v5745_v1 = vpop.f32.mrb[33].mxu0 }
 0x236   : > { %v5822_v4 = vadd.f32 %v5821_v49, %v5820_v3  ;;  %v5823_v61 = vpop.f32.mrb[26].mxu1  ;;  %v7746_v34 = vadd.f32 %v5745_v1, %v5744_v18  ;;  %v5747_v51 = vpop.f32.mrb[34].mxu0 }
 0x237   : > { %v5824_v13 = vpop.f32.mrb[27].mxu1  ;;  %v5748_v42 = vpop.f32.mrb[35].mxu0 }
 0x238   : > { %v5825_v0 = vadd.f32 %v5824_v13, %v5823_v61  ;;  %v7748_v10 = vadd.f32 %v5748_v42, %v5747_v51  ;;  %v7751_v38 = vadd.f32 %v5822_v4, %v7703_v21 }
 0x23a   : > { %v7754_v55 = vadd.f32 %v5825_v0, %v7705_v16 }
 0x23c   : > { %v5826_v25 = vpop.f32.mrb[28].mxu1  ;;  %v5750_v53 = vpop.f32.mrb[36].mxu0 }
 0x23d   : > { %v5827_v11 = vpop.f32.mrb[29].mxu1  ;;  %v5751_v50 = vpop.f32.mrb[37].mxu0 }
 0x23e   : > { %v5828_v19 = vadd.f32 %v5827_v11, %v5826_v25  ;;  %v5829_v36 = vpop.f32.mrb[30].mxu1  ;;  %v7756_v41 = vadd.f32 %v5751_v50, %v5750_v53  ;;  %v5753_v44 = vpop.f32.mrb[38].mxu0 }
 0x23f   : > { %v5830_v6 = vpop.f32.mrb[31].mxu1  ;;  %v5754_v62 = vpop.f32.mrb[39].mxu0 }
 0x240   : > { %v5831_v40 = vadd.f32 %v5830_v6, %v5829_v36  ;;  %v7758_v52 = vadd.f32 %v5754_v62, %v5753_v44  ;;  %v7761_v21 = vadd.f32 %v5828_v19, %v7711_v2 }
 0x242   : > { %v7764_v16 = vadd.f32 %v5831_v40, %v7713_v17 }
 0x244   : > { %v5832_v30 = vpop.f32.mrb[32].mxu1  ;;  %v5756_v20 = vpop.f32.mrb[40].mxu0 }
 0x245   : > { %v5833_v57 = vpop.f32.mrb[33].mxu1  ;;  %v5757_v24 = vpop.f32.mrb[41].mxu0 }
 0x246   : > { %v5834_v35 = vadd.f32 %v5833_v57, %v5832_v30  ;;  %v5835_v14 = vpop.f32.mrb[34].mxu1  ;;  %v7769_v43 = vadd.f32 %v5757_v24, %v5756_v20  ;;  %v5759_v46 = vpop.f32.mrb[42].mxu0 }
 0x247   : > { %v5836_v48 = vpop.f32.mrb[35].mxu1  ;;  %v5760_v32 = vpop.f32.mrb[43].mxu0 }
 0x248   : > { %v5837_v9 = vadd.f32 %v5836_v48, %v5835_v14  ;;  %v7767_v8 = vadd.f32 %v5834_v35, %v7719_v27  ;;  %v7774_v17 = vadd.f32 %v5760_v32, %v5759_v46 }
 0x24a   : > { %v7772_v2 = vadd.f32 %v5837_v9, %v7721_v56 }
 0x24c   : > { %v5838_v37 = vpop.f32.mrb[36].mxu1 }
 0x24d   : > { %v5839_v23 = vpop.f32.mrb[37].mxu1 }
 0x24e   : > { %v5840_v3 = vadd.f32 %v5839_v23, %v5838_v37  ;;  %v5841_v18 = vpop.f32.mrb[38].mxu1 }
 0x24f   : > { %v5842_v49 = vpop.f32.mrb[39].mxu1 }
 0x250   : > { %v5843_v1 = vadd.f32 %v5842_v49, %v5841_v18  ;;  %v7777_v4 = vadd.f32 %v5840_v3, %v7723_v39 }
 0x252   : > { %v7780_v27 = vadd.f32 %v5843_v1, %v7725_v26  ;;  %v5762_v13 = vpop.f32.mrb[44].mxu0 }
 0x253   : > { %v5763_v0 = vpop.f32.mrb[45].mxu0 }
 0x254   : > { %v5844_v61 = vpop.f32.mrb[40].mxu1  ;;  %v7782_v53 = vadd.f32 %v5763_v0, %v5762_v13  ;;  %v5765_v11 = vpop.f32.mrb[46].mxu0 }
 0x255   : > { %v5845_v51 = vpop.f32.mrb[41].mxu1  ;;  %v5766_v19 = vpop.f32.mrb[47].mxu0 }
 0x256   : > { %v5846_v56 = vadd.f32 %v5845_v51, %v5844_v61  ;;  %v5847_v42 = vpop.f32.mrb[42].mxu1  ;;  %v7787_v39 = vadd.f32 %v5766_v19, %v5765_v11 }
 0x257   : > { %v5848_v25 = vpop.f32.mrb[43].mxu1 }
 0x258   : > { %v5849_v50 = vadd.f32 %v5848_v25, %v5847_v42  ;;  %v7785_v36 = vadd.f32 %v5846_v56, %v7730_v5 }
 0x25a   : > { %v7791_v26 = vadd.f32 %v5849_v50, %v7734_v47  ;;  %v5934_v62 = vpop.f32.mrb[48].mxu0 }
 0x25b   : > { %v4849_v30 = vadd.f32 %v5934_v62, %v7741_v15  ;;  %v4840_v57 = vpop.f32.mrb[49].mxu0 }
 0x25c   : > { %v5850_v44 = vpop.f32.mrb[44].mxu1  ;;  %v4841_v35 = vadd.f32 %v4840_v57, %v7728_v58  ;;  %v5935_v14 = vpop.f32.mrb[50].mxu0 }
 0x25d   : > { %v5851_v6 = vpop.f32.mrb[45].mxu1  ;;  %4970 = vst.msk [vmem:[%s7796_s26 + $0x10] sm:$0xff] %vm4967_vm1, %v4849_v30  ;;  %v4852_v20 = vadd.f32 %v5935_v14, %v7744_v29  ;;  %v4843_v9 = vpop.f32.mrb[51].mxu0  ;;  %v5073_v58 = vmul.f32 %v4849_v30, %v4849_v30 }
 0x25e   : > { %v5852_v5 = vadd.f32 %v5851_v6, %v5850_v44  ;;  %v5853_v40 = vpop.f32.mrb[46].mxu1  ;;  %4968 = vst.msk [vmem:[%s7796_s26] sm:$0xff] %vm4967_vm1, %v4841_v35  ;;  %v5071_v24 = vmul.f32 %v4841_v35, %v4841_v35  ;;  %v4844_v46 = vadd.f32 %v4843_v9, %v7732_v7  ;;  %v5000_v37 = vsel %vm4967_vm1, %v4841_v35, 0.0 }
 0x25f   : > { %v5854_v47 = vpop.f32.mrb[47].mxu1  ;;  %4971 = vst.msk [vmem:[%s7796_s26 + $0x18] sm:$0xff] %vm4967_vm1, %v4852_v20  ;;  %v5074_v3 = vmul.f32 %v4852_v20, %v4852_v20  ;;  %v5003_v7 = vsel %vm4967_vm1, %v4849_v30, 0.0  ;;  %v5106_v11 = vsel %vm4967_vm1, %v5073_v58, 0.0  ;;  %v5005_v6 = vsel %vm4967_vm1, %v4852_v20, 0.0 }
 0x260   : > { %v5855_v48 = vadd.f32 %v5854_v47, %v5853_v40  ;;  %v7807_v32 = vadd.f32 %v5852_v5, %v7736_v22  ;;  %4969 = vst.msk [vmem:[%s7796_s26 + $0x8] sm:$0xff] %vm4967_vm1, %v4844_v46  ;;  %v5001_v29 = vsel %vm4967_vm1, %v4844_v46, 0.0  ;;  %v5072_v23 = vmul.f32 %v4844_v46, %v4844_v46 }
 0x261   : > { %v5002_v18 = vadd.f32 %v5001_v29, %v5000_v37  ;;  %v5103_v22 = vsel %vm4967_vm1, %v5071_v24, 0.0  ;;  %v5108_v62 = vsel %vm4967_vm1, %v5074_v3, 0.0 }
 0x262   : > { %v7812_v15 = vadd.f32 %v5855_v48, %v7738_v59  ;;  %v5104_v1 = vsel %vm4967_vm1, %v5072_v23, 0.0  ;;  %v5938_v59 = vpop.f32.mrb[52].mxu0 }
 0x263   : > { %v5004_v51 = vadd.f32 %v5003_v7, %v5002_v18  ;;  %v5105_v13 = vadd.f32 %v5104_v1, %v5103_v22  ;;  %v4865_v0 = vadd.f32 %v5938_v59, %v7761_v21  ;;  %v4856_v25 = vpop.f32.mrb[53].mxu0 }
 0x264   : > { %v5856_v49 = vpop.f32.mrb[48].mxu1  ;;  %v4857_v19 = vadd.f32 %v4856_v25, %v7751_v38  ;;  %v5939_v44 = vpop.f32.mrb[54].mxu0 }
 0x265   : > { %v5857_v61 = vpop.f32.mrb[49].mxu1  ;;  %v5107_v5 = vadd.f32 %v5106_v11, %v5105_v13  ;;  %4974 = vst.msk [vmem:[%s7796_s26 + $0x30] sm:$0xff] %vm4967_vm1, %v4865_v0  ;;  %v4859_v30 = vpop.f32.mrb[55].mxu0  ;;  %v5006_v21 = vadd.f32 %v5005_v6, %v5004_v51  ;;  %v4868_v38 = vadd.f32 %v5939_v44, %v7764_v16  ;;  %v5077_v20 = vmul.f32 %v4865_v0, %v4865_v0 }
 0x266   : > { %v5858_v56 = vadd.f32 %v5857_v61, %v5856_v49  ;;  %v5859_v42 = vpop.f32.mrb[50].mxu1  ;;  %4972 = vst.msk [vmem:[%s7796_s26 + $0x20] sm:$0xff] %vm4967_vm1, %v4857_v19  ;;  %v5007_v57 = vsel %vm4967_vm1, %v4857_v19, 0.0  ;;  %v5075_v47 = vmul.f32 %v4857_v19, %v4857_v19  ;;  %v4860_v14 = vadd.f32 %v4859_v30, %v7754_v55 }
 0x267   : > { %v5860_v50 = vpop.f32.mrb[51].mxu1  ;;  %v5109_v35 = vadd.f32 %v5108_v62, %v5107_v5  ;;  %v5008_v9 = vadd.f32 %v5007_v57, %v5006_v21  ;;  %4975 = vst.msk [vmem:[%s7796_s26 + $0x38] sm:$0xff] %vm4967_vm1, %v4868_v38  ;;  %v5011_v55 = vsel %vm4967_vm1, %v4865_v0, 0.0  ;;  %v5078_v18 = vmul.f32 %v4868_v38, %v4868_v38 }
 0x268   : > { %v5861_v40 = vadd.f32 %v5860_v50, %v5859_v42  ;;  %v7834_v48 = vadd.f32 %v5858_v56, %v7746_v34  ;;  %v5110_v24 = vsel %vm4967_vm1, %v5075_v47, 0.0  ;;  %4973 = vst.msk [vmem:[%s7796_s26 + $0x28] sm:$0xff] %vm4967_vm1, %v4860_v14  ;;  %v5009_v58 = vsel %vm4967_vm1, %v4860_v14, 0.0 }
 0x269   : > { %v5111_v46 = vadd.f32 %v5110_v24, %v5109_v35  ;;  %v5076_v37 = vmul.f32 %v4860_v14, %v4860_v14  ;;  %v5010_v34 = vadd.f32 %v5009_v58, %v5008_v9  ;;  %v5114_v42 = vsel %vm4967_vm1, %v5077_v20, 0.0 }
 0x26a   : > { %v7843_v16 = vadd.f32 %v5861_v40, %v7748_v10  ;;  %v5942_v3 = vpop.f32.mrb[56].mxu0  ;;  %v5013_v0 = vsel %vm4967_vm1, %v4868_v38, 0.0 }
 0x26b   : > { %v5112_v49 = vsel %vm4967_vm1, %v5076_v37, 0.0  ;;  %v4881_v1 = vadd.f32 %v5942_v3, %v7777_v4  ;;  %v4872_v61 = vpop.f32.mrb[57].mxu0  ;;  %v5012_v59 = vadd.f32 %v5011_v55, %v5010_v34 }
 0x26c   : > { %v5862_v29 = vpop.f32.mrb[52].mxu1  ;;  %v5113_v51 = vadd.f32 %v5112_v49, %v5111_v46  ;;  %v4873_v13 = vadd.f32 %v4872_v61, %v7767_v8  ;;  %v5943_v56 = vpop.f32.mrb[58].mxu0  ;;  %v5116_v8 = vsel %vm4967_vm1, %v5078_v18, 0.0 }
 0x26d   : > { %v5863_v23 = vpop.f32.mrb[53].mxu1  ;;  %4978 = vst.msk [vmem:[%s7796_s26 + $0x50] sm:$0xff] %vm4967_vm1, %v4881_v1  ;;  %v4884_v11 = vadd.f32 %v5943_v56, %v7780_v27  ;;  %v4875_v50 = vpop.f32.mrb[59].mxu0  ;;  %v5014_v19 = vadd.f32 %v5013_v0, %v5012_v59  ;;  %v5081_v21 = vmul.f32 %v4881_v1, %v4881_v1  ;;  %v5019_v14 = vsel %vm4967_vm1, %v4881_v1, 0.0 }
 0x26e   : > { %v5864_v7 = vadd.f32 %v5863_v23, %v5862_v29  ;;  %v5865_v22 = vpop.f32.mrb[54].mxu1  ;;  %v5115_v4 = vadd.f32 %v5114_v42, %v5113_v51  ;;  %4976 = vst.msk [vmem:[%s7796_s26 + $0x40] sm:$0xff] %vm4967_vm1, %v4873_v13  ;;  %v5015_v44 = vsel %vm4967_vm1, %v4873_v13, 0.0  ;;  %v5079_v6 = vmul.f32 %v4873_v13, %v4873_v13 }
 0x26f   : > { %v5866_v10 = vpop.f32.mrb[55].mxu1  ;;  %4979 = vst.msk [vmem:[%s7796_s26 + $0x58] sm:$0xff] %vm4967_vm1, %v4884_v11  ;;  %v4876_v62 = vadd.f32 %v4875_v50, %v7772_v2  ;;  %v5016_v5 = vadd.f32 %v5015_v44, %v5014_v19  ;;  %v5082_v46 = vmul.f32 %v4884_v11, %v4884_v11  ;;  %v5122_v49 = vsel %vm4967_vm1, %v5081_v21, 0.0 }
 0x270   : > { %v5867_v25 = vadd.f32 %v5866_v10, %v5865_v22  ;;  %v5117_v40 = vadd.f32 %v5116_v8, %v5115_v4  ;;  %v5118_v30 = vsel %vm4967_vm1, %v5079_v6, 0.0  ;;  %v4752_v27 = vadd.f32 %v5864_v7, %v7756_v41 }
 0x271   : > { %4977 = vst.msk [vmem:[%s7796_s26 + $0x48] sm:$0xff] %vm4967_vm1, %v4876_v62  ;;  %v5017_v57 = vsel %vm4967_vm1, %v4876_v62, 0.0  ;;  %v5080_v47 = vmul.f32 %v4876_v62, %v4876_v62  ;;  %v5021_v7 = vsel %vm4967_vm1, %v4884_v11, 0.0 }
 0x272   : > { %v4755_v35 = vadd.f32 %v5867_v25, %v7758_v52  ;;  %v5119_v20 = vadd.f32 %v5118_v30, %v5117_v40  ;;  %v5018_v9 = vadd.f32 %v5017_v57, %v5016_v5  ;;  %v5946_v24 = vpop.f32.mrb[60].mxu0 }
 0x273   : > { %v5120_v58 = vsel %vm4967_vm1, %v5080_v47, 0.0  ;;  %v4897_v29 = vadd.f32 %v5946_v24, %v7807_v32  ;;  %v4888_v55 = vpop.f32.mrb[61].mxu0 }
 0x274   : > { %v5868_v38 = vpop.f32.mrb[56].mxu1  ;;  %v5020_v34 = vadd.f32 %v5019_v14, %v5018_v9  ;;  %v5121_v23 = vadd.f32 %v5120_v58, %v5119_v20  ;;  %v4889_v3 = vadd.f32 %v4888_v55, %v7785_v36  ;;  %v5947_v18 = vpop.f32.mrb[62].mxu0  ;;  %v5124_v36 = vsel %vm4967_vm1, %v5082_v46, 0.0 }
 0x275   : > { %v5869_v2 = vpop.f32.mrb[57].mxu1  ;;  %4982 = vst.msk [vmem:[%s7796_s26 + $0x70] sm:$0xff] %vm4967_vm1, %v4897_v29  ;;  %v4900_v1 = vadd.f32 %v5947_v18, %v7812_v15  ;;  %v4891_v61 = vpop.f32.mrb[63].mxu0  ;;  %v5085_v25 = vmul.f32 %v4897_v29, %v4897_v29  ;;  %v5027_v44 = vsel %vm4967_vm1, %v4897_v29, 0.0 }
 0x276   : > { %v5870_v41 = vadd.f32 %v5869_v2, %v5868_v38  ;;  %v5871_v37 = vpop.f32.mrb[58].mxu1  ;;  %v5123_v32 = vadd.f32 %v5122_v49, %v5121_v23  ;;  %4980 = vst.msk [vmem:[%s7796_s26 + $0x60] sm:$0xff] %vm4967_vm1, %v4889_v3  ;;  %v5022_v59 = vadd.f32 %v5021_v7, %v5020_v34  ;;  %v5023_v51 = vsel %vm4967_vm1, %v4889_v3, 0.0 }
 0x277   : > { %v5872_v52 = vpop.f32.mrb[59].mxu1  ;;  %v5083_v10 = vmul.f32 %v4889_v3, %v4889_v3  ;;  %4983 = vst.msk [vmem:[%s7796_s26 + $0x78] sm:$0xff] %vm4967_vm1, %v4900_v1  ;;  %v4892_v13 = vadd.f32 %v4891_v61, %v7791_v26  ;;  %v5086_v5 = vmul.f32 %v4900_v1, %v4900_v1  ;;  %v5130_v9 = vsel %vm4967_vm1, %v5085_v25, 0.0 }
 0x278   : > { %v5873_v22 = vadd.f32 %v5872_v52, %v5871_v37  ;;  %v5024_v56 = vadd.f32 %v5023_v51, %v5022_v59  ;;  %v5125_v42 = vadd.f32 %v5124_v36, %v5123_v32  ;;  %v4760_v15 = vadd.f32 %v5870_v41, %v7769_v43 }
 0x279   : > { %v5126_v0 = vsel %vm4967_vm1, %v5083_v10, 0.0  ;;  %4981 = vst.msk [vmem:[%s7796_s26 + $0x68] sm:$0xff] %vm4967_vm1, %v4892_v13  ;;  %v5025_v11 = vsel %vm4967_vm1, %v4892_v13, 0.0  ;;  %v5084_v50 = vmul.f32 %v4892_v13, %v4892_v13  ;;  %v5029_v2 = vsel %vm4967_vm1, %v4900_v1, 0.0 }
 0x27a   : > { %v7889_v19 = vadd.f32 %v5873_v22, %v7774_v17  ;;  %v5127_v6 = vadd.f32 %v5126_v0, %v5125_v42  ;;  %v5026_v26 = vadd.f32 %v5025_v11, %v5024_v56  ;;  %v5950_v62 = vpop.f32.mrb[64].mxu0 }
 0x27b   : > { %v5128_v43 = vsel %vm4967_vm1, %v5084_v50, 0.0  ;;  %v4913_v21 = vadd.f32 %v5950_v62, %v4752_v27  ;;  %v4904_v57 = vpop.f32.mrb[65].mxu0 }
 0x27c   : > { %v5874_v4 = vpop.f32.mrb[60].mxu1  ;;  %v5028_v47 = vadd.f32 %v5027_v44, %v5026_v26  ;;  %v5129_v38 = vadd.f32 %v5128_v43, %v5127_v6  ;;  %v4905_v14 = vadd.f32 %v4904_v57, %v7834_v48  ;;  %v5951_v20 = vpop.f32.mrb[66].mxu0  ;;  %v5132_v48 = vsel %vm4967_vm1, %v5086_v5, 0.0 }
 0x27d   : > { %v5875_v8 = vpop.f32.mrb[61].mxu1  ;;  %4986 = vst.msk [vmem:[%s7796_s26 + $0x90] sm:$0xff] %vm4967_vm1, %v4913_v21  ;;  %v4916_v46 = vadd.f32 %v5951_v20, %v4755_v35  ;;  %v4907_v58 = vpop.f32.mrb[67].mxu0  ;;  %v5089_v3 = vmul.f32 %v4913_v21, %v4913_v21  ;;  %v5035_v1 = vsel %vm4967_vm1, %v4913_v21, 0.0 }
 0x27e   : > { %v5876_v40 = vadd.f32 %v5875_v8, %v5874_v4  ;;  %v5877_v30 = vpop.f32.mrb[62].mxu1  ;;  %v5131_v41 = vadd.f32 %v5130_v9, %v5129_v38  ;;  %4984 = vst.msk [vmem:[%s7796_s26 + $0x80] sm:$0xff] %vm4967_vm1, %v4905_v14  ;;  %v5030_v27 = vadd.f32 %v5029_v2, %v5028_v47  ;;  %v5031_v37 = vsel %vm4967_vm1, %v4905_v14, 0.0 }
 0x27f   : > { %v5878_v17 = vpop.f32.mrb[63].mxu1  ;;  %v5087_v29 = vmul.f32 %v4905_v14, %v4905_v14  ;;  %4987 = vst.msk [vmem:[%s7796_s26 + $0x98] sm:$0xff] %vm4967_vm1, %v4916_v46  ;;  %v4908_v55 = vadd.f32 %v4907_v58, %v7843_v16  ;;  %v5090_v51 = vmul.f32 %v4916_v46, %v4916_v46  ;;  %v5138_v50 = vsel %vm4967_vm1, %v5089_v3, 0.0 }
 0x280   : > { %v5879_v24 = vadd.f32 %v5878_v17, %v5877_v30  ;;  %v5032_v34 = vadd.f32 %v5031_v37, %v5030_v27  ;;  %v5133_v23 = vadd.f32 %v5132_v48, %v5131_v41  ;;  %v4768_v35 = vadd.f32 %v5876_v40, %v7782_v53 }
 0x281   : > { %v5134_v52 = vsel %vm4967_vm1, %v5087_v29, 0.0  ;;  %4985 = vst.msk [vmem:[%s7796_s26 + $0x88] sm:$0xff] %vm4967_vm1, %v4908_v55  ;;  %v5033_v18 = vsel %vm4967_vm1, %v4908_v55, 0.0  ;;  %v5088_v49 = vmul.f32 %v4908_v55, %v4908_v55  ;;  %v5037_v4 = vsel %vm4967_vm1, %v4916_v46, 0.0 }
 0x282   : > { %v4771_v22 = vadd.f32 %v5879_v24, %v7787_v39  ;;  %v5135_v61 = vadd.f32 %v5134_v52, %v5133_v23  ;;  %v5034_v32 = vadd.f32 %v5033_v18, %v5032_v34  ;;  %v5954_v59 = vpop.f32.mrb[68].mxu0 }
 0x283   : > { %v5136_v10 = vsel %vm4967_vm1, %v5088_v49, 0.0  ;;  %v4929_v13 = vadd.f32 %v5954_v59, %v4768_v35  ;;  %v4920_v56 = vpop.f32.mrb[69].mxu0 }
 0x284   : > { %v5880_v7 = vpop.f32.mrb[64].mxu1  ;;  %v5036_v42 = vadd.f32 %v5035_v1, %v5034_v32  ;;  %v5137_v0 = vadd.f32 %v5136_v10, %v5135_v61  ;;  %v4921_v39 = vadd.f32 %v4920_v56, %v4760_v15  ;;  %v5955_v11 = vpop.f32.mrb[70].mxu0  ;;  %v5140_v15 = vsel %vm4967_vm1, %v5090_v51, 0.0 }
 0x285   : > { %v5881_v16 = vpop.f32.mrb[65].mxu1  ;;  %4990 = vst.msk [vmem:[%s7796_s26 + $0xb0] sm:$0xff] %vm4967_vm1, %v4929_v13  ;;  %v4932_v6 = vadd.f32 %v5955_v11, %v4771_v22  ;;  %v4923_v26 = vpop.f32.mrb[71].mxu0  ;;  %v5093_v38 = vmul.f32 %v4929_v13, %v4929_v13 }
 0x286   : > { %v5882_v53 = vadd.f32 %v5881_v16, %v5880_v7  ;;  %v5883_v36 = vpop.f32.mrb[66].mxu1  ;;  %v5139_v8 = vadd.f32 %v5138_v50, %v5137_v0  ;;  %4988 = vst.msk [vmem:[%s7796_s26 + $0xa0] sm:$0xff] %vm4967_vm1, %v4921_v39  ;;  %v5038_v62 = vadd.f32 %v5037_v4, %v5036_v42  ;;  %v5039_v5 = vsel %vm4967_vm1, %v4921_v39, 0.0 }
 0x287   : > { %v5884_v25 = vpop.f32.mrb[67].mxu1  ;;  %v5091_v43 = vmul.f32 %v4921_v39, %v4921_v39  ;;  %4991 = vst.msk [vmem:[%s7796_s26 + $0xb8] sm:$0xff] %vm4967_vm1, %v4932_v6  ;;  %v4924_v40 = vadd.f32 %v4923_v26, %v7889_v19  ;;  %v5043_v19 = vsel %vm4967_vm1, %v4929_v13, 0.0  ;;  %v5094_v41 = vmul.f32 %v4932_v6, %v4932_v6 }
 0x288   : > { %v5885_v44 = vadd.f32 %v5884_v25, %v5883_v36  ;;  %v5040_v30 = vadd.f32 %v5039_v5, %v5038_v62  ;;  %v5141_v21 = vadd.f32 %v5140_v15, %v5139_v8  ;;  %v4776_v47 = vadd.f32 %v5882_v53, %v7691_v63 }
 0x289   : > { %v5142_v57 = vsel %vm4967_vm1, %v5091_v43, 0.0  ;;  %4989 = vst.msk [vmem:[%s7796_s26 + $0xa8] sm:$0xff] %vm4967_vm1, %v4924_v40  ;;  %v5041_v17 = vsel %vm4967_vm1, %v4924_v40, 0.0  ;;  %v5092_v14 = vmul.f32 %v4924_v40, %v4924_v40  ;;  %v5045_v35 = vsel %vm4967_vm1, %v4932_v6, 0.0 }
 0x28a   : > { %v4779_v9 = vadd.f32 %v5885_v44, %v7693_v60  ;;  %v5143_v2 = vadd.f32 %v5142_v57, %v5141_v21  ;;  %v5042_v24 = vadd.f32 %v5041_v17, %v5040_v30  ;;  %v5958_v58 = vpop.f32.mrb[72].mxu0  ;;  %v5146_v60 = vsel %vm4967_vm1, %v5093_v38, 0.0 }
 0x28b   : > { %v5144_v27 = vsel %vm4967_vm1, %v5092_v14, 0.0  ;;  %v4936_v29 = vpop.f32.mrb[73].mxu0  ;;  %v5148_v32 = vsel %vm4967_vm1, %v5094_v41, 0.0 }
 0x28c   : > { %v5886_v20 = vpop.f32.mrb[68].mxu1  ;;  %v5044_v48 = vadd.f32 %v5043_v19, %v5042_v24  ;;  %v5145_v55 = vadd.f32 %v5144_v27, %v5143_v2  ;;  %v4937_v23 = vadd.f32 %v4936_v29, %v4776_v47  ;;  %v5959_v52 = vpop.f32.mrb[74].mxu0 }
 0x28d   : > { %v5887_v46 = vpop.f32.mrb[69].mxu1  ;;  %v4939_v49 = vpop.f32.mrb[75].mxu0 }
 0x28e   : > { %v5888_v63 = vadd.f32 %v5887_v46, %v5886_v20  ;;  %v5889_v37 = vpop.f32.mrb[70].mxu1  ;;  %v5147_v7 = vadd.f32 %v5146_v60, %v5145_v55  ;;  %4992 = vst.msk [vmem:[%s7796_s26 + $0xc0] sm:$0xff] %vm4967_vm1, %v4937_v23  ;;  %v5046_v22 = vadd.f32 %v5045_v35, %v5044_v48  ;;  %v5047_v1 = vsel %vm4967_vm1, %v4937_v23, 0.0 }
 0x28f   : > { %v5890_v34 = vpop.f32.mrb[71].mxu1  ;;  %v5095_v61 = vmul.f32 %v4937_v23, %v4937_v23  ;;  %v4940_v51 = vadd.f32 %v4939_v49, %v4779_v9 }
 0x290   : > { %v5891_v3 = vadd.f32 %v5890_v34, %v5889_v37  ;;  %v4784_v18 = vadd.f32 %v5888_v63, %v7699_v12  ;;  %v5048_v10 = vadd.f32 %v5047_v1, %v5046_v22  ;;  %v5149_v53 = vadd.f32 %v5148_v32, %v5147_v7 }
 0x291   : > { %v5150_v12 = vsel %vm4967_vm1, %v5095_v61, 0.0  ;;  %4993 = vst.msk [vmem:[%s7796_s26 + $0xc8] sm:$0xff] %vm4967_vm1, %v4940_v51  ;;  %v5049_v13 = vsel %vm4967_vm1, %v4940_v51, 0.0  ;;  %v5096_v25 = vmul.f32 %v4940_v51, %v4940_v51 }
 0x292   : > { %v4945_v16 = vadd.f32 %v5958_v58, %v4784_v18  ;;  %v4787_v59 = vadd.f32 %v5891_v3, %v7701_v33  ;;  %v5151_v42 = vadd.f32 %v5150_v12, %v5149_v53  ;;  %v5050_v0 = vadd.f32 %v5049_v13, %v5048_v10  ;;  %v5962_v11 = vpop.f32.mrb[76].mxu0 }
 0x293   : > { %v4952_v4 = vpop.f32.mrb[77].mxu0  ;;  %v5152_v26 = vsel %vm4967_vm1, %v5096_v25, 0.0 }
 0x294   : > { %4994 = vst.msk [vmem:[%s7796_s26 + $0xd0] sm:$0xff] %vm4967_vm1, %v4945_v16  ;;  %v4948_v36 = vadd.f32 %v5959_v52, %v4787_v59  ;;  %v5097_v56 = vmul.f32 %v4945_v16, %v4945_v16  ;;  %v5051_v33 = vsel %vm4967_vm1, %v4945_v16, 0.0  ;;  %v5963_v5 = vpop.f32.mrb[78].mxu0  ;;  %v5153_v15 = vadd.f32 %v5152_v26, %v5151_v42 }
 0x295   : > { %v5052_v6 = vadd.f32 %v5051_v33, %v5050_v0  ;;  %v4955_v30 = vpop.f32.mrb[79].mxu0 }
 0x296   : > { %v5892_v39 = vpop.f32.mrb[72].mxu1  ;;  %4995 = vst.msk [vmem:[%s7796_s26 + $0xd8] sm:$0xff] %vm4967_vm1, %v4948_v36  ;;  %v5098_v44 = vmul.f32 %v4948_v36, %v4948_v36  ;;  %v5053_v43 = vsel %vm4967_vm1, %v4948_v36, 0.0  ;;  %v5154_v21 = vsel %vm4967_vm1, %v5097_v56, 0.0 }
 0x297   : > { %v5893_v50 = vpop.f32.mrb[73].mxu1  ;;  %v5054_v38 = vadd.f32 %v5053_v43, %v5052_v6  ;;  %v5155_v17 = vadd.f32 %v5154_v21, %v5153_v15 }
 0x298   : > { %v5894_v8 = vadd.f32 %v5893_v50, %v5892_v39  ;;  %v5895_v62 = vpop.f32.mrb[74].mxu1  ;;  %v5156_v14 = vsel %vm4967_vm1, %v5098_v44, 0.0 }
 0x299   : > { %v5896_v40 = vpop.f32.mrb[75].mxu1  ;;  %v5157_v2 = vadd.f32 %v5156_v14, %v5155_v17 }
 0x29a   : > { %v5897_v57 = vadd.f32 %v5896_v40, %v5895_v62  ;;  %v4792_v47 = vadd.f32 %v5894_v8, %v7707_v31 }
 0x29c   : > { %v4953_v20 = vadd.f32 %v4952_v4, %v4792_v47  ;;  %v4795_v9 = vadd.f32 %v5897_v57, %v7709_v28 }
 0x29e   : > { %4996 = vst.msk [vmem:[%s7796_s26 + $0xe0] sm:$0xff] %vm4967_vm1, %v4953_v20  ;;  %v5055_v24 = vsel %vm4967_vm1, %v4953_v20, 0.0  ;;  %v5099_v46 = vmul.f32 %v4953_v20, %v4953_v20  ;;  %v4956_v58 = vadd.f32 %v4955_v30, %v4795_v9  ;;  %v5898_v19 = vpop.f32.mrb[76].mxu1 }
 0x29f   : > { %v5056_v41 = vadd.f32 %v5055_v24, %v5054_v38  ;;  %v5899_v27 = vpop.f32.mrb[77].mxu1 }
 0x2a0   : > { %v5158_v31 = vsel %vm4967_vm1, %v5099_v46, 0.0  ;;  %4997 = vst.msk [vmem:[%s7796_s26 + $0xe8] sm:$0xff] %vm4967_vm1, %v4956_v58  ;;  %v5057_v63 = vsel %vm4967_vm1, %v4956_v58, 0.0  ;;  %v5100_v37 = vmul.f32 %v4956_v58, %v4956_v58  ;;  %v5900_v29 = vadd.f32 %v5899_v27, %v5898_v19  ;;  %v5901_v28 = vpop.f32.mrb[78].mxu1 }
 0x2a1   : > { %v5159_v48 = vadd.f32 %v5158_v31, %v5157_v2  ;;  %v5058_v55 = vadd.f32 %v5057_v63, %v5056_v41  ;;  %v5902_v34 = vpop.f32.mrb[79].mxu1 }
 0x2a2   : > { %v5160_v23 = vsel %vm4967_vm1, %v5100_v37, 0.0  ;;  %v4800_v52 = vadd.f32 %v5900_v29, %v7715_v45  ;;  %v5903_v60 = vadd.f32 %v5902_v34, %v5901_v28 }
 0x2a3   : > { %v5161_v35 = vadd.f32 %v5160_v23, %v5159_v48 }
 0x2a4   : > { %v4961_v3 = vadd.f32 %v5962_v11, %v4800_v52  ;;  %v4803_v18 = vadd.f32 %v5903_v60, %v7717_v54 }
 0x2a6   : > { %4998 = vst.msk [vmem:[%s7796_s26 + $0xf0] sm:$0xff] %vm4967_vm1, %v4961_v3  ;;  %v5059_v49 = vsel %vm4967_vm1, %v4961_v3, 0.0  ;;  %v5101_v7 = vmul.f32 %v4961_v3, %v4961_v3  ;;  %v4964_v22 = vadd.f32 %v5963_v5, %v4803_v18 }
 0x2a7   : > { %v5060_v1 = vadd.f32 %v5059_v49, %v5058_v55 }
 0x2a8   : > { %v5162_v61 = vsel %vm4967_vm1, %v5101_v7, 0.0  ;;  %4999 = vst.msk [vmem:[%s7796_s26 + $0xf8] sm:$0xff] %vm4967_vm1, %v4964_v22  ;;  %v5061_v32 = vsel %vm4967_vm1, %v4964_v22, 0.0  ;;  %v5102_v45 = vmul.f32 %v4964_v22, %v4964_v22 }
 0x2a9   : > { %v5163_v16 = vadd.f32 %v5162_v61, %v5161_v35  ;;  %v5062_v59 = vadd.f32 %v5061_v32, %v5060_v1 }
 0x2aa   : > { %v5164_v54 = vsel %vm4967_vm1, %v5102_v45, 0.0 }
 0x2ab   : > { %v5063_v51 = vrot.slane %v5062_v59, 4  ;;  %v5165_v10 = vadd.f32 %v5164_v54, %v5163_v16 }
 0x2ad   : > { %v5064_v53 = vadd.f32 %v5063_v51, %v5062_v59  ;;  %v5166_v12 = vrot.slane %v5165_v10, 4 }
 0x2af   : > { %v5065_v36 = vrot.slane %v5064_v53, 2  ;;  %v5167_v13 = vadd.f32 %v5166_v12, %v5165_v10 }
 0x2b1   : > { %v5066_v56 = vadd.f32 %v5065_v36, %v5064_v53  ;;  %v5168_v42 = vrot.slane %v5167_v13, 2 }
 0x2b3   : > { %v5067_v0 = vrot.slane %v5066_v56, 1  ;;  %v5169_v25 = vadd.f32 %v5168_v42, %v5167_v13 }
 0x2b5   : > { %v5068_v39 = vadd.f32 %v5067_v0, %v5066_v56  ;;  %v5170_v11 = vrot.slane %v5169_v25, 1 }
 0x2b7   : > { %5070 = vst.msk [vmem:[%s265_s12] sm:$0x1] %vm5069_vm2, %v5068_v39  ;;  %v5171_v33 = vadd.f32 %v5170_v11, %v5169_v25 }
 0x2b9   : > { %5172 = vst.msk [vmem:[%s268_s15] sm:$0x1] %vm5069_vm2, %v5171_v33 }
 0x2ba PF: > { %s17_s21 = sadd.s32 1, %s6085_s21  }
 0x2bb   : > { %p14_p4 = scmp.ge.s32.totalorder %s17_s21, 4  }
 0x2bd   :  { %16 = sbr.rel (!%p14_p4) target bundleno = 1 (0x1), region = 93 }

</bundles_post_ra>
